<compile_context>
chip_gen: v7x
topology: tpu7x:2x2x1
jax: 0.10.0
libtpu: 0.0.40
codegen_flags: <defaults>
</compile_context>

<pallas_src>
import functools
import math

import jax
import jax.numpy as jnp
from jax.experimental import pallas as pl
from jax.experimental.pallas import tpu as pltpu

BF16 = jnp.bfloat16
EPS = 1e-5


def _round_up(x, m):
    return (x + m - 1) // m * m


def _cpad(c):
    """Carried channel count: channels >= 128 are padded to a multiple of 128."""
    return _round_up(c, 128) if c >= 128 else c


def _tile_for(size, cap, align):
    """Largest multiple of `align` <= cap that divides `size` (or size itself if <= cap)."""
    if size <= cap:
        return size
    best = align
    t = align
    while t <= cap:
        if size % t == 0:
            best = t
        t += align
    return best


def _chan_tile(c):
    return c if c % 128 != 0 else _tile_for(c, 256, 128)


def _loop(n, body):
    """Static unroll for small trip counts, fori_loop otherwise."""
    if n <= 64:
        for i in range(n):
            body(i)
    else:
        def wrapped(i, carry):
            body(i)
            return carry
        jax.lax.fori_loop(0, n, wrapped, 0)


# --------------------------------------------------------------------------
# Kernel 1: gridded bf16 matmul with f32 VMEM accumulator (1x1 skip convs)
# --------------------------------------------------------------------------

def _matmul_kernel(a_ref, b_ref, o_ref, acc_ref):
    @pl.when(pl.program_id(2) == 0)
    def _():
        acc_ref[...] = jnp.zeros_like(acc_ref)

    acc_ref[...] += jnp.dot(a_ref[...], b_ref[...],
                            preferred_element_type=jnp.float32)

    @pl.when(pl.program_id(2) == pl.num_programs(2) - 1)
    def _():
        o_ref[...] = acc_ref[...].astype(o_ref.dtype)


@functools.lru_cache(maxsize=None)
def _matmul_call(Mp, Kp, Np, tm, tk, tn):
    grid = (Mp // tm, Np // tn, Kp // tk)
    return jax.jit(pl.pallas_call(
        _matmul_kernel,
        out_shape=jax.ShapeDtypeStruct((Mp, Np), BF16),
        grid_spec=pltpu.PrefetchScalarGridSpec(
            num_scalar_prefetch=0, grid=grid,
            in_specs=[pl.BlockSpec((tm, tk), lambda i, j, k: (i, k)),
                      pl.BlockSpec((tk, tn), lambda i, j, k: (k, j))],
            out_specs=pl.BlockSpec((tm, tn), lambda i, j, k: (i, j)),
            scratch_shapes=[pltpu.VMEM((tm, tn), jnp.float32)]),
        compiler_params=pltpu.CompilerParams(
            dimension_semantics=("parallel", "parallel", "arbitrary")),
    ))


def pallas_matmul(a, b):
    """[M,K] @ [K,N] -> [M,N]; bf16 operands, f32 MXU accumulation."""
    M, K = a.shape
    K2, N = b.shape
    assert K == K2
    Mp = _round_up(M, 8)
    Kp = _round_up(K, 128) if K >= 128 else K
    Np = _round_up(N, 128)
    tm = _tile_for(Mp, 256, 8)
    tk = _tile_for(Kp, 512, 128) if Kp % 128 == 0 else Kp
    tn = _tile_for(Np, 256, 128)
    a_p = a if (Mp == M and Kp == K) else jnp.pad(a, ((0, Mp - M), (0, Kp - K)))
    b_p = b if (Kp == K and Np == N) else jnp.pad(b, ((0, Kp - K), (0, Np - N)))
    out = _matmul_call(Mp, Kp, Np, tm, tk, tn)(a_p, b_p)
    if Mp != M or Np != N:
        out = out[:M, :N]
    return out


# --------------------------------------------------------------------------
# Kernel 2: fused depthwise-3x3 + pointwise-1x1 separable convolution.
#   Variants: plain / + fused BN sum-sumsq stats / + fused residual add + ReLU.
# --------------------------------------------------------------------------

def _sepconv_common(x_ref, dw_ref, pw_ref, d_ref, acc_ref, *,
                    stride, dil, Ho, Wo, col_off):
    @pl.when(pl.program_id(2) == 0)
    def _():
        acc_ref[...] = jnp.zeros_like(acc_ref)

    dw = dw_ref[...]                       # (9, tci) f32 depthwise taps
    tci = d_ref.shape[-1]

    def fill_row(i):
        racc = jnp.zeros((Wo, tci), jnp.float32)
        for k in range(9):
            kh = k // 3
            xs = x_ref[0, i * stride + kh * dil, pl.ds(col_off[k], Wo), :]
            racc = racc + xs.astype(jnp.float32) * dw[k:k + 1, :]
        d_ref[pl.ds(i * Wo, Wo), :] = racc.astype(d_ref.dtype)

    _loop(Ho, fill_row)

    acc_ref[...] += jnp.dot(d_ref[...], pw_ref[...],
                            preferred_element_type=jnp.float32)


def _sepconv_kernel_plain(x_ref, dw_ref, pw_ref, o_ref, d_ref, acc_ref, *,
                          stride, dil, Ho, Wo, col_off):
    _sepconv_common(x_ref, dw_ref, pw_ref, d_ref, acc_ref,
                    stride=stride, dil=dil, Ho=Ho, Wo=Wo, col_off=col_off)

    @pl.when(pl.program_id(2) == pl.num_programs(2) - 1)
    def _():
        o_ref[0] = acc_ref[...].astype(o_ref.dtype)


def _sepconv_kernel_stats(x_ref, dw_ref, pw_ref, o_ref, s_ref, d_ref, acc_ref, *,
                          stride, dil, Ho, Wo, col_off):
    _sepconv_common(x_ref, dw_ref, pw_ref, d_ref, acc_ref,
                    stride=stride, dil=dil, Ho=Ho, Wo=Wo, col_off=col_off)

    @pl.when(pl.program_id(2) == pl.num_programs(2) - 1)
    def _():
        y = acc_ref[...].astype(o_ref.dtype)
        o_ref[0] = y
        yf = y.astype(jnp.float32)          # stats on bf16-rounded activations
        s_ref[0] = jnp.concatenate(
            [jnp.sum(yf, axis=0, keepdims=True),
             jnp.sum(yf * yf, axis=0, keepdims=True)], axis=0)


def _sepconv_kernel_res(x_ref, dw_ref, pw_ref, r_ref, o_ref, d_ref, acc_ref, *,
                        stride, dil, Ho, Wo, col_off):
    _sepconv_common(x_ref, dw_ref, pw_ref, d_ref, acc_ref,
                    stride=stride, dil=dil, Ho=Ho, Wo=Wo, col_off=col_off)

    @pl.when(pl.program_id(2) == pl.num_programs(2) - 1)
    def _():
        y = acc_ref[...] + r_ref[0].astype(jnp.float32)
        o_ref[0] = jnp.maximum(y, 0.0).astype(o_ref.dtype)


@functools.lru_cache(maxsize=None)
def _sepconv_call(N, Hp, Wp, Cin, Cout, stride, dil, tci, tco, col_off, mode):
    Ho = (Hp - 2 * dil - 1) // stride + 1
    Wo = (Wp - 2 * dil - 1) // stride + 1
    kw = dict(stride=stride, dil=dil, Ho=Ho, Wo=Wo, col_off=col_off)
    grid = (N, Cout // tco, Cin // tci)
    in_specs = [
        pl.BlockSpec((1, Hp, Wp, tci), lambda n, co, ci: (n, 0, 0, ci)),
        pl.BlockSpec((9, tci), lambda n, co, ci: (0, ci)),
        pl.BlockSpec((tci, tco), lambda n, co, ci: (ci, co)),
    ]
    out_act = pl.BlockSpec((1, Ho * Wo, tco), lambda n, co, ci: (n, 0, co))
    scratch = [pltpu.VMEM((Ho * Wo, tci), BF16),
               pltpu.VMEM((Ho * Wo, tco), jnp.float32)]
    if mode == 'stats':
        kern = functools.partial(_sepconv_kernel_stats, **kw)
        out_shape = (jax.ShapeDtypeStruct((N, Ho * Wo, Cout), BF16),
                     jax.ShapeDtypeStruct((N, 2, Cout), jnp.float32))
        out_specs = (out_act,
                     pl.BlockSpec((1, 2, tco), lambda n, co, ci: (n, 0, co)))
    elif mode == 'res':
        kern = functools.partial(_sepconv_kernel_res, **kw)
        in_specs = in_specs + [
            pl.BlockSpec((1, Ho * Wo, tco), lambda n, co, ci: (n, 0, co))]
        out_shape = jax.ShapeDtypeStruct((N, Ho * Wo, Cout), BF16)
        out_specs = out_act
    else:
        kern = functools.partial(_sepconv_kernel_plain, **kw)
        out_shape = jax.ShapeDtypeStruct((N, Ho * Wo, Cout), BF16)
        out_specs = out_act
    return jax.jit(pl.pallas_call(
        kern,
        out_shape=out_shape,
        grid_spec=pltpu.PrefetchScalarGridSpec(
            num_scalar_prefetch=0, grid=grid,
            in_specs=in_specs, out_specs=out_specs,
            scratch_shapes=scratch),
        compiler_params=pltpu.CompilerParams(
            dimension_semantics=("parallel", "parallel", "arbitrary")),
    ))


def _sepconv_prepare(x, stride, dilation):
    """fixed_padding + (for stride 2) column parity pre-split so every in-kernel
    tap read is a contiguous slice; the conv stride itself is applied in-kernel."""
    N, H, W, C = x.shape
    pad = dilation                          # pad_total = 2*dil (symmetric)
    xp = jnp.pad(x, ((0, 0), (pad, pad), (pad, pad), (0, 0)))
    Hp, Wp = H + 2 * pad, W + 2 * pad
    if stride == 1:
        x_in = xp
        col_off = tuple((k % 3) * dilation for k in range(9))
    else:
        assert stride == 2 and dilation == 1
        We = (Wp + 1) // 2
        x_in = jnp.concatenate([xp[:, :, 0::2, :], xp[:, :, 1::2, :]], axis=2)
        col_off = tuple((k % 3) // 2 if (k % 3) % 2 == 0 else We
                        for k in range(9))
    return x_in, Hp, Wp, col_off


def separable_conv(x, p, stride, dilation):
    """SeparabelConv2d: fixed_padding -> depthwise 3x3 -> pointwise 1x1 (fused)."""
    N, H, W, C = x.shape
    Cout = p['pw'].shape[-1]
    Ho = (H - 1) // stride + 1
    Wo = (W - 1) // stride + 1
    x_in, Hp, Wp, col_off = _sepconv_prepare(x, stride, dilation)
    tci, tco = _chan_tile(C), _chan_tile(Cout)
    y = _sepconv_call(N, Hp, Wp, C, Cout, stride, dilation, tci, tco,
                      col_off, 'plain')(x_in, p['dw'], p['pw'])
    return y.reshape(N, Ho, Wo, Cout)


def separable_conv_stats(x, p, stride, dilation):
    """Separable conv + fused per-channel sum/sumsq (for the following BatchNorm)."""
    N, H, W, C = x.shape
    Cout = p['pw'].shape[-1]
    Ho = (H - 1) // stride + 1
    Wo = (W - 1) // stride + 1
    x_in, Hp, Wp, col_off = _sepconv_prepare(x, stride, dilation)
    tci, tco = _chan_tile(C), _chan_tile(Cout)
    y, st = _sepconv_call(N, Hp, Wp, C, Cout, stride, dilation, tci, tco,
                          col_off, 'stats')(x_in, p['dw'], p['pw'])
    return y.reshape(N, Ho, Wo, Cout), jnp.sum(st, axis=0)   # (2, Cout)


def separable_conv_residual(x, p, residual):
    """relu(SeparabelConv2d(x) + residual), stride 1 / dilation 1 (identity-skip blocks)."""
    N, H, W, C = x.shape
    Cout = p['pw'].shape[-1]
    x_in, Hp, Wp, col_off = _sepconv_prepare(x, 1, 1)
    tci, tco = _chan_tile(C), _chan_tile(Cout)
    r2 = residual.reshape(N, H * W, Cout)
    y = _sepconv_call(N, Hp, Wp, C, Cout, 1, 1, tci, tco,
                      col_off, 'res')(x_in, p['dw'], p['pw'], r2)
    return y.reshape(N, H, W, Cout)


# --------------------------------------------------------------------------
# Kernel 3: entry-flow 3x3 conv (stride 1, padding 1) + fused BN stats
# --------------------------------------------------------------------------

def _conv3x3_kernel(x_ref, w_ref, o_ref, s_ref, col_ref, *, H, W):
    tco = o_ref.shape[-1]
    acc = jnp.zeros((H * W, tco), jnp.float32)
    for k in range(9):
        kh, kw = k // 3, k % 3

        def fill_row(i, kh=kh, kw=kw):
            col_ref[pl.ds(i * W, W), :] = x_ref[0, i + kh, pl.ds(kw, W), :]

        _loop(H, fill_row)
        acc = acc + jnp.dot(col_ref[...], w_ref[k],
                            preferred_element_type=jnp.float32)
    y = acc.astype(o_ref.dtype)
    o_ref[0] = y
    yf = y.astype(jnp.float32)
    s_ref[0] = jnp.concatenate(
        [jnp.sum(yf, axis=0, keepdims=True),
         jnp.sum(yf * yf, axis=0, keepdims=True)], axis=0)


@functools.lru_cache(maxsize=None)
def _conv3x3_call(N, H, W, Cin, Cout, tco):
    Hp, Wp = H + 2, W + 2
    kern = functools.partial(_conv3x3_kernel, H=H, W=W)
    return jax.jit(pl.pallas_call(
        kern,
        out_shape=(jax.ShapeDtypeStruct((N, H * W, Cout), BF16),
                   jax.ShapeDtypeStruct((N, 2, Cout), jnp.float32)),
        grid_spec=pltpu.PrefetchScalarGridSpec(
            num_scalar_prefetch=0, grid=(N, Cout // tco),
            in_specs=[
                pl.BlockSpec((1, Hp, Wp, Cin), lambda n, j: (n, 0, 0, 0)),
                pl.BlockSpec((9, Cin, tco), lambda n, j: (0, 0, j)),
            ],
            out_specs=(pl.BlockSpec((1, H * W, tco), lambda n, j: (n, 0, j)),
                       pl.BlockSpec((1, 2, tco), lambda n, j: (n, 0, j))),
            scratch_shapes=[pltpu.VMEM((H * W, Cin), BF16)]),
        compiler_params=pltpu.CompilerParams(
            dimension_semantics=("parallel", "parallel")),
    ))


def conv3x3_same_stats(x, w):
    N, H, W, C = x.shape
    Cout = w.shape[-1]
    xp = jnp.pad(x, ((0, 0), (1, 1), (1, 1), (0, 0)))
    tco = _chan_tile(Cout)
    y, st = _conv3x3_call(N, H, W, C, Cout, tco)(xp, w)
    return y.reshape(N, H, W, Cout), jnp.sum(st, axis=0)


# --------------------------------------------------------------------------
# Kernels 4/5: BatchNorm stats (skip path only) + fused apply/residual/ReLU
# --------------------------------------------------------------------------

def _bn_stats_kernel(x_ref, s_ref):
    @pl.when(pl.program_id(0) == 0)
    def _():
        s_ref[...] = jnp.zeros_like(s_ref)

    x = x_ref[...].astype(jnp.float32)
    ssum = jnp.sum(x, axis=0, keepdims=True)
    ssq = jnp.sum(x * x, axis=0, keepdims=True)
    s_ref[...] += jnp.concatenate([ssum, ssq], axis=0)


@functools.lru_cache(maxsize=None)
def _bn_stats_call(Mp, C, tm):
    return jax.jit(pl.pallas_call(
        _bn_stats_kernel,
        out_shape=jax.ShapeDtypeStruct((2, C), jnp.float32),
        grid_spec=pltpu.PrefetchScalarGridSpec(
            num_scalar_prefetch=0, grid=(Mp // tm,),
            in_specs=[pl.BlockSpec((tm, C), lambda i: (i, 0))],
            out_specs=pl.BlockSpec((2, C), lambda i: (0, 0))),
        compiler_params=pltpu.CompilerParams(
            dimension_semantics=("arbitrary",)),
    ))


def _bn_apply_kernel(x_ref, s_ref, g_ref, b_ref, o_ref, *, relu, count):
    x = x_ref[...].astype(jnp.float32)
    mean = s_ref[0:1, :] / count
    var = jnp.maximum(s_ref[1:2, :] / count - mean * mean, 0.0)
    y = (x - mean) * jax.lax.rsqrt(var + EPS) * g_ref[...] + b_ref[...]
    if relu:
        y = jnp.maximum(y, 0.0)
    o_ref[...] = y.astype(o_ref.dtype)


def _bn_apply_res_kernel(x_ref, s_ref, g_ref, b_ref, r_ref, o_ref, *, relu, count):
    x = x_ref[...].astype(jnp.float32)
    mean = s_ref[0:1, :] / count
    var = jnp.maximum(s_ref[1:2, :] / count - mean * mean, 0.0)
    y = (x - mean) * jax.lax.rsqrt(var + EPS) * g_ref[...] + b_ref[...]
    y = y + r_ref[...].astype(jnp.float32)
    if relu:
        y = jnp.maximum(y, 0.0)
    o_ref[...] = y.astype(o_ref.dtype)


@functools.lru_cache(maxsize=None)
def _bn_apply_call(Mp, C, tm, relu, has_res, M):
    count = float(M)
    row = pl.BlockSpec((tm, C), lambda i: (i, 0))
    const2 = pl.BlockSpec((2, C), lambda i: (0, 0))
    const1 = pl.BlockSpec((1, C), lambda i: (0, 0))
    if has_res:
        kern = functools.partial(_bn_apply_res_kernel, relu=relu, count=count)
        in_specs = [row, const2, const1, const1, row]
    else:
        kern = functools.partial(_bn_apply_kernel, relu=relu, count=count)
        in_specs = [row, const2, const1, const1]
    return jax.jit(pl.pallas_call(
        kern,
        out_shape=jax.ShapeDtypeStruct((Mp, C), BF16),
        grid_spec=pltpu.PrefetchScalarGridSpec(
            num_scalar_prefetch=0, grid=(Mp // tm,),
            in_specs=in_specs, out_specs=row),
        compiler_params=pltpu.CompilerParams(
            dimension_semantics=("parallel",)),
    ))


def _flatten_rows(x):
    N, H, W, C = x.shape
    M = N * H * W
    Mp = _round_up(M, 8)
    tm = _tile_for(Mp, 512, 8)
    x2 = x.reshape(M, C)
    if Mp != M:
        x2 = jnp.pad(x2, ((0, Mp - M), (0, 0)))
    return x2, M, Mp, tm


def batchnorm_apply(x, stats, bn, relu, residual=None):
    """Training-mode BN apply using precomputed (2, C) sum/sumsq stats
    (+ optional fused residual add) (+ optional ReLU)."""
    N, H, W, C = x.shape
    x2, M, Mp, tm = _flatten_rows(x)
    if residual is None:
        y = _bn_apply_call(Mp, C, tm, relu, False, M)(x2, stats, bn['g'], bn['b'])
    else:
        r2, _, _, _ = _flatten_rows(residual)
        y = _bn_apply_call(Mp, C, tm, relu, True, M)(x2, stats, bn['g'], bn['b'], r2)
    if Mp != M:
        y = y[:M]
    return y.reshape(N, H, W, C)


def batchnorm(x, bn, relu, residual=None):
    """Training-mode BatchNorm2d with its own stats pass (used on the skip path)."""
    x2, M, Mp, tm = _flatten_rows(x)
    stats = _bn_stats_call(Mp, x.shape[-1], tm)(x2)
    return batchnorm_apply(x, stats, bn, relu, residual)


def conv1x1(x, w, stride):
    xs = x[:, ::stride, ::stride, :]
    N, H, W, C = xs.shape
    cout = w.shape[-1]
    y = pallas_matmul(xs.reshape(N * H * W, C), w)
    return y.reshape(N, H, W, cout)


# --------------------------------------------------------------------------
# Parameter construction (deterministic, same shapes / std as _init_weight)
# --------------------------------------------------------------------------

class ParamGen:
    def __init__(self, key):
        self.key = key

    def normal(self, shape, std, dtype=BF16):
        self.key, sub = jax.random.split(self.key)
        return (jax.random.normal(sub, shape, jnp.float32) * std).astype(dtype)


def make_bn(c):
    cp = _cpad(c)
    return {'g': jnp.ones((1, cp), jnp.float32),
            'b': jnp.zeros((1, cp), jnp.float32)}


def make_sep(pg, cin, cout):
    cinp, coutp = _cpad(cin), _cpad(cout)
    dw = pg.normal((9, cin), math.sqrt(2.0 / (9 * cin)), dtype=jnp.float32)
    pw = pg.normal((cin, cout), math.sqrt(2.0 / cout), dtype=BF16)
    return {'dw': jnp.pad(dw, ((0, 0), (0, cinp - cin))),
            'pw': jnp.pad(pw, ((0, cinp - cin), (0, coutp - cout)))}


def make_block(pg, cin, cout, reps, stride, grow_first):
    p = {'reps': []}
    if grow_first:
        pairs = [(cin, cout)] + [(cout, cout)] * (reps - 1)
    else:
        pairs = [(cin, cin)] + [(cin, cout)] * (reps - 1)
    for a, b in pairs:
        p['reps'].append({'sep': make_sep(pg, a, b), 'bn': make_bn(b)})
    p['last'] = make_sep(pg, cout, cout)
    if cin != cout or stride != 1:
        w = pg.normal((cin, cout), math.sqrt(2.0 / cout), dtype=BF16)
        p['skip'] = {'w': jnp.pad(w, ((0, _cpad(cin) - cin),
                                      (0, _cpad(cout) - cout))),
                     'bn': make_bn(cout)}
    return p


def init_params(key, in_channels):
    pg = ParamGen(key)
    P = {}
    P['conv1'] = {'w': pg.normal((9, in_channels, 32), math.sqrt(2.0 / (9 * 32))),
                  'bn': make_bn(32)}
    P['conv2'] = {'w': pg.normal((9, 32, 64), math.sqrt(2.0 / (9 * 64))),
                  'bn': make_bn(64)}
    P['block1'] = make_block(pg, 64, 128, reps=2, stride=2, grow_first=True)
    P['block2'] = make_block(pg, 128, 256, reps=2, stride=2, grow_first=True)
    P['block3'] = make_block(pg, 256, 728, reps=2, stride=2, grow_first=True)
    P['mid'] = [make_block(pg, 728, 728, reps=2, stride=1, grow_first=False)
                for _ in range(16)]
    P['exit1'] = make_block(pg, 728, 1024, reps=2, stride=2, grow_first=False)
    P['exit2'] = make_sep(pg, 1024, 1536)
    P['exit3'] = make_sep(pg, 1536, 1536)
    P['exit4'] = make_sep(pg, 1536, 2048)
    return P


# --------------------------------------------------------------------------
# Forward pass
# --------------------------------------------------------------------------

def block_forward(x, p, stride, dilation):
    y = x
    for rp in p['reps']:
        y, st = separable_conv_stats(y, rp['sep'], 1, dilation)
        y = batchnorm_apply(y, st, rp['bn'], relu=True)
    if 'skip' in p:
        y = separable_conv(y, p['last'], stride, 1)    # final Sep uses dilation=1
        s = conv1x1(x, p['skip']['w'], stride)
        # skip-BN + residual add + ReLU fused into a single tiled pass
        return batchnorm(s, p['skip']['bn'], relu=True, residual=y)
    # identity skip: residual add + ReLU fused into the final separable conv
    return separable_conv_residual(y, p['last'], residual=x)


def _xception_forward_impl(x_nchw, params, os):
    if os == 16:
        entry3_stride, mid_dil, exit_dils = 2, 1, (1, 2)
    elif os == 8:
        entry3_stride, mid_dil, exit_dils = 1, 2, (2, 4)
    else:
        raise NotImplementedError
    x = jnp.transpose(x_nchw, (0, 2, 3, 1)).astype(BF16)     # NCHW -> NHWC
    x, st = conv3x3_same_stats(x, params['conv1']['w'])
    x = batchnorm_apply(x, st, params['conv1']['bn'], relu=True)
    x, st = conv3x3_same_stats(x, params['conv2']['w'])
    x = batchnorm_apply(x, st, params['conv2']['bn'], relu=True)
    x = block_forward(x, params['block1'], stride=2, dilation=1)
    x = block_forward(x, params['block2'], stride=2, dilation=1)
    low_level_feat = x
    x = block_forward(x, params['block3'], stride=entry3_stride, dilation=1)
    for bp in params['mid']:
        x = block_forward(x, bp, stride=1, dilation=mid_dil)
    x = block_forward(x, params['exit1'], stride=2, dilation=exit_dils[0])
    x = separable_conv(x, params['exit2'], 1, exit_dils[1])
    x = separable_conv(x, params['exit3'], 1, exit_dils[1])
    x = separable_conv(x, params['exit4'], 1, exit_dils[1])
    return (jnp.transpose(x, (0, 3, 1, 2)).astype(jnp.float32),
            jnp.transpose(low_level_feat, (0, 3, 1, 2)).astype(jnp.float32))


_xception_jit = jax.jit(_xception_forward_impl, static_argnums=2)


def xception_forward(x_nchw, params, os=16):
    return _xception_jit(x_nchw, params, os)


if __name__ == "__main__":
    key = jax.random.PRNGKey(0)
    pkey, xkey = jax.random.split(key)
    params = init_params(pkey, in_channels=3)
    x = jax.random.normal(xkey, (2, 3, 16, 16), dtype=jnp.float32)   # NCHW

    out, low = xception_forward(x, params, os=16)
    out = jax.block_until_ready(out)
    low = jax.block_until_ready(low)

    assert out.shape == (2, 2048, 1, 1), out.shape
    assert low.shape == (2, 256, 4, 4), low.shape
    assert bool(jnp.all(jnp.isfinite(out))) and bool(jnp.all(jnp.isfinite(low)))
    print("KERNEL_OK")
</pallas_src>

<mosaic_0001>
module attributes {stable_mosaic.version = 11 : i64} {
  func.func @_conv3x3_kernel(%arg0: i32, %arg1: i32, %arg2: memref<1x18x18x3xbf16, #tpu.memory_space<vmem>>, %arg3: memref<9x3x32xbf16, #tpu.memory_space<vmem>>, %arg4: memref<1x256x32xbf16, #tpu.memory_space<vmem>>, %arg5: memref<1x2x32xf32, #tpu.memory_space<vmem>>, %arg6: memref<256x3xbf16, #tpu.memory_space<vmem>>) attributes {dimension_semantics = [#tpu.dimension_semantics<parallel>, #tpu.dimension_semantics<parallel>], iteration_bounds = array<i64: 2, 1>, scalar_prefetch = 0 : i64, scratch_operands = 1 : i64, tpu.core_type = #tpu.core_type<tc>, window_params = [{transform_indices = @transform_0, window_bounds = array<i64: 1, 18, 18, 3>}, {transform_indices = @transform_1, window_bounds = array<i64: 9, 3, 32>}, {transform_indices = @transform_2, window_bounds = array<i64: 1, 256, 32>}, {transform_indices = @transform_3, window_bounds = array<i64: 1, 2, 32>}]} {
    %cst = arith.constant 0.000000e+00 : f32
    %0 = vector.broadcast %cst : f32 to vector<256x32xf32>
    %c0 = arith.constant 0 : index
    %c0_0 = arith.constant 0 : index
    %c0_1 = arith.constant 0 : index
    %c0_2 = arith.constant 0 : index
    %1 = vector.load %arg2[%c0, %c0_0, %c0_1, %c0_2] : memref<1x18x18x3xbf16, #tpu.memory_space<vmem>>, vector<1x1x16x3xbf16>
    %2 = vector.shape_cast %1 : vector<1x1x16x3xbf16> to vector<16x3xbf16>
    %c0_3 = arith.constant 0 : index
    %c0_4 = arith.constant 0 : index
    %3 = vector.load %arg6[%c0_3, %c0_4] : memref<256x3xbf16, #tpu.memory_space<vmem>>, vector<16x3xbf16>
    tpu.vector_store %arg6[%c0_3, %c0_4], %2 {strides = array<i32>} : memref<256x3xbf16, #tpu.memory_space<vmem>>, vector<16x3xbf16>,
    %c0_5 = arith.constant 0 : index
    %c1 = arith.constant 1 : index
    %c0_6 = arith.constant 0 : index
    %c0_7 = arith.constant 0 : index
    %4 = vector.load %arg2[%c0_5, %c1, %c0_6, %c0_7] : memref<1x18x18x3xbf16, #tpu.memory_space<vmem>>, vector<1x1x16x3xbf16>
    %5 = vector.shape_cast %4 : vector<1x1x16x3xbf16> to vector<16x3xbf16>
    %c16 = arith.constant 16 : index
    %c0_8 = arith.constant 0 : index
    %6 = vector.load %arg6[%c16, %c0_8] : memref<256x3xbf16, #tpu.memory_space<vmem>>, vector<16x3xbf16>
    tpu.vector_store %arg6[%c16, %c0_8], %5 {strides = array<i32>} : memref<256x3xbf16, #tpu.memory_space<vmem>>, vector<16x3xbf16>,
    %c0_9 = arith.constant 0 : index
    %c2 = arith.constant 2 : index
    %c0_10 = arith.constant 0 : index
    %c0_11 = arith.constant 0 : index
    %7 = vector.load %arg2[%c0_9, %c2, %c0_10, %c0_11] : memref<1x18x18x3xbf16, #tpu.memory_space<vmem>>, vector<1x1x16x3xbf16>
    %8 = vector.shape_cast %7 : vector<1x1x16x3xbf16> to vector<16x3xbf16>
    %c32 = arith.constant 32 : index
    %c0_12 = arith.constant 0 : index
    %9 = vector.load %arg6[%c32, %c0_12] : memref<256x3xbf16, #tpu.memory_space<vmem>>, vector<16x3xbf16>
    tpu.vector_store %arg6[%c32, %c0_12], %8 {strides = array<i32>} : memref<256x3xbf16, #tpu.memory_space<vmem>>, vector<16x3xbf16>,
    %c0_13 = arith.constant 0 : index
    %c3 = arith.constant 3 : index
    %c0_14 = arith.constant 0 : index
    %c0_15 = arith.constant 0 : index
    %10 = vector.load %arg2[%c0_13, %c3, %c0_14, %c0_15] : memref<1x18x18x3xbf16, #tpu.memory_space<vmem>>, vector<1x1x16x3xbf16>
    %11 = vector.shape_cast %10 : vector<1x1x16x3xbf16> to vector<16x3xbf16>
    %c48 = arith.constant 48 : index
    %c0_16 = arith.constant 0 : index
    %12 = vector.load %arg6[%c48, %c0_16] : memref<256x3xbf16, #tpu.memory_space<vmem>>, vector<16x3xbf16>
    tpu.vector_store %arg6[%c48, %c0_16], %11 {strides = array<i32>} : memref<256x3xbf16, #tpu.memory_space<vmem>>, vector<16x3xbf16>,
    %c0_17 = arith.constant 0 : index
    %c4 = arith.constant 4 : index
    %c0_18 = arith.constant 0 : index
    %c0_19 = arith.constant 0 : index
    %13 = vector.load %arg2[%c0_17, %c4, %c0_18, %c0_19] : memref<1x18x18x3xbf16, #tpu.memory_space<vmem>>, vector<1x1x16x3xbf16>
    %14 = vector.shape_cast %13 : vector<1x1x16x3xbf16> to vector<16x3xbf16>
    %c64 = arith.constant 64 : index
    %c0_20 = arith.constant 0 : index
    %15 = vector.load %arg6[%c64, %c0_20] : memref<256x3xbf16, #tpu.memory_space<vmem>>, vector<16x3xbf16>
    tpu.vector_store %arg6[%c64, %c0_20], %14 {strides = array<i32>} : memref<256x3xbf16, #tpu.memory_space<vmem>>, vector<16x3xbf16>,
    %c0_21 = arith.constant 0 : index
    %c5 = arith.constant 5 : index
    %c0_22 = arith.constant 0 : index
    %c0_23 = arith.constant 0 : index
    %16 = vector.load %arg2[%c0_21, %c5, %c0_22, %c0_23] : memref<1x18x18x3xbf16, #tpu.memory_space<vmem>>, vector<1x1x16x3xbf16>
    %17 = vector.shape_cast %16 : vector<1x1x16x3xbf16> to vector<16x3xbf16>
    %c80 = arith.constant 80 : index
    %c0_24 = arith.constant 0 : index
    %18 = vector.load %arg6[%c80, %c0_24] : memref<256x3xbf16, #tpu.memory_space<vmem>>, vector<16x3xbf16>
    tpu.vector_store %arg6[%c80, %c0_24], %17 {strides = array<i32>} : memref<256x3xbf16, #tpu.memory_space<vmem>>, vector<16x3xbf16>,
    %c0_25 = arith.constant 0 : index
    %c6 = arith.constant 6 : index
    %c0_26 = arith.constant 0 : index
    %c0_27 = arith.constant 0 : index
    %19 = vector.load %arg2[%c0_25, %c6, %c0_26, %c0_27] : memref<1x18x18x3xbf16, #tpu.memory_space<vmem>>, vector<1x1x16x3xbf16>
    %20 = vector.shape_cast %19 : vector<1x1x16x3xbf16> to vector<16x3xbf16>
    %c96 = arith.constant 96 : index
    %c0_28 = arith.constant 0 : index
    %21 = vector.load %arg6[%c96, %c0_28] : memref<256x3xbf16, #tpu.memory_space<vmem>>, vector<16x3xbf16>
    tpu.vector_store %arg6[%c96, %c0_28], %20 {strides = array<i32>} : memref<256x3xbf16, #tpu.memory_space<vmem>>, vector<16x3xbf16>,
    %c0_29 = arith.constant 0 : index
    %c7 = arith.constant 7 : index
    %c0_30 = arith.constant 0 : index
    %c0_31 = arith.constant 0 : index
    %22 = vector.load %arg2[%c0_29, %c7, %c0_30, %c0_31] : memref<1x18x18x3xbf16, #tpu.memory_space<vmem>>, vector<1x1x16x3xbf16>
    %23 = vector.shape_cast %22 : vector<1x1x16x3xbf16> to vector<16x3xbf16>
    %c112 = arith.constant 112 : index
    %c0_32 = arith.constant 0 : index
    %24 = vector.load %arg6[%c112, %c0_32] : memref<256x3xbf16, #tpu.memory_space<vmem>>, vector<16x3xbf16>
    tpu.vector_store %arg6[%c112, %c0_32], %23 {strides = array<i32>} : memref<256x3xbf16, #tpu.memory_space<vmem>>, vector<16x3xbf16>,
    %c0_33 = arith.constant 0 : index
    %c8 = arith.constant 8 : index
    %c0_34 = arith.constant 0 : index
    %c0_35 = arith.constant 0 : index
    %25 = vector.load %arg2[%c0_33, %c8, %c0_34, %c0_35] : memref<1x18x18x3xbf16, #tpu.memory_space<vmem>>, vector<1x1x16x3xbf16>
    %26 = vector.shape_cast %25 : vector<1x1x16x3xbf16> to vector<16x3xbf16>
    %c128 = arith.constant 128 : index
    %c0_36 = arith.constant 0 : index
    %27 = vector.load %arg6[%c128, %c0_36] : memref<256x3xbf16, #tpu.memory_space<vmem>>, vector<16x3xbf16>
    tpu.vector_store %arg6[%c128, %c0_36], %26 {strides = array<i32>} : memref<256x3xbf16, #tpu.memory_space<vmem>>, vector<16x3xbf16>,
    %c0_37 = arith.constant 0 : index
    %c9 = arith.constant 9 : index
    %c0_38 = arith.constant 0 : index
    %c0_39 = arith.constant 0 : index
    %28 = vector.load %arg2[%c0_37, %c9, %c0_38, %c0_39] : memref<1x18x18x3xbf16, #tpu.memory_space<vmem>>, vector<1x1x16x3xbf16>
    %29 = vector.shape_cast %28 : vector<1x1x16x3xbf16> to vector<16x3xbf16>
    %c144 = arith.constant 144 : index
    %c0_40 = arith.constant 0 : index
    %30 = vector.load %arg6[%c144, %c0_40] : memref<256x3xbf16, #tpu.memory_space<vmem>>, vector<16x3xbf16>
    tpu.vector_store %arg6[%c144, %c0_40], %29 {strides = array<i32>} : memref<256x3xbf16, #tpu.memory_space<vmem>>, vector<16x3xbf16>,
    %c0_41 = arith.constant 0 : index
    %c10 = arith.constant 10 : index
    %c0_42 = arith.constant 0 : index
    %c0_43 = arith.constant 0 : index
    %31 = vector.load %arg2[%c0_41, %c10, %c0_42, %c0_43] : memref<1x18x18x3xbf16, #tpu.memory_space<vmem>>, vector<1x1x16x3xbf16>
    %32 = vector.shape_cast %31 : vector<1x1x16x3xbf16> to vector<16x3xbf16>
    %c160 = arith.constant 160 : index
    %c0_44 = arith.constant 0 : index
    %33 = vector.load %arg6[%c160, %c0_44] : memref<256x3xbf16, #tpu.memory_space<vmem>>, vector<16x3xbf16>
    tpu.vector_store %arg6[%c160, %c0_44], %32 {strides = array<i32>} : memref<256x3xbf16, #tpu.memory_space<vmem>>, vector<16x3xbf16>,
    %c0_45 = arith.constant 0 : index
    %c11 = arith.constant 11 : index
    %c0_46 = arith.constant 0 : index
    %c0_47 = arith.constant 0 : index
    %34 = vector.load %arg2[%c0_45, %c11, %c0_46, %c0_47] : memref<1x18x18x3xbf16, #tpu.memory_space<vmem>>, vector<1x1x16x3xbf16>
    %35 = vector.shape_cast %34 : vector<1x1x16x3xbf16> to vector<16x3xbf16>
    %c176 = arith.constant 176 : index
    %c0_48 = arith.constant 0 : index
    %36 = vector.load %arg6[%c176, %c0_48] : memref<256x3xbf16, #tpu.memory_space<vmem>>, vector<16x3xbf16>
    tpu.vector_store %arg6[%c176, %c0_48], %35 {strides = array<i32>} : memref<256x3xbf16, #tpu.memory_space<vmem>>, vector<16x3xbf16>,
    %c0_49 = arith.constant 0 : index
    %c12 = arith.constant 12 : index
    %c0_50 = arith.constant 0 : index
    %c0_51 = arith.constant 0 : index
    %37 = vector.load %arg2[%c0_49, %c12, %c0_50, %c0_51] : memref<1x18x18x3xbf16, #tpu.memory_space<vmem>>, vector<1x1x16x3xbf16>
    %38 = vector.shape_cast %37 : vector<1x1x16x3xbf16> to vector<16x3xbf16>
    %c192 = arith.constant 192 : index
    %c0_52 = arith.constant 0 : index
    %39 = vector.load %arg6[%c192, %c0_52] : memref<256x3xbf16, #tpu.memory_space<vmem>>, vector<16x3xbf16>
    tpu.vector_store %arg6[%c192, %c0_52], %38 {strides = array<i32>} : memref<256x3xbf16, #tpu.memory_space<vmem>>, vector<16x3xbf16>,
    %c0_53 = arith.constant 0 : index
    %c13 = arith.constant 13 : index
    %c0_54 = arith.constant 0 : index
    %c0_55 = arith.constant 0 : index
    %40 = vector.load %arg2[%c0_53, %c13, %c0_54, %c0_55] : memref<1x18x18x3xbf16, #tpu.memory_space<vmem>>, vector<1x1x16x3xbf16>
    %41 = vector.shape_cast %40 : vector<1x1x16x3xbf16> to vector<16x3xbf16>
    %c208 = arith.constant 208 : index
    %c0_56 = arith.constant 0 : index
    %42 = vector.load %arg6[%c208, %c0_56] : memref<256x3xbf16, #tpu.memory_space<vmem>>, vector<16x3xbf16>
    tpu.vector_store %arg6[%c208, %c0_56], %41 {strides = array<i32>} : memref<256x3xbf16, #tpu.memory_space<vmem>>, vector<16x3xbf16>,
    %c0_57 = arith.constant 0 : index
    %c14 = arith.constant 14 : index
    %c0_58 = arith.constant 0 : index
    %c0_59 = arith.constant 0 : index
    %43 = vector.load %arg2[%c0_57, %c14, %c0_58, %c0_59] : memref<1x18x18x3xbf16, #tpu.memory_space<vmem>>, vector<1x1x16x3xbf16>
    %44 = vector.shape_cast %43 : vector<1x1x16x3xbf16> to vector<16x3xbf16>
    %c224 = arith.constant 224 : index
    %c0_60 = arith.constant 0 : index
    %45 = vector.load %arg6[%c224, %c0_60] : memref<256x3xbf16, #tpu.memory_space<vmem>>, vector<16x3xbf16>
    tpu.vector_store %arg6[%c224, %c0_60], %44 {strides = array<i32>} : memref<256x3xbf16, #tpu.memory_space<vmem>>, vector<16x3xbf16>,
    %c0_61 = arith.constant 0 : index
    %c15 = arith.constant 15 : index
    %c0_62 = arith.constant 0 : index
    %c0_63 = arith.constant 0 : index
    %46 = vector.load %arg2[%c0_61, %c15, %c0_62, %c0_63] : memref<1x18x18x3xbf16, #tpu.memory_space<vmem>>, vector<1x1x16x3xbf16>
    %47 = vector.shape_cast %46 : vector<1x1x16x3xbf16> to vector<16x3xbf16>
    %c240 = arith.constant 240 : index
    %c0_64 = arith.constant 0 : index
    %48 = vector.load %arg6[%c240, %c0_64] : memref<256x3xbf16, #tpu.memory_space<vmem>>, vector<16x3xbf16>
    tpu.vector_store %arg6[%c240, %c0_64], %47 {strides = array<i32>} : memref<256x3xbf16, #tpu.memory_space<vmem>>, vector<16x3xbf16>,
    %c0_65 = arith.constant 0 : index
    %c0_66 = arith.constant 0 : index
    %49 = vector.load %arg6[%c0_65, %c0_66] : memref<256x3xbf16, #tpu.memory_space<vmem>>, vector<256x3xbf16>
    %c0_67 = arith.constant 0 : index
    %c0_68 = arith.constant 0 : index
    %c0_69 = arith.constant 0 : index
    %50 = vector.load %arg3[%c0_67, %c0_68, %c0_69] : memref<9x3x32xbf16, #tpu.memory_space<vmem>>, vector<1x3x32xbf16>
    %51 = vector.shape_cast %50 : vector<1x3x32xbf16> to vector<3x32xbf16>
    %cst_70 = arith.constant dense<0.000000e+00> : vector<256x32xf32>
    %52 = tpu.matmul %49, %51, %cst_70 {dimension_numbers = #tpu.dot_dimension_numbers<[1], [0], [0], [1], [0, 0, 1, 1], [], []>} : vector<256x3xbf16>, vector<3x32xbf16>, vector<256x32xf32> -> vector<256x32xf32>
    %53 = arith.addf %0, %52 : vector<256x32xf32>
    %c0_71 = arith.constant 0 : index
    %c0_72 = arith.constant 0 : index
    %c1_73 = arith.constant 1 : index
    %c0_74 = arith.constant 0 : index
    %54 = vector.load %arg2[%c0_71, %c0_72, %c1_73, %c0_74] : memref<1x18x18x3xbf16, #tpu.memory_space<vmem>>, vector<1x1x16x3xbf16>
    %55 = vector.shape_cast %54 : vector<1x1x16x3xbf16> to vector<16x3xbf16>
    %c0_75 = arith.constant 0 : index
    %c0_76 = arith.constant 0 : index
    %56 = vector.load %arg6[%c0_75, %c0_76] : memref<256x3xbf16, #tpu.memory_space<vmem>>, vector<16x3xbf16>
    tpu.vector_store %arg6[%c0_75, %c0_76], %55 {strides = array<i32>} : memref<256x3xbf16, #tpu.memory_space<vmem>>, vector<16x3xbf16>,
    %c0_77 = arith.constant 0 : index
    %c1_78 = arith.constant 1 : index
    %c1_79 = arith.constant 1 : index
    %c0_80 = arith.constant 0 : index
    %57 = vector.load %arg2[%c0_77, %c1_78, %c1_79, %c0_80] : memref<1x18x18x3xbf16, #tpu.memory_space<vmem>>, vector<1x1x16x3xbf16>
    %58 = vector.shape_cast %57 : vector<1x1x16x3xbf16> to vector<16x3xbf16>
    %c16_81 = arith.constant 16 : index
    %c0_82 = arith.constant 0 : index
    %59 = vector.load %arg6[%c16_81, %c0_82] : memref<256x3xbf16, #tpu.memory_space<vmem>>, vector<16x3xbf16>
    tpu.vector_store %arg6[%c16_81, %c0_82], %58 {strides = array<i32>} : memref<256x3xbf16, #tpu.memory_space<vmem>>, vector<16x3xbf16>,
    %c0_83 = arith.constant 0 : index
    %c2_84 = arith.constant 2 : index
    %c1_85 = arith.constant 1 : index
    %c0_86 = arith.constant 0 : index
    %60 = vector.load %arg2[%c0_83, %c2_84, %c1_85, %c0_86] : memref<1x18x18x3xbf16, #tpu.memory_space<vmem>>, vector<1x1x16x3xbf16>
    %61 = vector.shape_cast %60 : vector<1x1x16x3xbf16> to vector<16x3xbf16>
    %c32_87 = arith.constant 32 : index
    %c0_88 = arith.constant 0 : index
    %62 = vector.load %arg6[%c32_87, %c0_88] : memref<256x3xbf16, #tpu.memory_space<vmem>>, vector<16x3xbf16>
    tpu.vector_store %arg6[%c32_87, %c0_88], %61 {strides = array<i32>} : memref<256x3xbf16, #tpu.memory_space<vmem>>, vector<16x3xbf16>,
    %c0_89 = arith.constant 0 : index
    %c3_90 = arith.constant 3 : index
    %c1_91 = arith.constant 1 : index
    %c0_92 = arith.constant 0 : index
    %63 = vector.load %arg2[%c0_89, %c3_90, %c1_91, %c0_92] : memref<1x18x18x3xbf16, #tpu.memory_space<vmem>>, vector<1x1x16x3xbf16>
    %64 = vector.shape_cast %63 : vector<1x1x16x3xbf16> to vector<16x3xbf16>
    %c48_93 = arith.constant 48 : index
    %c0_94 = arith.constant 0 : index
    %65 = vector.load %arg6[%c48_93, %c0_94] : memref<256x3xbf16, #tpu.memory_space<vmem>>, vector<16x3xbf16>
    tpu.vector_store %arg6[%c48_93, %c0_94], %64 {strides = array<i32>} : memref<256x3xbf16, #tpu.memory_space<vmem>>, vector<16x3xbf16>,
    %c0_95 = arith.constant 0 : index
    %c4_96 = arith.constant 4 : index
    %c1_97 = arith.constant 1 : index
    %c0_98 = arith.constant 0 : index
    %66 = vector.load %arg2[%c0_95, %c4_96, %c1_97, %c0_98] : memref<1x18x18x3xbf16, #tpu.memory_space<vmem>>, vector<1x1x16x3xbf16>
    %67 = vector.shape_cast %66 : vector<1x1x16x3xbf16> to vector<16x3xbf16>
    %c64_99 = arith.constant 64 : index
    %c0_100 = arith.constant 0 : index
    %68 = vector.load %arg6[%c64_99, %c0_100] : memref<256x3xbf16, #tpu.memory_space<vmem>>, vector<16x3xbf16>
    tpu.vector_store %arg6[%c64_99, %c0_100], %67 {strides = array<i32>} : memref<256x3xbf16, #tpu.memory_space<vmem>>, vector<16x3xbf16>,
    %c0_101 = arith.constant 0 : index
    %c5_102 = arith.constant 5 : index
    %c1_103 = arith.constant 1 : index
    %c0_104 = arith.constant 0 : index
    %69 = vector.load %arg2[%c0_101, %c5_102, %c1_103, %c0_104] : memref<1x18x18x3xbf16, #tpu.memory_space<vmem>>, vector<1x1x16x3xbf16>
    %70 = vector.shape_cast %69 : vector<1x1x16x3xbf16> to vector<16x3xbf16>
    %c80_105 = arith.constant 80 : index
    %c0_106 = arith.constant 0 : index
    %71 = vector.load %arg6[%c80_105, %c0_106] : memref<256x3xbf16, #tpu.memory_space<vmem>>, vector<16x3xbf16>
    tpu.vector_store %arg6[%c80_105, %c0_106], %70 {strides = array<i32>} : memref<256x3xbf16, #tpu.memory_space<vmem>>, vector<16x3xbf16>,
    %c0_107 = arith.constant 0 : index
    %c6_108 = arith.constant 6 : index
    %c1_109 = arith.constant 1 : index
    %c0_110 = arith.constant 0 : index
    %72 = vector.load %arg2[%c0_107, %c6_108, %c1_109, %c0_110] : memref<1x18x18x3xbf16, #tpu.memory_space<vmem>>, vector<1x1x16x3xbf16>
    %73 = vector.shape_cast %72 : vector<1x1x16x3xbf16> to vector<16x3xbf16>
    %c96_111 = arith.constant 96 : index
    %c0_112 = arith.constant 0 : index
    %74 = vector.load %arg6[%c96_111, %c0_112] : memref<256x3xbf16, #tpu.memory_space<vmem>>, vector<16x3xbf16>
    tpu.vector_store %arg6[%c96_111, %c0_112], %73 {strides = array<i32>} : memref<256x3xbf16, #tpu.memory_space<vmem>>, vector<16x3xbf16>,
    %c0_113 = arith.constant 0 : index
    %c7_114 = arith.constant 7 : index
    %c1_115 = arith.constant 1 : index
    %c0_116 = arith.constant 0 : index
    %75 = vector.load %arg2[%c0_113, %c7_114, %c1_115, %c0_116] : memref<1x18x18x3xbf16, #tpu.memory_space<vmem>>, vector<1x1x16x3xbf16>
    %76 = vector.shape_cast %75 : vector<1x1x16x3xbf16> to vector<16x3xbf16>
    %c112_117 = arith.constant 112 : index
    %c0_118 = arith.constant 0 : index
    %77 = vector.load %arg6[%c112_117, %c0_118] : memref<256x3xbf16, #tpu.memory_space<vmem>>, vector<16x3xbf16>
    tpu.vector_store %arg6[%c112_117, %c0_118], %76 {strides = array<i32>} : memref<256x3xbf16, #tpu.memory_space<vmem>>, vector<16x3xbf16>,
    %c0_119 = arith.constant 0 : index
    %c8_120 = arith.constant 8 : index
    %c1_121 = arith.constant 1 : index
    %c0_122 = arith.constant 0 : index
    %78 = vector.load %arg2[%c0_119, %c8_120, %c1_121, %c0_122] : memref<1x18x18x3xbf16, #tpu.memory_space<vmem>>, vector<1x1x16x3xbf16>
    %79 = vector.shape_cast %78 : vector<1x1x16x3xbf16> to vector<16x3xbf16>
    %c128_123 = arith.constant 128 : index
    %c0_124 = arith.constant 0 : index
    %80 = vector.load %arg6[%c128_123, %c0_124] : memref<256x3xbf16, #tpu.memory_space<vmem>>, vector<16x3xbf16>
    tpu.vector_store %arg6[%c128_123, %c0_124], %79 {strides = array<i32>} : memref<256x3xbf16, #tpu.memory_space<vmem>>, vector<16x3xbf16>,
    %c0_125 = arith.constant 0 : index
    %c9_126 = arith.constant 9 : index
    %c1_127 = arith.constant 1 : index
    %c0_128 = arith.constant 0 : index
    %81 = vector.load %arg2[%c0_125, %c9_126, %c1_127, %c0_128] : memref<1x18x18x3xbf16, #tpu.memory_space<vmem>>, vector<1x1x16x3xbf16>
    %82 = vector.shape_cast %81 : vector<1x1x16x3xbf16> to vector<16x3xbf16>
    %c144_129 = arith.constant 144 : index
    %c0_130 = arith.constant 0 : index
    %83 = vector.load %arg6[%c144_129, %c0_130] : memref<256x3xbf16, #tpu.memory_space<vmem>>, vector<16x3xbf16>
    tpu.vector_store %arg6[%c144_129, %c0_130], %82 {strides = array<i32>} : memref<256x3xbf16, #tpu.memory_space<vmem>>, vector<16x3xbf16>,
    %c0_131 = arith.constant 0 : index
    %c10_132 = arith.constant 10 : index
    %c1_133 = arith.constant 1 : index
    %c0_134 = arith.constant 0 : index
    %84 = vector.load %arg2[%c0_131, %c10_132, %c1_133, %c0_134] : memref<1x18x18x3xbf16, #tpu.memory_space<vmem>>, vector<1x1x16x3xbf16>
    %85 = vector.shape_cast %84 : vector<1x1x16x3xbf16> to vector<16x3xbf16>
    %c160_135 = arith.constant 160 : index
    %c0_136 = arith.constant 0 : index
    %86 = vector.load %arg6[%c160_135, %c0_136] : memref<256x3xbf16, #tpu.memory_space<vmem>>, vector<16x3xbf16>
    tpu.vector_store %arg6[%c160_135, %c0_136], %85 {strides = array<i32>} : memref<256x3xbf16, #tpu.memory_space<vmem>>, vector<16x3xbf16>,
    %c0_137 = arith.constant 0 : index
    %c11_138 = arith.constant 11 : index
    %c1_139 = arith.constant 1 : index
    %c0_140 = arith.constant 0 : index
    %87 = vector.load %arg2[%c0_137, %c11_138, %c1_139, %c0_140] : memref<1x18x18x3xbf16, #tpu.memory_space<vmem>>, vector<1x1x16x3xbf16>
    %88 = vector.shape_cast %87 : vector<1x1x16x3xbf16> to vector<16x3xbf16>
    %c176_141 = arith.constant 176 : index
    %c0_142 = arith.constant 0 : index
    %89 = vector.load %arg6[%c176_141, %c0_142] : memref<256x3xbf16, #tpu.memory_space<vmem>>, vector<16x3xbf16>
    tpu.vector_store %arg6[%c176_141, %c0_142], %88 {strides = array<i32>} : memref<256x3xbf16, #tpu.memory_space<vmem>>, vector<16x3xbf16>,
    %c0_143 = arith.constant 0 : index
    %c12_144 = arith.constant 12 : index
    %c1_145 = arith.constant 1 : index
    %c0_146 = arith.constant 0 : index
    %90 = vector.load %arg2[%c0_143, %c12_144, %c1_145, %c0_146] : memref<1x18x18x3xbf16, #tpu.memory_space<vmem>>, vector<1x1x16x3xbf16>
    %91 = vector.shape_cast %90 : vector<1x1x16x3xbf16> to vector<16x3xbf16>
    %c192_147 = arith.constant 192 : index
    %c0_148 = arith.constant 0 : index
    %92 = vector.load %arg6[%c192_147, %c0_148] : memref<256x3xbf16, #tpu.memory_space<vmem>>, vector<16x3xbf16>
    tpu.vector_store %arg6[%c192_147, %c0_148], %91 {strides = array<i32>} : memref<256x3xbf16, #tpu.memory_space<vmem>>, vector<16x3xbf16>,
    %c0_149 = arith.constant 0 : index
    %c13_150 = arith.constant 13 : index
    %c1_151 = arith.constant 1 : index
    %c0_152 = arith.constant 0 : index
    %93 = vector.load %arg2[%c0_149, %c13_150, %c1_151, %c0_152] : memref<1x18x18x3xbf16, #tpu.memory_space<vmem>>, vector<1x1x16x3xbf16>
    %94 = vector.shape_cast %93 : vector<1x1x16x3xbf16> to vector<16x3xbf16>
    %c208_153 = arith.constant 208 : index
    %c0_154 = arith.constant 0 : index
    %95 = vector.load %arg6[%c208_153, %c0_154] : memref<256x3xbf16, #tpu.memory_space<vmem>>, vector<16x3xbf16>
    tpu.vector_store %arg6[%c208_153, %c0_154], %94 {strides = array<i32>} : memref<256x3xbf16, #tpu.memory_space<vmem>>, vector<16x3xbf16>,
    %c0_155 = arith.constant 0 : index
    %c14_156 = arith.constant 14 : index
    %c1_157 = arith.constant 1 : index
    %c0_158 = arith.constant 0 : index
    %96 = vector.load %arg2[%c0_155, %c14_156, %c1_157, %c0_158] : memref<1x18x18x3xbf16, #tpu.memory_space<vmem>>, vector<1x1x16x3xbf16>
    %97 = vector.shape_cast %96 : vector<1x1x16x3xbf16> to vector<16x3xbf16>
    %c224_159 = arith.constant 224 : index
    %c0_160 = arith.constant 0 : index
    %98 = vector.load %arg6[%c224_159, %c0_160] : memref<256x3xbf16, #tpu.memory_space<vmem>>, vector<16x3xbf16>
    tpu.vector_store %arg6[%c224_159, %c0_160], %97 {strides = array<i32>} : memref<256x3xbf16, #tpu.memory_space<vmem>>, vector<16x3xbf16>,
    %c0_161 = arith.constant 0 : index
    %c15_162 = arith.constant 15 : index
    %c1_163 = arith.constant 1 : index
    %c0_164 = arith.constant 0 : index
    %99 = vector.load %arg2[%c0_161, %c15_162, %c1_163, %c0_164] : memref<1x18x18x3xbf16, #tpu.memory_space<vmem>>, vector<1x1x16x3xbf16>
    %100 = vector.shape_cast %99 : vector<1x1x16x3xbf16> to vector<16x3xbf16>
    %c240_165 = arith.constant 240 : index
    %c0_166 = arith.constant 0 : index
    %101 = vector.load %arg6[%c240_165, %c0_166] : memref<256x3xbf16, #tpu.memory_space<vmem>>, vector<16x3xbf16>
    tpu.vector_store %arg6[%c240_165, %c0_166], %100 {strides = array<i32>} : memref<256x3xbf16, #tpu.memory_space<vmem>>, vector<16x3xbf16>,
    %c0_167 = arith.constant 0 : index
    %c0_168 = arith.constant 0 : index
    %102 = vector.load %arg6[%c0_167, %c0_168] : memref<256x3xbf16, #tpu.memory_space<vmem>>, vector<256x3xbf16>
    %c1_169 = arith.constant 1 : index
    %c0_170 = arith.constant 0 : index
    %c0_171 = arith.constant 0 : index
    %103 = vector.load %arg3[%c1_169, %c0_170, %c0_171] : memref<9x3x32xbf16, #tpu.memory_space<vmem>>, vector<1x3x32xbf16>
    %104 = vector.shape_cast %103 : vector<1x3x32xbf16> to vector<3x32xbf16>
    %cst_172 = arith.constant dense<0.000000e+00> : vector<256x32xf32>
    %105 = tpu.matmul %102, %104, %cst_172 {dimension_numbers = #tpu.dot_dimension_numbers<[1], [0], [0], [1], [0, 0, 1, 1], [], []>} : vector<256x3xbf16>, vector<3x32xbf16>, vector<256x32xf32> -> vector<256x32xf32>
    %106 = arith.addf %53, %105 : vector<256x32xf32>
    %c0_173 = arith.constant 0 : index
    %c0_174 = arith.constant 0 : index
    %c2_175 = arith.constant 2 : index
    %c0_176 = arith.constant 0 : index
    %107 = vector.load %arg2[%c0_173, %c0_174, %c2_175, %c0_176] : memref<1x18x18x3xbf16, #tpu.memory_space<vmem>>, vector<1x1x16x3xbf16>
    %108 = vector.shape_cast %107 : vector<1x1x16x3xbf16> to vector<16x3xbf16>
    %c0_177 = arith.constant 0 : index
    %c0_178 = arith.constant 0 : index
    %109 = vector.load %arg6[%c0_177, %c0_178] : memref<256x3xbf16, #tpu.memory_space<vmem>>, vector<16x3xbf16>
    tpu.vector_store %arg6[%c0_177, %c0_178], %108 {strides = array<i32>} : memref<256x3xbf16, #tpu.memory_space<vmem>>, vector<16x3xbf16>,
    %c0_179 = arith.constant 0 : index
    %c1_180 = arith.constant 1 : index
    %c2_181 = arith.constant 2 : index
    %c0_182 = arith.constant 0 : index
    %110 = vector.load %arg2[%c0_179, %c1_180, %c2_181, %c0_182] : memref<1x18x18x3xbf16, #tpu.memory_space<vmem>>, vector<1x1x16x3xbf16>
    %111 = vector.shape_cast %110 : vector<1x1x16x3xbf16> to vector<16x3xbf16>
    %c16_183 = arith.constant 16 : index
    %c0_184 = arith.constant 0 : index
    %112 = vector.load %arg6[%c16_183, %c0_184] : memref<256x3xbf16, #tpu.memory_space<vmem>>, vector<16x3xbf16>
    tpu.vector_store %arg6[%c16_183, %c0_184], %111 {strides = array<i32>} : memref<256x3xbf16, #tpu.memory_space<vmem>>, vector<16x3xbf16>,
    %c0_185 = arith.constant 0 : index
    %c2_186 = arith.constant 2 : index
    %c2_187 = arith.constant 2 : index
    %c0_188 = arith.constant 0 : index
    %113 = vector.load %arg2[%c0_185, %c2_186, %c2_187, %c0_188] : memref<1x18x18x3xbf16, #tpu.memory_space<vmem>>, vector<1x1x16x3xbf16>
    %114 = vector.shape_cast %113 : vector<1x1x16x3xbf16> to vector<16x3xbf16>
    %c32_189 = arith.constant 32 : index
    %c0_190 = arith.constant 0 : index
    %115 = vector.load %arg6[%c32_189, %c0_190] : memref<256x3xbf16, #tpu.memory_space<vmem>>, vector<16x3xbf16>
    tpu.vector_store %arg6[%c32_189, %c0_190], %114 {strides = array<i32>} : memref<256x3xbf16, #tpu.memory_space<vmem>>, vector<16x3xbf16>,
    %c0_191 = arith.constant 0 : index
    %c3_192 = arith.constant 3 : index
    %c2_193 = arith.constant 2 : index
    %c0_194 = arith.constant 0 : index
    %116 = vector.load %arg2[%c0_191, %c3_192, %c2_193, %c0_194] : memref<1x18x18x3xbf16, #tpu.memory_space<vmem>>, vector<1x1x16x3xbf16>
    %117 = vector.shape_cast %116 : vector<1x1x16x3xbf16> to vector<16x3xbf16>
    %c48_195 = arith.constant 48 : index
    %c0_196 = arith.constant 0 : index
    %118 = vector.load %arg6[%c48_195, %c0_196] : memref<256x3xbf16, #tpu.memory_space<vmem>>, vector<16x3xbf16>
    tpu.vector_store %arg6[%c48_195, %c0_196], %117 {strides = array<i32>} : memref<256x3xbf16, #tpu.memory_space<vmem>>, vector<16x3xbf16>,
    %c0_197 = arith.constant 0 : index
    %c4_198 = arith.constant 4 : index
    %c2_199 = arith.constant 2 : index
    %c0_200 = arith.constant 0 : index
    %119 = vector.load %arg2[%c0_197, %c4_198, %c2_199, %c0_200] : memref<1x18x18x3xbf16, #tpu.memory_space<vmem>>, vector<1x1x16x3xbf16>
    %120 = vector.shape_cast %119 : vector<1x1x16x3xbf16> to vector<16x3xbf16>
    %c64_201 = arith.constant 64 : index
    %c0_202 = arith.constant 0 : index
    %121 = vector.load %arg6[%c64_201, %c0_202] : memref<256x3xbf16, #tpu.memory_space<vmem>>, vector<16x3xbf16>
    tpu.vector_store %arg6[%c64_201, %c0_202], %120 {strides = array<i32>} : memref<256x3xbf16, #tpu.memory_space<vmem>>, vector<16x3xbf16>,
    %c0_203 = arith.constant 0 : index
    %c5_204 = arith.constant 5 : index
    %c2_205 = arith.constant 2 : index
    %c0_206 = arith.constant 0 : index
    %122 = vector.load %arg2[%c0_203, %c5_204, %c2_205, %c0_206] : memref<1x18x18x3xbf16, #tpu.memory_space<vmem>>, vector<1x1x16x3xbf16>
    %123 = vector.shape_cast %122 : vector<1x1x16x3xbf16> to vector<16x3xbf16>
    %c80_207 = arith.constant 80 : index
    %c0_208 = arith.constant 0 : index
    %124 = vector.load %arg6[%c80_207, %c0_208] : memref<256x3xbf16, #tpu.memory_space<vmem>>, vector<16x3xbf16>
    tpu.vector_store %arg6[%c80_207, %c0_208], %123 {strides = array<i32>} : memref<256x3xbf16, #tpu.memory_space<vmem>>, vector<16x3xbf16>,
    %c0_209 = arith.constant 0 : index
    %c6_210 = arith.constant 6 : index
    %c2_211 = arith.constant 2 : index
    %c0_212 = arith.constant 0 : index
    %125 = vector.load %arg2[%c0_209, %c6_210, %c2_211, %c0_212] : memref<1x18x18x3xbf16, #tpu.memory_space<vmem>>, vector<1x1x16x3xbf16>
    %126 = vector.shape_cast %125 : vector<1x1x16x3xbf16> to vector<16x3xbf16>
    %c96_213 = arith.constant 96 : index
    %c0_214 = arith.constant 0 : index
    %127 = vector.load %arg6[%c96_213, %c0_214] : memref<256x3xbf16, #tpu.memory_space<vmem>>, vector<16x3xbf16>
    tpu.vector_store %arg6[%c96_213, %c0_214], %126 {strides = array<i32>} : memref<256x3xbf16, #tpu.memory_space<vmem>>, vector<16x3xbf16>,
    %c0_215 = arith.constant 0 : index
    %c7_216 = arith.constant 7 : index
    %c2_217 = arith.constant 2 : index
    %c0_218 = arith.constant 0 : index
    %128 = vector.load %arg2[%c0_215, %c7_216, %c2_217, %c0_218] : memref<1x18x18x3xbf16, #tpu.memory_space<vmem>>, vector<1x1x16x3xbf16>
    %129 = vector.shape_cast %128 : vector<1x1x16x3xbf16> to vector<16x3xbf16>
    %c112_219 = arith.constant 112 : index
    %c0_220 = arith.constant 0 : index
    %130 = vector.load %arg6[%c112_219, %c0_220] : memref<256x3xbf16, #tpu.memory_space<vmem>>, vector<16x3xbf16>
    tpu.vector_store %arg6[%c112_219, %c0_220], %129 {strides = array<i32>} : memref<256x3xbf16, #tpu.memory_space<vmem>>, vector<16x3xbf16>,
    %c0_221 = arith.constant 0 : index
    %c8_222 = arith.constant 8 : index
    %c2_223 = arith.constant 2 : index
    %c0_224 = arith.constant 0 : index
    %131 = vector.load %arg2[%c0_221, %c8_222, %c2_223, %c0_224] : memref<1x18x18x3xbf16, #tpu.memory_space<vmem>>, vector<1x1x16x3xbf16>
    %132 = vector.shape_cast %131 : vector<1x1x16x3xbf16> to vector<16x3xbf16>
    %c128_225 = arith.constant 128 : index
    %c0_226 = arith.constant 0 : index
    %133 = vector.load %arg6[%c128_225, %c0_226] : memref<256x3xbf16, #tpu.memory_space<vmem>>, vector<16x3xbf16>
    tpu.vector_store %arg6[%c128_225, %c0_226], %132 {strides = array<i32>} : memref<256x3xbf16, #tpu.memory_space<vmem>>, vector<16x3xbf16>,
    %c0_227 = arith.constant 0 : index
    %c9_228 = arith.constant 9 : index
    %c2_229 = arith.constant 2 : index
    %c0_230 = arith.constant 0 : index
    %134 = vector.load %arg2[%c0_227, %c9_228, %c2_229, %c0_230] : memref<1x18x18x3xbf16, #tpu.memory_space<vmem>>, vector<1x1x16x3xbf16>
    %135 = vector.shape_cast %134 : vector<1x1x16x3xbf16> to vector<16x3xbf16>
    %c144_231 = arith.constant 144 : index
    %c0_232 = arith.constant 0 : index
    %136 = vector.load %arg6[%c144_231, %c0_232] : memref<256x3xbf16, #tpu.memory_space<vmem>>, vector<16x3xbf16>
    tpu.vector_store %arg6[%c144_231, %c0_232], %135 {strides = array<i32>} : memref<256x3xbf16, #tpu.memory_space<vmem>>, vector<16x3xbf16>,
    %c0_233 = arith.constant 0 : index
    %c10_234 = arith.constant 10 : index
    %c2_235 = arith.constant 2 : index
    %c0_236 = arith.constant 0 : index
    %137 = vector.load %arg2[%c0_233, %c10_234, %c2_235, %c0_236] : memref<1x18x18x3xbf16, #tpu.memory_space<vmem>>, vector<1x1x16x3xbf16>
    %138 = vector.shape_cast %137 : vector<1x1x16x3xbf16> to vector<16x3xbf16>
    %c160_237 = arith.constant 160 : index
    %c0_238 = arith.constant 0 : index
    %139 = vector.load %arg6[%c160_237, %c0_238] : memref<256x3xbf16, #tpu.memory_space<vmem>>, vector<16x3xbf16>
    tpu.vector_store %arg6[%c160_237, %c0_238], %138 {strides = array<i32>} : memref<256x3xbf16, #tpu.memory_space<vmem>>, vector<16x3xbf16>,
    %c0_239 = arith.constant 0 : index
    %c11_240 = arith.constant 11 : index
    %c2_241 = arith.constant 2 : index
    %c0_242 = arith.constant 0 : index
    %140 = vector.load %arg2[%c0_239, %c11_240, %c2_241, %c0_242] : memref<1x18x18x3xbf16, #tpu.memory_space<vmem>>, vector<1x1x16x3xbf16>
    %141 = vector.shape_cast %140 : vector<1x1x16x3xbf16> to vector<16x3xbf16>
    %c176_243 = arith.constant 176 : index
    %c0_244 = arith.constant 0 : index
    %142 = vector.load %arg6[%c176_243, %c0_244] : memref<256x3xbf16, #tpu.memory_space<vmem>>, vector<16x3xbf16>
    tpu.vector_store %arg6[%c176_243, %c0_244], %141 {strides = array<i32>} : memref<256x3xbf16, #tpu.memory_space<vmem>>, vector<16x3xbf16>,
    %c0_245 = arith.constant 0 : index
    %c12_246 = arith.constant 12 : index
    %c2_247 = arith.constant 2 : index
    %c0_248 = arith.constant 0 : index
    %143 = vector.load %arg2[%c0_245, %c12_246, %c2_247, %c0_248] : memref<1x18x18x3xbf16, #tpu.memory_space<vmem>>, vector<1x1x16x3xbf16>
    %144 = vector.shape_cast %143 : vector<1x1x16x3xbf16> to vector<16x3xbf16>
    %c192_249 = arith.constant 192 : index
    %c0_250 = arith.constant 0 : index
    %145 = vector.load %arg6[%c192_249, %c0_250] : memref<256x3xbf16, #tpu.memory_space<vmem>>, vector<16x3xbf16>
    tpu.vector_store %arg6[%c192_249, %c0_250], %144 {strides = array<i32>} : memref<256x3xbf16, #tpu.memory_space<vmem>>, vector<16x3xbf16>,
    %c0_251 = arith.constant 0 : index
    %c13_252 = arith.constant 13 : index
    %c2_253 = arith.constant 2 : index
    %c0_254 = arith.constant 0 : index
    %146 = vector.load %arg2[%c0_251, %c13_252, %c2_253, %c0_254] : memref<1x18x18x3xbf16, #tpu.memory_space<vmem>>, vector<1x1x16x3xbf16>
    %147 = vector.shape_cast %146 : vector<1x1x16x3xbf16> to vector<16x3xbf16>
    %c208_255 = arith.constant 208 : index
    %c0_256 = arith.constant 0 : index
    %148 = vector.load %arg6[%c208_255, %c0_256] : memref<256x3xbf16, #tpu.memory_space<vmem>>, vector<16x3xbf16>
    tpu.vector_store %arg6[%c208_255, %c0_256], %147 {strides = array<i32>} : memref<256x3xbf16, #tpu.memory_space<vmem>>, vector<16x3xbf16>,
    %c0_257 = arith.constant 0 : index
    %c14_258 = arith.constant 14 : index
    %c2_259 = arith.constant 2 : index
    %c0_260 = arith.constant 0 : index
    %149 = vector.load %arg2[%c0_257, %c14_258, %c2_259, %c0_260] : memref<1x18x18x3xbf16, #tpu.memory_space<vmem>>, vector<1x1x16x3xbf16>
    %150 = vector.shape_cast %149 : vector<1x1x16x3xbf16> to vector<16x3xbf16>
    %c224_261 = arith.constant 224 : index
    %c0_262 = arith.constant 0 : index
    %151 = vector.load %arg6[%c224_261, %c0_262] : memref<256x3xbf16, #tpu.memory_space<vmem>>, vector<16x3xbf16>
    tpu.vector_store %arg6[%c224_261, %c0_262], %150 {strides = array<i32>} : memref<256x3xbf16, #tpu.memory_space<vmem>>, vector<16x3xbf16>,
    %c0_263 = arith.constant 0 : index
    %c15_264 = arith.constant 15 : index
    %c2_265 = arith.constant 2 : index
    %c0_266 = arith.constant 0 : index
    %152 = vector.load %arg2[%c0_263, %c15_264, %c2_265, %c0_266] : memref<1x18x18x3xbf16, #tpu.memory_space<vmem>>, vector<1x1x16x3xbf16>
    %153 = vector.shape_cast %152 : vector<1x1x16x3xbf16> to vector<16x3xbf16>
    %c240_267 = arith.constant 240 : index
    %c0_268 = arith.constant 0 : index
    %154 = vector.load %arg6[%c240_267, %c0_268] : memref<256x3xbf16, #tpu.memory_space<vmem>>, vector<16x3xbf16>
    tpu.vector_store %arg6[%c240_267, %c0_268], %153 {strides = array<i32>} : memref<256x3xbf16, #tpu.memory_space<vmem>>, vector<16x3xbf16>,
    %c0_269 = arith.constant 0 : index
    %c0_270 = arith.constant 0 : index
    %155 = vector.load %arg6[%c0_269, %c0_270] : memref<256x3xbf16, #tpu.memory_space<vmem>>, vector<256x3xbf16>
    %c2_271 = arith.constant 2 : index
    %c0_272 = arith.constant 0 : index
    %c0_273 = arith.constant 0 : index
    %156 = vector.load %arg3[%c2_271, %c0_272, %c0_273] : memref<9x3x32xbf16, #tpu.memory_space<vmem>>, vector<1x3x32xbf16>
    %157 = vector.shape_cast %156 : vector<1x3x32xbf16> to vector<3x32xbf16>
    %cst_274 = arith.constant dense<0.000000e+00> : vector<256x32xf32>
    %158 = tpu.matmul %155, %157, %cst_274 {dimension_numbers = #tpu.dot_dimension_numbers<[1], [0], [0], [1], [0, 0, 1, 1], [], []>} : vector<256x3xbf16>, vector<3x32xbf16>, vector<256x32xf32> -> vector<256x32xf32>
    %159 = arith.addf %106, %158 : vector<256x32xf32>
    %c0_275 = arith.constant 0 : index
    %c1_276 = arith.constant 1 : index
    %c0_277 = arith.constant 0 : index
    %c0_278 = arith.constant 0 : index
    %160 = vector.load %arg2[%c0_275, %c1_276, %c0_277, %c0_278] : memref<1x18x18x3xbf16, #tpu.memory_space<vmem>>, vector<1x1x16x3xbf16>
    %161 = vector.shape_cast %160 : vector<1x1x16x3xbf16> to vector<16x3xbf16>
    %c0_279 = arith.constant 0 : index
    %c0_280 = arith.constant 0 : index
    %162 = vector.load %arg6[%c0_279, %c0_280] : memref<256x3xbf16, #tpu.memory_space<vmem>>, vector<16x3xbf16>
    tpu.vector_store %arg6[%c0_279, %c0_280], %161 {strides = array<i32>} : memref<256x3xbf16, #tpu.memory_space<vmem>>, vector<16x3xbf16>,
    %c0_281 = arith.constant 0 : index
    %c2_282 = arith.constant 2 : index
    %c0_283 = arith.constant 0 : index
    %c0_284 = arith.constant 0 : index
    %163 = vector.load %arg2[%c0_281, %c2_282, %c0_283, %c0_284] : memref<1x18x18x3xbf16, #tpu.memory_space<vmem>>, vector<1x1x16x3xbf16>
    %164 = vector.shape_cast %163 : vector<1x1x16x3xbf16> to vector<16x3xbf16>
    %c16_285 = arith.constant 16 : index
    %c0_286 = arith.constant 0 : index
    %165 = vector.load %arg6[%c16_285, %c0_286] : memref<256x3xbf16, #tpu.memory_space<vmem>>, vector<16x3xbf16>
    tpu.vector_store %arg6[%c16_285, %c0_286], %164 {strides = array<i32>} : memref<256x3xbf16, #tpu.memory_space<vmem>>, vector<16x3xbf16>,
    %c0_287 = arith.constant 0 : index
    %c3_288 = arith.constant 3 : index
    %c0_289 = arith.constant 0 : index
    %c0_290 = arith.constant 0 : index
    %166 = vector.load %arg2[%c0_287, %c3_288, %c0_289, %c0_290] : memref<1x18x18x3xbf16, #tpu.memory_space<vmem>>, vector<1x1x16x3xbf16>
    %167 = vector.shape_cast %166 : vector<1x1x16x3xbf16> to vector<16x3xbf16>
    %c32_291 = arith.constant 32 : index
    %c0_292 = arith.constant 0 : index
    %168 = vector.load %arg6[%c32_291, %c0_292] : memref<256x3xbf16, #tpu.memory_space<vmem>>, vector<16x3xbf16>
    tpu.vector_store %arg6[%c32_291, %c0_292], %167 {strides = array<i32>} : memref<256x3xbf16, #tpu.memory_space<vmem>>, vector<16x3xbf16>,
    %c0_293 = arith.constant 0 : index
    %c4_294 = arith.constant 4 : index
    %c0_295 = arith.constant 0 : index
    %c0_296 = arith.constant 0 : index
    %169 = vector.load %arg2[%c0_293, %c4_294, %c0_295, %c0_296] : memref<1x18x18x3xbf16, #tpu.memory_space<vmem>>, vector<1x1x16x3xbf16>
    %170 = vector.shape_cast %169 : vector<1x1x16x3xbf16> to vector<16x3xbf16>
    %c48_297 = arith.constant 48 : index
    %c0_298 = arith.constant 0 : index
    %171 = vector.load %arg6[%c48_297, %c0_298] : memref<256x3xbf16, #tpu.memory_space<vmem>>, vector<16x3xbf16>
    tpu.vector_store %arg6[%c48_297, %c0_298], %170 {strides = array<i32>} : memref<256x3xbf16, #tpu.memory_space<vmem>>, vector<16x3xbf16>,
    %c0_299 = arith.constant 0 : index
    %c5_300 = arith.constant 5 : index
    %c0_301 = arith.constant 0 : index
    %c0_302 = arith.constant 0 : index
    %172 = vector.load %arg2[%c0_299, %c5_300, %c0_301, %c0_302] : memref<1x18x18x3xbf16, #tpu.memory_space<vmem>>, vector<1x1x16x3xbf16>
    %173 = vector.shape_cast %172 : vector<1x1x16x3xbf16> to vector<16x3xbf16>
    %c64_303 = arith.constant 64 : index
    %c0_304 = arith.constant 0 : index
    %174 = vector.load %arg6[%c64_303, %c0_304] : memref<256x3xbf16, #tpu.memory_space<vmem>>, vector<16x3xbf16>
    tpu.vector_store %arg6[%c64_303, %c0_304], %173 {strides = array<i32>} : memref<256x3xbf16, #tpu.memory_space<vmem>>, vector<16x3xbf16>,
    %c0_305 = arith.constant 0 : index
    %c6_306 = arith.constant 6 : index
    %c0_307 = arith.constant 0 : index
    %c0_308 = arith.constant 0 : index
    %175 = vector.load %arg2[%c0_305, %c6_306, %c0_307, %c0_308] : memref<1x18x18x3xbf16, #tpu.memory_space<vmem>>, vector<1x1x16x3xbf16>
    %176 = vector.shape_cast %175 : vector<1x1x16x3xbf16> to vector<16x3xbf16>
    %c80_309 = arith.constant 80 : index
    %c0_310 = arith.constant 0 : index
    %177 = vector.load %arg6[%c80_309, %c0_310] : memref<256x3xbf16, #tpu.memory_space<vmem>>, vector<16x3xbf16>
    tpu.vector_store %arg6[%c80_309, %c0_310], %176 {strides = array<i32>} : memref<256x3xbf16, #tpu.memory_space<vmem>>, vector<16x3xbf16>,
    %c0_311 = arith.constant 0 : index
    %c7_312 = arith.constant 7 : index
    %c0_313 = arith.constant 0 : index
    %c0_314 = arith.constant 0 : index
    %178 = vector.load %arg2[%c0_311, %c7_312, %c0_313, %c0_314] : memref<1x18x18x3xbf16, #tpu.memory_space<vmem>>, vector<1x1x16x3xbf16>
    %179 = vector.shape_cast %178 : vector<1x1x16x3xbf16> to vector<16x3xbf16>
    %c96_315 = arith.constant 96 : index
    %c0_316 = arith.constant 0 : index
    %180 = vector.load %arg6[%c96_315, %c0_316] : memref<256x3xbf16, #tpu.memory_space<vmem>>, vector<16x3xbf16>
    tpu.vector_store %arg6[%c96_315, %c0_316], %179 {strides = array<i32>} : memref<256x3xbf16, #tpu.memory_space<vmem>>, vector<16x3xbf16>,
    %c0_317 = arith.constant 0 : index
    %c8_318 = arith.constant 8 : index
    %c0_319 = arith.constant 0 : index
    %c0_320 = arith.constant 0 : index
    %181 = vector.load %arg2[%c0_317, %c8_318, %c0_319, %c0_320] : memref<1x18x18x3xbf16, #tpu.memory_space<vmem>>, vector<1x1x16x3xbf16>
    %182 = vector.shape_cast %181 : vector<1x1x16x3xbf16> to vector<16x3xbf16>
    %c112_321 = arith.constant 112 : index
    %c0_322 = arith.constant 0 : index
    %183 = vector.load %arg6[%c112_321, %c0_322] : memref<256x3xbf16, #tpu.memory_space<vmem>>, vector<16x3xbf16>
    tpu.vector_store %arg6[%c112_321, %c0_322], %182 {strides = array<i32>} : memref<256x3xbf16, #tpu.memory_space<vmem>>, vector<16x3xbf16>,
    %c0_323 = arith.constant 0 : index
    %c9_324 = arith.constant 9 : index
    %c0_325 = arith.constant 0 : index
    %c0_326 = arith.constant 0 : index
    %184 = vector.load %arg2[%c0_323, %c9_324, %c0_325, %c0_326] : memref<1x18x18x3xbf16, #tpu.memory_space<vmem>>, vector<1x1x16x3xbf16>
    %185 = vector.shape_cast %184 : vector<1x1x16x3xbf16> to vector<16x3xbf16>
    %c128_327 = arith.constant 128 : index
    %c0_328 = arith.constant 0 : index
    %186 = vector.load %arg6[%c128_327, %c0_328] : memref<256x3xbf16, #tpu.memory_space<vmem>>, vector<16x3xbf16>
    tpu.vector_store %arg6[%c128_327, %c0_328], %185 {strides = array<i32>} : memref<256x3xbf16, #tpu.memory_space<vmem>>, vector<16x3xbf16>,
    %c0_329 = arith.constant 0 : index
    %c10_330 = arith.constant 10 : index
    %c0_331 = arith.constant 0 : index
    %c0_332 = arith.constant 0 : index
    %187 = vector.load %arg2[%c0_329, %c10_330, %c0_331, %c0_332] : memref<1x18x18x3xbf16, #tpu.memory_space<vmem>>, vector<1x1x16x3xbf16>
    %188 = vector.shape_cast %187 : vector<1x1x16x3xbf16> to vector<16x3xbf16>
    %c144_333 = arith.constant 144 : index
    %c0_334 = arith.constant 0 : index
    %189 = vector.load %arg6[%c144_333, %c0_334] : memref<256x3xbf16, #tpu.memory_space<vmem>>, vector<16x3xbf16>
    tpu.vector_store %arg6[%c144_333, %c0_334], %188 {strides = array<i32>} : memref<256x3xbf16, #tpu.memory_space<vmem>>, vector<16x3xbf16>,
    %c0_335 = arith.constant 0 : index
    %c11_336 = arith.constant 11 : index
    %c0_337 = arith.constant 0 : index
    %c0_338 = arith.constant 0 : index
    %190 = vector.load %arg2[%c0_335, %c11_336, %c0_337, %c0_338] : memref<1x18x18x3xbf16, #tpu.memory_space<vmem>>, vector<1x1x16x3xbf16>
    %191 = vector.shape_cast %190 : vector<1x1x16x3xbf16> to vector<16x3xbf16>
    %c160_339 = arith.constant 160 : index
    %c0_340 = arith.constant 0 : index
    %192 = vector.load %arg6[%c160_339, %c0_340] : memref<256x3xbf16, #tpu.memory_space<vmem>>, vector<16x3xbf16>
    tpu.vector_store %arg6[%c160_339, %c0_340], %191 {strides = array<i32>} : memref<256x3xbf16, #tpu.memory_space<vmem>>, vector<16x3xbf16>,
    %c0_341 = arith.constant 0 : index
    %c12_342 = arith.constant 12 : index
    %c0_343 = arith.constant 0 : index
    %c0_344 = arith.constant 0 : index
    %193 = vector.load %arg2[%c0_341, %c12_342, %c0_343, %c0_344] : memref<1x18x18x3xbf16, #tpu.memory_space<vmem>>, vector<1x1x16x3xbf16>
    %194 = vector.shape_cast %193 : vector<1x1x16x3xbf16> to vector<16x3xbf16>
    %c176_345 = arith.constant 176 : index
    %c0_346 = arith.constant 0 : index
    %195 = vector.load %arg6[%c176_345, %c0_346] : memref<256x3xbf16, #tpu.memory_space<vmem>>, vector<16x3xbf16>
    tpu.vector_store %arg6[%c176_345, %c0_346], %194 {strides = array<i32>} : memref<256x3xbf16, #tpu.memory_space<vmem>>, vector<16x3xbf16>,
    %c0_347 = arith.constant 0 : index
    %c13_348 = arith.constant 13 : index
    %c0_349 = arith.constant 0 : index
    %c0_350 = arith.constant 0 : index
    %196 = vector.load %arg2[%c0_347, %c13_348, %c0_349, %c0_350] : memref<1x18x18x3xbf16, #tpu.memory_space<vmem>>, vector<1x1x16x3xbf16>
    %197 = vector.shape_cast %196 : vector<1x1x16x3xbf16> to vector<16x3xbf16>
    %c192_351 = arith.constant 192 : index
    %c0_352 = arith.constant 0 : index
    %198 = vector.load %arg6[%c192_351, %c0_352] : memref<256x3xbf16, #tpu.memory_space<vmem>>, vector<16x3xbf16>
    tpu.vector_store %arg6[%c192_351, %c0_352], %197 {strides = array<i32>} : memref<256x3xbf16, #tpu.memory_space<vmem>>, vector<16x3xbf16>,
    %c0_353 = arith.constant 0 : index
    %c14_354 = arith.constant 14 : index
    %c0_355 = arith.constant 0 : index
    %c0_356 = arith.constant 0 : index
    %199 = vector.load %arg2[%c0_353, %c14_354, %c0_355, %c0_356] : memref<1x18x18x3xbf16, #tpu.memory_space<vmem>>, vector<1x1x16x3xbf16>
    %200 = vector.shape_cast %199 : vector<1x1x16x3xbf16> to vector<16x3xbf16>
    %c208_357 = arith.constant 208 : index
    %c0_358 = arith.constant 0 : index
    %201 = vector.load %arg6[%c208_357, %c0_358] : memref<256x3xbf16, #tpu.memory_space<vmem>>, vector<16x3xbf16>
    tpu.vector_store %arg6[%c208_357, %c0_358], %200 {strides = array<i32>} : memref<256x3xbf16, #tpu.memory_space<vmem>>, vector<16x3xbf16>,
    %c0_359 = arith.constant 0 : index
    %c15_360 = arith.constant 15 : index
    %c0_361 = arith.constant 0 : index
    %c0_362 = arith.constant 0 : index
    %202 = vector.load %arg2[%c0_359, %c15_360, %c0_361, %c0_362] : memref<1x18x18x3xbf16, #tpu.memory_space<vmem>>, vector<1x1x16x3xbf16>
    %203 = vector.shape_cast %202 : vector<1x1x16x3xbf16> to vector<16x3xbf16>
    %c224_363 = arith.constant 224 : index
    %c0_364 = arith.constant 0 : index
    %204 = vector.load %arg6[%c224_363, %c0_364] : memref<256x3xbf16, #tpu.memory_space<vmem>>, vector<16x3xbf16>
    tpu.vector_store %arg6[%c224_363, %c0_364], %203 {strides = array<i32>} : memref<256x3xbf16, #tpu.memory_space<vmem>>, vector<16x3xbf16>,
    %c0_365 = arith.constant 0 : index
    %c16_366 = arith.constant 16 : index
    %c0_367 = arith.constant 0 : index
    %c0_368 = arith.constant 0 : index
    %205 = vector.load %arg2[%c0_365, %c16_366, %c0_367, %c0_368] : memref<1x18x18x3xbf16, #tpu.memory_space<vmem>>, vector<1x1x16x3xbf16>
    %206 = vector.shape_cast %205 : vector<1x1x16x3xbf16> to vector<16x3xbf16>
    %c240_369 = arith.constant 240 : index
    %c0_370 = arith.constant 0 : index
    %207 = vector.load %arg6[%c240_369, %c0_370] : memref<256x3xbf16, #tpu.memory_space<vmem>>, vector<16x3xbf16>
    tpu.vector_store %arg6[%c240_369, %c0_370], %206 {strides = array<i32>} : memref<256x3xbf16, #tpu.memory_space<vmem>>, vector<16x3xbf16>,
    %c0_371 = arith.constant 0 : index
    %c0_372 = arith.constant 0 : index
    %208 = vector.load %arg6[%c0_371, %c0_372] : memref<256x3xbf16, #tpu.memory_space<vmem>>, vector<256x3xbf16>
    %c3_373 = arith.constant 3 : index
    %c0_374 = arith.constant 0 : index
    %c0_375 = arith.constant 0 : index
    %209 = vector.load %arg3[%c3_373, %c0_374, %c0_375] : memref<9x3x32xbf16, #tpu.memory_space<vmem>>, vector<1x3x32xbf16>
    %210 = vector.shape_cast %209 : vector<1x3x32xbf16> to vector<3x32xbf16>
    %cst_376 = arith.constant dense<0.000000e+00> : vector<256x32xf32>
    %211 = tpu.matmul %208, %210, %cst_376 {dimension_numbers = #tpu.dot_dimension_numbers<[1], [0], [0], [1], [0, 0, 1, 1], [], []>} : vector<256x3xbf16>, vector<3x32xbf16>, vector<256x32xf32> -> vector<256x32xf32>
    %212 = arith.addf %159, %211 : vector<256x32xf32>
    %c0_377 = arith.constant 0 : index
    %c1_378 = arith.constant 1 : index
    %c1_379 = arith.constant 1 : index
    %c0_380 = arith.constant 0 : index
    %213 = vector.load %arg2[%c0_377, %c1_378, %c1_379, %c0_380] : memref<1x18x18x3xbf16, #tpu.memory_space<vmem>>, vector<1x1x16x3xbf16>
    %214 = vector.shape_cast %213 : vector<1x1x16x3xbf16> to vector<16x3xbf16>
    %c0_381 = arith.constant 0 : index
    %c0_382 = arith.constant 0 : index
    %215 = vector.load %arg6[%c0_381, %c0_382] : memref<256x3xbf16, #tpu.memory_space<vmem>>, vector<16x3xbf16>
    tpu.vector_store %arg6[%c0_381, %c0_382], %214 {strides = array<i32>} : memref<256x3xbf16, #tpu.memory_space<vmem>>, vector<16x3xbf16>,
    %c0_383 = arith.constant 0 : index
    %c2_384 = arith.constant 2 : index
    %c1_385 = arith.constant 1 : index
    %c0_386 = arith.constant 0 : index
    %216 = vector.load %arg2[%c0_383, %c2_384, %c1_385, %c0_386] : memref<1x18x18x3xbf16, #tpu.memory_space<vmem>>, vector<1x1x16x3xbf16>
    %217 = vector.shape_cast %216 : vector<1x1x16x3xbf16> to vector<16x3xbf16>
    %c16_387 = arith.constant 16 : index
    %c0_388 = arith.constant 0 : index
    %218 = vector.load %arg6[%c16_387, %c0_388] : memref<256x3xbf16, #tpu.memory_space<vmem>>, vector<16x3xbf16>
    tpu.vector_store %arg6[%c16_387, %c0_388], %217 {strides = array<i32>} : memref<256x3xbf16, #tpu.memory_space<vmem>>, vector<16x3xbf16>,
    %c0_389 = arith.constant 0 : index
    %c3_390 = arith.constant 3 : index
    %c1_391 = arith.constant 1 : index
    %c0_392 = arith.constant 0 : index
    %219 = vector.load %arg2[%c0_389, %c3_390, %c1_391, %c0_392] : memref<1x18x18x3xbf16, #tpu.memory_space<vmem>>, vector<1x1x16x3xbf16>
    %220 = vector.shape_cast %219 : vector<1x1x16x3xbf16> to vector<16x3xbf16>
    %c32_393 = arith.constant 32 : index
    %c0_394 = arith.constant 0 : index
    %221 = vector.load %arg6[%c32_393, %c0_394] : memref<256x3xbf16, #tpu.memory_space<vmem>>, vector<16x3xbf16>
    tpu.vector_store %arg6[%c32_393, %c0_394], %220 {strides = array<i32>} : memref<256x3xbf16, #tpu.memory_space<vmem>>, vector<16x3xbf16>,
    %c0_395 = arith.constant 0 : index
    %c4_396 = arith.constant 4 : index
    %c1_397 = arith.constant 1 : index
    %c0_398 = arith.constant 0 : index
    %222 = vector.load %arg2[%c0_395, %c4_396, %c1_397, %c0_398] : memref<1x18x18x3xbf16, #tpu.memory_space<vmem>>, vector<1x1x16x3xbf16>
    %223 = vector.shape_cast %222 : vector<1x1x16x3xbf16> to vector<16x3xbf16>
    %c48_399 = arith.constant 48 : index
    %c0_400 = arith.constant 0 : index
    %224 = vector.load %arg6[%c48_399, %c0_400] : memref<256x3xbf16, #tpu.memory_space<vmem>>, vector<16x3xbf16>
    tpu.vector_store %arg6[%c48_399, %c0_400], %223 {strides = array<i32>} : memref<256x3xbf16, #tpu.memory_space<vmem>>, vector<16x3xbf16>,
    %c0_401 = arith.constant 0 : index
    %c5_402 = arith.constant 5 : index
    %c1_403 = arith.constant 1 : index
    %c0_404 = arith.constant 0 : index
    %225 = vector.load %arg2[%c0_401, %c5_402, %c1_403, %c0_404] : memref<1x18x18x3xbf16, #tpu.memory_space<vmem>>, vector<1x1x16x3xbf16>
    %226 = vector.shape_cast %225 : vector<1x1x16x3xbf16> to vector<16x3xbf16>
    %c64_405 = arith.constant 64 : index
    %c0_406 = arith.constant 0 : index
    %227 = vector.load %arg6[%c64_405, %c0_406] : memref<256x3xbf16, #tpu.memory_space<vmem>>, vector<16x3xbf16>
    tpu.vector_store %arg6[%c64_405, %c0_406], %226 {strides = array<i32>} : memref<256x3xbf16, #tpu.memory_space<vmem>>, vector<16x3xbf16>,
    %c0_407 = arith.constant 0 : index
    %c6_408 = arith.constant 6 : index
    %c1_409 = arith.constant 1 : index
    %c0_410 = arith.constant 0 : index
    %228 = vector.load %arg2[%c0_407, %c6_408, %c1_409, %c0_410] : memref<1x18x18x3xbf16, #tpu.memory_space<vmem>>, vector<1x1x16x3xbf16>
    %229 = vector.shape_cast %228 : vector<1x1x16x3xbf16> to vector<16x3xbf16>
    %c80_411 = arith.constant 80 : index
    %c0_412 = arith.constant 0 : index
    %230 = vector.load %arg6[%c80_411, %c0_412] : memref<256x3xbf16, #tpu.memory_space<vmem>>, vector<16x3xbf16>
    tpu.vector_store %arg6[%c80_411, %c0_412], %229 {strides = array<i32>} : memref<256x3xbf16, #tpu.memory_space<vmem>>, vector<16x3xbf16>,
    %c0_413 = arith.constant 0 : index
    %c7_414 = arith.constant 7 : index
    %c1_415 = arith.constant 1 : index
    %c0_416 = arith.constant 0 : index
    %231 = vector.load %arg2[%c0_413, %c7_414, %c1_415, %c0_416] : memref<1x18x18x3xbf16, #tpu.memory_space<vmem>>, vector<1x1x16x3xbf16>
    %232 = vector.shape_cast %231 : vector<1x1x16x3xbf16> to vector<16x3xbf16>
    %c96_417 = arith.constant 96 : index
    %c0_418 = arith.constant 0 : index
    %233 = vector.load %arg6[%c96_417, %c0_418] : memref<256x3xbf16, #tpu.memory_space<vmem>>, vector<16x3xbf16>
    tpu.vector_store %arg6[%c96_417, %c0_418], %232 {strides = array<i32>} : memref<256x3xbf16, #tpu.memory_space<vmem>>, vector<16x3xbf16>,
    %c0_419 = arith.constant 0 : index
    %c8_420 = arith.constant 8 : index
    %c1_421 = arith.constant 1 : index
    %c0_422 = arith.constant 0 : index
    %234 = vector.load %arg2[%c0_419, %c8_420, %c1_421, %c0_422] : memref<1x18x18x3xbf16, #tpu.memory_space<vmem>>, vector<1x1x16x3xbf16>
    %235 = vector.shape_cast %234 : vector<1x1x16x3xbf16> to vector<16x3xbf16>
    %c112_423 = arith.constant 112 : index
    %c0_424 = arith.constant 0 : index
    %236 = vector.load %arg6[%c112_423, %c0_424] : memref<256x3xbf16, #tpu.memory_space<vmem>>, vector<16x3xbf16>
    tpu.vector_store %arg6[%c112_423, %c0_424], %235 {strides = array<i32>} : memref<256x3xbf16, #tpu.memory_space<vmem>>, vector<16x3xbf16>,
    %c0_425 = arith.constant 0 : index
    %c9_426 = arith.constant 9 : index
    %c1_427 = arith.constant 1 : index
    %c0_428 = arith.constant 0 : index
    %237 = vector.load %arg2[%c0_425, %c9_426, %c1_427, %c0_428] : memref<1x18x18x3xbf16, #tpu.memory_space<vmem>>, vector<1x1x16x3xbf16>
    %238 = vector.shape_cast %237 : vector<1x1x16x3xbf16> to vector<16x3xbf16>
    %c128_429 = arith.constant 128 : index
    %c0_430 = arith.constant 0 : index
    %239 = vector.load %arg6[%c128_429, %c0_430] : memref<256x3xbf16, #tpu.memory_space<vmem>>, vector<16x3xbf16>
    tpu.vector_store %arg6[%c128_429, %c0_430], %238 {strides = array<i32>} : memref<256x3xbf16, #tpu.memory_space<vmem>>, vector<16x3xbf16>,
    %c0_431 = arith.constant 0 : index
    %c10_432 = arith.constant 10 : index
    %c1_433 = arith.constant 1 : index
    %c0_434 = arith.constant 0 : index
    %240 = vector.load %arg2[%c0_431, %c10_432, %c1_433, %c0_434] : memref<1x18x18x3xbf16, #tpu.memory_space<vmem>>, vector<1x1x16x3xbf16>
    %241 = vector.shape_cast %240 : vector<1x1x16x3xbf16> to vector<16x3xbf16>
    %c144_435 = arith.constant 144 : index
    %c0_436 = arith.constant 0 : index
    %242 = vector.load %arg6[%c144_435, %c0_436] : memref<256x3xbf16, #tpu.memory_space<vmem>>, vector<16x3xbf16>
    tpu.vector_store %arg6[%c144_435, %c0_436], %241 {strides = array<i32>} : memref<256x3xbf16, #tpu.memory_space<vmem>>, vector<16x3xbf16>,
    %c0_437 = arith.constant 0 : index
    %c11_438 = arith.constant 11 : index
    %c1_439 = arith.constant 1 : index
    %c0_440 = arith.constant 0 : index
    %243 = vector.load %arg2[%c0_437, %c11_438, %c1_439, %c0_440] : memref<1x18x18x3xbf16, #tpu.memory_space<vmem>>, vector<1x1x16x3xbf16>
    %244 = vector.shape_cast %243 : vector<1x1x16x3xbf16> to vector<16x3xbf16>
    %c160_441 = arith.constant 160 : index
    %c0_442 = arith.constant 0 : index
    %245 = vector.load %arg6[%c160_441, %c0_442] : memref<256x3xbf16, #tpu.memory_space<vmem>>, vector<16x3xbf16>
    tpu.vector_store %arg6[%c160_441, %c0_442], %244 {strides = array<i32>} : memref<256x3xbf16, #tpu.memory_space<vmem>>, vector<16x3xbf16>,
    %c0_443 = arith.constant 0 : index
    %c12_444 = arith.constant 12 : index
    %c1_445 = arith.constant 1 : index
    %c0_446 = arith.constant 0 : index
    %246 = vector.load %arg2[%c0_443, %c12_444, %c1_445, %c0_446] : memref<1x18x18x3xbf16, #tpu.memory_space<vmem>>, vector<1x1x16x3xbf16>
    %247 = vector.shape_cast %246 : vector<1x1x16x3xbf16> to vector<16x3xbf16>
    %c176_447 = arith.constant 176 : index
    %c0_448 = arith.constant 0 : index
    %248 = vector.load %arg6[%c176_447, %c0_448] : memref<256x3xbf16, #tpu.memory_space<vmem>>, vector<16x3xbf16>
    tpu.vector_store %arg6[%c176_447, %c0_448], %247 {strides = array<i32>} : memref<256x3xbf16, #tpu.memory_space<vmem>>, vector<16x3xbf16>,
    %c0_449 = arith.constant 0 : index
    %c13_450 = arith.constant 13 : index
    %c1_451 = arith.constant 1 : index
    %c0_452 = arith.constant 0 : index
    %249 = vector.load %arg2[%c0_449, %c13_450, %c1_451, %c0_452] : memref<1x18x18x3xbf16, #tpu.memory_space<vmem>>, vector<1x1x16x3xbf16>
    %250 = vector.shape_cast %249 : vector<1x1x16x3xbf16> to vector<16x3xbf16>
    %c192_453 = arith.constant 192 : index
    %c0_454 = arith.constant 0 : index
    %251 = vector.load %arg6[%c192_453, %c0_454] : memref<256x3xbf16, #tpu.memory_space<vmem>>, vector<16x3xbf16>
    tpu.vector_store %arg6[%c192_453, %c0_454], %250 {strides = array<i32>} : memref<256x3xbf16, #tpu.memory_space<vmem>>, vector<16x3xbf16>,
    %c0_455 = arith.constant 0 : index
    %c14_456 = arith.constant 14 : index
    %c1_457 = arith.constant 1 : index
    %c0_458 = arith.constant 0 : index
    %252 = vector.load %arg2[%c0_455, %c14_456, %c1_457, %c0_458] : memref<1x18x18x3xbf16, #tpu.memory_space<vmem>>, vector<1x1x16x3xbf16>
    %253 = vector.shape_cast %252 : vector<1x1x16x3xbf16> to vector<16x3xbf16>
    %c208_459 = arith.constant 208 : index
    %c0_460 = arith.constant 0 : index
    %254 = vector.load %arg6[%c208_459, %c0_460] : memref<256x3xbf16, #tpu.memory_space<vmem>>, vector<16x3xbf16>
    tpu.vector_store %arg6[%c208_459, %c0_460], %253 {strides = array<i32>} : memref<256x3xbf16, #tpu.memory_space<vmem>>, vector<16x3xbf16>,
    %c0_461 = arith.constant 0 : index
    %c15_462 = arith.constant 15 : index
    %c1_463 = arith.constant 1 : index
    %c0_464 = arith.constant 0 : index
    %255 = vector.load %arg2[%c0_461, %c15_462, %c1_463, %c0_464] : memref<1x18x18x3xbf16, #tpu.memory_space<vmem>>, vector<1x1x16x3xbf16>
    %256 = vector.shape_cast %255 : vector<1x1x16x3xbf16> to vector<16x3xbf16>
    %c224_465 = arith.constant 224 : index
    %c0_466 = arith.constant 0 : index
    %257 = vector.load %arg6[%c224_465, %c0_466] : memref<256x3xbf16, #tpu.memory_space<vmem>>, vector<16x3xbf16>
    tpu.vector_store %arg6[%c224_465, %c0_466], %256 {strides = array<i32>} : memref<256x3xbf16, #tpu.memory_space<vmem>>, vector<16x3xbf16>,
    %c0_467 = arith.constant 0 : index
    %c16_468 = arith.constant 16 : index
    %c1_469 = arith.constant 1 : index
    %c0_470 = arith.constant 0 : index
    %258 = vector.load %arg2[%c0_467, %c16_468, %c1_469, %c0_470] : memref<1x18x18x3xbf16, #tpu.memory_space<vmem>>, vector<1x1x16x3xbf16>
    %259 = vector.shape_cast %258 : vector<1x1x16x3xbf16> to vector<16x3xbf16>
    %c240_471 = arith.constant 240 : index
    %c0_472 = arith.constant 0 : index
    %260 = vector.load %arg6[%c240_471, %c0_472] : memref<256x3xbf16, #tpu.memory_space<vmem>>, vector<16x3xbf16>
    tpu.vector_store %arg6[%c240_471, %c0_472], %259 {strides = array<i32>} : memref<256x3xbf16, #tpu.memory_space<vmem>>, vector<16x3xbf16>,
    %c0_473 = arith.constant 0 : index
    %c0_474 = arith.constant 0 : index
    %261 = vector.load %arg6[%c0_473, %c0_474] : memref<256x3xbf16, #tpu.memory_space<vmem>>, vector<256x3xbf16>
    %c4_475 = arith.constant 4 : index
    %c0_476 = arith.constant 0 : index
    %c0_477 = arith.constant 0 : index
    %262 = vector.load %arg3[%c4_475, %c0_476, %c0_477] : memref<9x3x32xbf16, #tpu.memory_space<vmem>>, vector<1x3x32xbf16>
    %263 = vector.shape_cast %262 : vector<1x3x32xbf16> to vector<3x32xbf16>
    %cst_478 = arith.constant dense<0.000000e+00> : vector<256x32xf32>
    %264 = tpu.matmul %261, %263, %cst_478 {dimension_numbers = #tpu.dot_dimension_numbers<[1], [0], [0], [1], [0, 0, 1, 1], [], []>} : vector<256x3xbf16>, vector<3x32xbf16>, vector<256x32xf32> -> vector<256x32xf32>
    %265 = arith.addf %212, %264 : vector<256x32xf32>
    %c0_479 = arith.constant 0 : index
    %c1_480 = arith.constant 1 : index
    %c2_481 = arith.constant 2 : index
    %c0_482 = arith.constant 0 : index
    %266 = vector.load %arg2[%c0_479, %c1_480, %c2_481, %c0_482] : memref<1x18x18x3xbf16, #tpu.memory_space<vmem>>, vector<1x1x16x3xbf16>
    %267 = vector.shape_cast %266 : vector<1x1x16x3xbf16> to vector<16x3xbf16>
    %c0_483 = arith.constant 0 : index
    %c0_484 = arith.constant 0 : index
    %268 = vector.load %arg6[%c0_483, %c0_484] : memref<256x3xbf16, #tpu.memory_space<vmem>>, vector<16x3xbf16>
    tpu.vector_store %arg6[%c0_483, %c0_484], %267 {strides = array<i32>} : memref<256x3xbf16, #tpu.memory_space<vmem>>, vector<16x3xbf16>,
    %c0_485 = arith.constant 0 : index
    %c2_486 = arith.constant 2 : index
    %c2_487 = arith.constant 2 : index
    %c0_488 = arith.constant 0 : index
    %269 = vector.load %arg2[%c0_485, %c2_486, %c2_487, %c0_488] : memref<1x18x18x3xbf16, #tpu.memory_space<vmem>>, vector<1x1x16x3xbf16>
    %270 = vector.shape_cast %269 : vector<1x1x16x3xbf16> to vector<16x3xbf16>
    %c16_489 = arith.constant 16 : index
    %c0_490 = arith.constant 0 : index
    %271 = vector.load %arg6[%c16_489, %c0_490] : memref<256x3xbf16, #tpu.memory_space<vmem>>, vector<16x3xbf16>
    tpu.vector_store %arg6[%c16_489, %c0_490], %270 {strides = array<i32>} : memref<256x3xbf16, #tpu.memory_space<vmem>>, vector<16x3xbf16>,
    %c0_491 = arith.constant 0 : index
    %c3_492 = arith.constant 3 : index
    %c2_493 = arith.constant 2 : index
    %c0_494 = arith.constant 0 : index
    %272 = vector.load %arg2[%c0_491, %c3_492, %c2_493, %c0_494] : memref<1x18x18x3xbf16, #tpu.memory_space<vmem>>, vector<1x1x16x3xbf16>
    %273 = vector.shape_cast %272 : vector<1x1x16x3xbf16> to vector<16x3xbf16>
    %c32_495 = arith.constant 32 : index
    %c0_496 = arith.constant 0 : index
    %274 = vector.load %arg6[%c32_495, %c0_496] : memref<256x3xbf16, #tpu.memory_space<vmem>>, vector<16x3xbf16>
    tpu.vector_store %arg6[%c32_495, %c0_496], %273 {strides = array<i32>} : memref<256x3xbf16, #tpu.memory_space<vmem>>, vector<16x3xbf16>,
    %c0_497 = arith.constant 0 : index
    %c4_498 = arith.constant 4 : index
    %c2_499 = arith.constant 2 : index
    %c0_500 = arith.constant 0 : index
    %275 = vector.load %arg2[%c0_497, %c4_498, %c2_499, %c0_500] : memref<1x18x18x3xbf16, #tpu.memory_space<vmem>>, vector<1x1x16x3xbf16>
    %276 = vector.shape_cast %275 : vector<1x1x16x3xbf16> to vector<16x3xbf16>
    %c48_501 = arith.constant 48 : index
    %c0_502 = arith.constant 0 : index
    %277 = vector.load %arg6[%c48_501, %c0_502] : memref<256x3xbf16, #tpu.memory_space<vmem>>, vector<16x3xbf16>
    tpu.vector_store %arg6[%c48_501, %c0_502], %276 {strides = array<i32>} : memref<256x3xbf16, #tpu.memory_space<vmem>>, vector<16x3xbf16>,
    %c0_503 = arith.constant 0 : index
    %c5_504 = arith.constant 5 : index
    %c2_505 = arith.constant 2 : index
    %c0_506 = arith.constant 0 : index
    %278 = vector.load %arg2[%c0_503, %c5_504, %c2_505, %c0_506] : memref<1x18x18x3xbf16, #tpu.memory_space<vmem>>, vector<1x1x16x3xbf16>
    %279 = vector.shape_cast %278 : vector<1x1x16x3xbf16> to vector<16x3xbf16>
    %c64_507 = arith.constant 64 : index
    %c0_508 = arith.constant 0 : index
    %280 = vector.load %arg6[%c64_507, %c0_508] : memref<256x3xbf16, #tpu.memory_space<vmem>>, vector<16x3xbf16>
    tpu.vector_store %arg6[%c64_507, %c0_508], %279 {strides = array<i32>} : memref<256x3xbf16, #tpu.memory_space<vmem>>, vector<16x3xbf16>,
    %c0_509 = arith.constant 0 : index
    %c6_510 = arith.constant 6 : index
    %c2_511 = arith.constant 2 : index
    %c0_512 = arith.constant 0 : index
    %281 = vector.load %arg2[%c0_509, %c6_510, %c2_511, %c0_512] : memref<1x18x18x3xbf16, #tpu.memory_space<vmem>>, vector<1x1x16x3xbf16>
    %282 = vector.shape_cast %281 : vector<1x1x16x3xbf16> to vector<16x3xbf16>
    %c80_513 = arith.constant 80 : index
    %c0_514 = arith.constant 0 : index
    %283 = vector.load %arg6[%c80_513, %c0_514] : memref<256x3xbf16, #tpu.memory_space<vmem>>, vector<16x3xbf16>
    tpu.vector_store %arg6[%c80_513, %c0_514], %282 {strides = array<i32>} : memref<256x3xbf16, #tpu.memory_space<vmem>>, vector<16x3xbf16>,
    %c0_515 = arith.constant 0 : index
    %c7_516 = arith.constant 7 : index
    %c2_517 = arith.constant 2 : index
    %c0_518 = arith.constant 0 : index
    %284 = vector.load %arg2[%c0_515, %c7_516, %c2_517, %c0_518] : memref<1x18x18x3xbf16, #tpu.memory_space<vmem>>, vector<1x1x16x3xbf16>
    %285 = vector.shape_cast %284 : vector<1x1x16x3xbf16> to vector<16x3xbf16>
    %c96_519 = arith.constant 96 : index
    %c0_520 = arith.constant 0 : index
    %286 = vector.load %arg6[%c96_519, %c0_520] : memref<256x3xbf16, #tpu.memory_space<vmem>>, vector<16x3xbf16>
    tpu.vector_store %arg6[%c96_519, %c0_520], %285 {strides = array<i32>} : memref<256x3xbf16, #tpu.memory_space<vmem>>, vector<16x3xbf16>,
    %c0_521 = arith.constant 0 : index
    %c8_522 = arith.constant 8 : index
    %c2_523 = arith.constant 2 : index
    %c0_524 = arith.constant 0 : index
    %287 = vector.load %arg2[%c0_521, %c8_522, %c2_523, %c0_524] : memref<1x18x18x3xbf16, #tpu.memory_space<vmem>>, vector<1x1x16x3xbf16>
    %288 = vector.shape_cast %287 : vector<1x1x16x3xbf16> to vector<16x3xbf16>
    %c112_525 = arith.constant 112 : index
    %c0_526 = arith.constant 0 : index
    %289 = vector.load %arg6[%c112_525, %c0_526] : memref<256x3xbf16, #tpu.memory_space<vmem>>, vector<16x3xbf16>
    tpu.vector_store %arg6[%c112_525, %c0_526], %288 {strides = array<i32>} : memref<256x3xbf16, #tpu.memory_space<vmem>>, vector<16x3xbf16>,
    %c0_527 = arith.constant 0 : index
    %c9_528 = arith.constant 9 : index
    %c2_529 = arith.constant 2 : index
    %c0_530 = arith.constant 0 : index
    %290 = vector.load %arg2[%c0_527, %c9_528, %c2_529, %c0_530] : memref<1x18x18x3xbf16, #tpu.memory_space<vmem>>, vector<1x1x16x3xbf16>
    %291 = vector.shape_cast %290 : vector<1x1x16x3xbf16> to vector<16x3xbf16>
    %c128_531 = arith.constant 128 : index
    %c0_532 = arith.constant 0 : index
    %292 = vector.load %arg6[%c128_531, %c0_532] : memref<256x3xbf16, #tpu.memory_space<vmem>>, vector<16x3xbf16>
    tpu.vector_store %arg6[%c128_531, %c0_532], %291 {strides = array<i32>} : memref<256x3xbf16, #tpu.memory_space<vmem>>, vector<16x3xbf16>,
    %c0_533 = arith.constant 0 : index
    %c10_534 = arith.constant 10 : index
    %c2_535 = arith.constant 2 : index
    %c0_536 = arith.constant 0 : index
    %293 = vector.load %arg2[%c0_533, %c10_534, %c2_535, %c0_536] : memref<1x18x18x3xbf16, #tpu.memory_space<vmem>>, vector<1x1x16x3xbf16>
    %294 = vector.shape_cast %293 : vector<1x1x16x3xbf16> to vector<16x3xbf16>
    %c144_537 = arith.constant 144 : index
    %c0_538 = arith.constant 0 : index
    %295 = vector.load %arg6[%c144_537, %c0_538] : memref<256x3xbf16, #tpu.memory_space<vmem>>, vector<16x3xbf16>
    tpu.vector_store %arg6[%c144_537, %c0_538], %294 {strides = array<i32>} : memref<256x3xbf16, #tpu.memory_space<vmem>>, vector<16x3xbf16>,
    %c0_539 = arith.constant 0 : index
    %c11_540 = arith.constant 11 : index
    %c2_541 = arith.constant 2 : index
    %c0_542 = arith.constant 0 : index
    %296 = vector.load %arg2[%c0_539, %c11_540, %c2_541, %c0_542] : memref<1x18x18x3xbf16, #tpu.memory_space<vmem>>, vector<1x1x16x3xbf16>
    %297 = vector.shape_cast %296 : vector<1x1x16x3xbf16> to vector<16x3xbf16>
    %c160_543 = arith.constant 160 : index
    %c0_544 = arith.constant 0 : index
    %298 = vector.load %arg6[%c160_543, %c0_544] : memref<256x3xbf16, #tpu.memory_space<vmem>>, vector<16x3xbf16>
    tpu.vector_store %arg6[%c160_543, %c0_544], %297 {strides = array<i32>} : memref<256x3xbf16, #tpu.memory_space<vmem>>, vector<16x3xbf16>,
    %c0_545 = arith.constant 0 : index
    %c12_546 = arith.constant 12 : index
    %c2_547 = arith.constant 2 : index
    %c0_548 = arith.constant 0 : index
    %299 = vector.load %arg2[%c0_545, %c12_546, %c2_547, %c0_548] : memref<1x18x18x3xbf16, #tpu.memory_space<vmem>>, vector<1x1x16x3xbf16>
    %300 = vector.shape_cast %299 : vector<1x1x16x3xbf16> to vector<16x3xbf16>
    %c176_549 = arith.constant 176 : index
    %c0_550 = arith.constant 0 : index
    %301 = vector.load %arg6[%c176_549, %c0_550] : memref<256x3xbf16, #tpu.memory_space<vmem>>, vector<16x3xbf16>
    tpu.vector_store %arg6[%c176_549, %c0_550], %300 {strides = array<i32>} : memref<256x3xbf16, #tpu.memory_space<vmem>>, vector<16x3xbf16>,
    %c0_551 = arith.constant 0 : index
    %c13_552 = arith.constant 13 : index
    %c2_553 = arith.constant 2 : index
    %c0_554 = arith.constant 0 : index
    %302 = vector.load %arg2[%c0_551, %c13_552, %c2_553, %c0_554] : memref<1x18x18x3xbf16, #tpu.memory_space<vmem>>, vector<1x1x16x3xbf16>
    %303 = vector.shape_cast %302 : vector<1x1x16x3xbf16> to vector<16x3xbf16>
    %c192_555 = arith.constant 192 : index
    %c0_556 = arith.constant 0 : index
    %304 = vector.load %arg6[%c192_555, %c0_556] : memref<256x3xbf16, #tpu.memory_space<vmem>>, vector<16x3xbf16>
    tpu.vector_store %arg6[%c192_555, %c0_556], %303 {strides = array<i32>} : memref<256x3xbf16, #tpu.memory_space<vmem>>, vector<16x3xbf16>,
    %c0_557 = arith.constant 0 : index
    %c14_558 = arith.constant 14 : index
    %c2_559 = arith.constant 2 : index
    %c0_560 = arith.constant 0 : index
    %305 = vector.load %arg2[%c0_557, %c14_558, %c2_559, %c0_560] : memref<1x18x18x3xbf16, #tpu.memory_space<vmem>>, vector<1x1x16x3xbf16>
    %306 = vector.shape_cast %305 : vector<1x1x16x3xbf16> to vector<16x3xbf16>
    %c208_561 = arith.constant 208 : index
    %c0_562 = arith.constant 0 : index
    %307 = vector.load %arg6[%c208_561, %c0_562] : memref<256x3xbf16, #tpu.memory_space<vmem>>, vector<16x3xbf16>
    tpu.vector_store %arg6[%c208_561, %c0_562], %306 {strides = array<i32>} : memref<256x3xbf16, #tpu.memory_space<vmem>>, vector<16x3xbf16>,
    %c0_563 = arith.constant 0 : index
    %c15_564 = arith.constant 15 : index
    %c2_565 = arith.constant 2 : index
    %c0_566 = arith.constant 0 : index
    %308 = vector.load %arg2[%c0_563, %c15_564, %c2_565, %c0_566] : memref<1x18x18x3xbf16, #tpu.memory_space<vmem>>, vector<1x1x16x3xbf16>
    %309 = vector.shape_cast %308 : vector<1x1x16x3xbf16> to vector<16x3xbf16>
    %c224_567 = arith.constant 224 : index
    %c0_568 = arith.constant 0 : index
    %310 = vector.load %arg6[%c224_567, %c0_568] : memref<256x3xbf16, #tpu.memory_space<vmem>>, vector<16x3xbf16>
    tpu.vector_store %arg6[%c224_567, %c0_568], %309 {strides = array<i32>} : memref<256x3xbf16, #tpu.memory_space<vmem>>, vector<16x3xbf16>,
    %c0_569 = arith.constant 0 : index
    %c16_570 = arith.constant 16 : index
    %c2_571 = arith.constant 2 : index
    %c0_572 = arith.constant 0 : index
    %311 = vector.load %arg2[%c0_569, %c16_570, %c2_571, %c0_572] : memref<1x18x18x3xbf16, #tpu.memory_space<vmem>>, vector<1x1x16x3xbf16>
    %312 = vector.shape_cast %311 : vector<1x1x16x3xbf16> to vector<16x3xbf16>
    %c240_573 = arith.constant 240 : index
    %c0_574 = arith.constant 0 : index
    %313 = vector.load %arg6[%c240_573, %c0_574] : memref<256x3xbf16, #tpu.memory_space<vmem>>, vector<16x3xbf16>
    tpu.vector_store %arg6[%c240_573, %c0_574], %312 {strides = array<i32>} : memref<256x3xbf16, #tpu.memory_space<vmem>>, vector<16x3xbf16>,
    %c0_575 = arith.constant 0 : index
    %c0_576 = arith.constant 0 : index
    %314 = vector.load %arg6[%c0_575, %c0_576] : memref<256x3xbf16, #tpu.memory_space<vmem>>, vector<256x3xbf16>
    %c5_577 = arith.constant 5 : index
    %c0_578 = arith.constant 0 : index
    %c0_579 = arith.constant 0 : index
    %315 = vector.load %arg3[%c5_577, %c0_578, %c0_579] : memref<9x3x32xbf16, #tpu.memory_space<vmem>>, vector<1x3x32xbf16>
    %316 = vector.shape_cast %315 : vector<1x3x32xbf16> to vector<3x32xbf16>
    %cst_580 = arith.constant dense<0.000000e+00> : vector<256x32xf32>
    %317 = tpu.matmul %314, %316, %cst_580 {dimension_numbers = #tpu.dot_dimension_numbers<[1], [0], [0], [1], [0, 0, 1, 1], [], []>} : vector<256x3xbf16>, vector<3x32xbf16>, vector<256x32xf32> -> vector<256x32xf32>
    %318 = arith.addf %265, %317 : vector<256x32xf32>
    %c0_581 = arith.constant 0 : index
    %c2_582 = arith.constant 2 : index
    %c0_583 = arith.constant 0 : index
    %c0_584 = arith.constant 0 : index
    %319 = vector.load %arg2[%c0_581, %c2_582, %c0_583, %c0_584] : memref<1x18x18x3xbf16, #tpu.memory_space<vmem>>, vector<1x1x16x3xbf16>
    %320 = vector.shape_cast %319 : vector<1x1x16x3xbf16> to vector<16x3xbf16>
    %c0_585 = arith.constant 0 : index
    %c0_586 = arith.constant 0 : index
    %321 = vector.load %arg6[%c0_585, %c0_586] : memref<256x3xbf16, #tpu.memory_space<vmem>>, vector<16x3xbf16>
    tpu.vector_store %arg6[%c0_585, %c0_586], %320 {strides = array<i32>} : memref<256x3xbf16, #tpu.memory_space<vmem>>, vector<16x3xbf16>,
    %c0_587 = arith.constant 0 : index
    %c3_588 = arith.constant 3 : index
    %c0_589 = arith.constant 0 : index
    %c0_590 = arith.constant 0 : index
    %322 = vector.load %arg2[%c0_587, %c3_588, %c0_589, %c0_590] : memref<1x18x18x3xbf16, #tpu.memory_space<vmem>>, vector<1x1x16x3xbf16>
    %323 = vector.shape_cast %322 : vector<1x1x16x3xbf16> to vector<16x3xbf16>
    %c16_591 = arith.constant 16 : index
    %c0_592 = arith.constant 0 : index
    %324 = vector.load %arg6[%c16_591, %c0_592] : memref<256x3xbf16, #tpu.memory_space<vmem>>, vector<16x3xbf16>
    tpu.vector_store %arg6[%c16_591, %c0_592], %323 {strides = array<i32>} : memref<256x3xbf16, #tpu.memory_space<vmem>>, vector<16x3xbf16>,
    %c0_593 = arith.constant 0 : index
    %c4_594 = arith.constant 4 : index
    %c0_595 = arith.constant 0 : index
    %c0_596 = arith.constant 0 : index
    %325 = vector.load %arg2[%c0_593, %c4_594, %c0_595, %c0_596] : memref<1x18x18x3xbf16, #tpu.memory_space<vmem>>, vector<1x1x16x3xbf16>
    %326 = vector.shape_cast %325 : vector<1x1x16x3xbf16> to vector<16x3xbf16>
    %c32_597 = arith.constant 32 : index
    %c0_598 = arith.constant 0 : index
    %327 = vector.load %arg6[%c32_597, %c0_598] : memref<256x3xbf16, #tpu.memory_space<vmem>>, vector<16x3xbf16>
    tpu.vector_store %arg6[%c32_597, %c0_598], %326 {strides = array<i32>} : memref<256x3xbf16, #tpu.memory_space<vmem>>, vector<16x3xbf16>,
    %c0_599 = arith.constant 0 : index
    %c5_600 = arith.constant 5 : index
    %c0_601 = arith.constant 0 : index
    %c0_602 = arith.constant 0 : index
    %328 = vector.load %arg2[%c0_599, %c5_600, %c0_601, %c0_602] : memref<1x18x18x3xbf16, #tpu.memory_space<vmem>>, vector<1x1x16x3xbf16>
    %329 = vector.shape_cast %328 : vector<1x1x16x3xbf16> to vector<16x3xbf16>
    %c48_603 = arith.constant 48 : index
    %c0_604 = arith.constant 0 : index
    %330 = vector.load %arg6[%c48_603, %c0_604] : memref<256x3xbf16, #tpu.memory_space<vmem>>, vector<16x3xbf16>
    tpu.vector_store %arg6[%c48_603, %c0_604], %329 {strides = array<i32>} : memref<256x3xbf16, #tpu.memory_space<vmem>>, vector<16x3xbf16>,
    %c0_605 = arith.constant 0 : index
    %c6_606 = arith.constant 6 : index
    %c0_607 = arith.constant 0 : index
    %c0_608 = arith.constant 0 : index
    %331 = vector.load %arg2[%c0_605, %c6_606, %c0_607, %c0_608] : memref<1x18x18x3xbf16, #tpu.memory_space<vmem>>, vector<1x1x16x3xbf16>
    %332 = vector.shape_cast %331 : vector<1x1x16x3xbf16> to vector<16x3xbf16>
    %c64_609 = arith.constant 64 : index
    %c0_610 = arith.constant 0 : index
    %333 = vector.load %arg6[%c64_609, %c0_610] : memref<256x3xbf16, #tpu.memory_space<vmem>>, vector<16x3xbf16>
    tpu.vector_store %arg6[%c64_609, %c0_610], %332 {strides = array<i32>} : memref<256x3xbf16, #tpu.memory_space<vmem>>, vector<16x3xbf16>,
    %c0_611 = arith.constant 0 : index
    %c7_612 = arith.constant 7 : index
    %c0_613 = arith.constant 0 : index
    %c0_614 = arith.constant 0 : index
    %334 = vector.load %arg2[%c0_611, %c7_612, %c0_613, %c0_614] : memref<1x18x18x3xbf16, #tpu.memory_space<vmem>>, vector<1x1x16x3xbf16>
    %335 = vector.shape_cast %334 : vector<1x1x16x3xbf16> to vector<16x3xbf16>
    %c80_615 = arith.constant 80 : index
    %c0_616 = arith.constant 0 : index
    %336 = vector.load %arg6[%c80_615, %c0_616] : memref<256x3xbf16, #tpu.memory_space<vmem>>, vector<16x3xbf16>
    tpu.vector_store %arg6[%c80_615, %c0_616], %335 {strides = array<i32>} : memref<256x3xbf16, #tpu.memory_space<vmem>>, vector<16x3xbf16>,
    %c0_617 = arith.constant 0 : index
    %c8_618 = arith.constant 8 : index
    %c0_619 = arith.constant 0 : index
    %c0_620 = arith.constant 0 : index
    %337 = vector.load %arg2[%c0_617, %c8_618, %c0_619, %c0_620] : memref<1x18x18x3xbf16, #tpu.memory_space<vmem>>, vector<1x1x16x3xbf16>
    %338 = vector.shape_cast %337 : vector<1x1x16x3xbf16> to vector<16x3xbf16>
    %c96_621 = arith.constant 96 : index
    %c0_622 = arith.constant 0 : index
    %339 = vector.load %arg6[%c96_621, %c0_622] : memref<256x3xbf16, #tpu.memory_space<vmem>>, vector<16x3xbf16>
    tpu.vector_store %arg6[%c96_621, %c0_622], %338 {strides = array<i32>} : memref<256x3xbf16, #tpu.memory_space<vmem>>, vector<16x3xbf16>,
    %c0_623 = arith.constant 0 : index
    %c9_624 = arith.constant 9 : index
    %c0_625 = arith.constant 0 : index
    %c0_626 = arith.constant 0 : index
    %340 = vector.load %arg2[%c0_623, %c9_624, %c0_625, %c0_626] : memref<1x18x18x3xbf16, #tpu.memory_space<vmem>>, vector<1x1x16x3xbf16>
    %341 = vector.shape_cast %340 : vector<1x1x16x3xbf16> to vector<16x3xbf16>
    %c112_627 = arith.constant 112 : index
    %c0_628 = arith.constant 0 : index
    %342 = vector.load %arg6[%c112_627, %c0_628] : memref<256x3xbf16, #tpu.memory_space<vmem>>, vector<16x3xbf16>
    tpu.vector_store %arg6[%c112_627, %c0_628], %341 {strides = array<i32>} : memref<256x3xbf16, #tpu.memory_space<vmem>>, vector<16x3xbf16>,
    %c0_629 = arith.constant 0 : index
    %c10_630 = arith.constant 10 : index
    %c0_631 = arith.constant 0 : index
    %c0_632 = arith.constant 0 : index
    %343 = vector.load %arg2[%c0_629, %c10_630, %c0_631, %c0_632] : memref<1x18x18x3xbf16, #tpu.memory_space<vmem>>, vector<1x1x16x3xbf16>
    %344 = vector.shape_cast %343 : vector<1x1x16x3xbf16> to vector<16x3xbf16>
    %c128_633 = arith.constant 128 : index
    %c0_634 = arith.constant 0 : index
    %345 = vector.load %arg6[%c128_633, %c0_634] : memref<256x3xbf16, #tpu.memory_space<vmem>>, vector<16x3xbf16>
    tpu.vector_store %arg6[%c128_633, %c0_634], %344 {strides = array<i32>} : memref<256x3xbf16, #tpu.memory_space<vmem>>, vector<16x3xbf16>,
    %c0_635 = arith.constant 0 : index
    %c11_636 = arith.constant 11 : index
    %c0_637 = arith.constant 0 : index
    %c0_638 = arith.constant 0 : index
    %346 = vector.load %arg2[%c0_635, %c11_636, %c0_637, %c0_638] : memref<1x18x18x3xbf16, #tpu.memory_space<vmem>>, vector<1x1x16x3xbf16>
    %347 = vector.shape_cast %346 : vector<1x1x16x3xbf16> to vector<16x3xbf16>
    %c144_639 = arith.constant 144 : index
    %c0_640 = arith.constant 0 : index
    %348 = vector.load %arg6[%c144_639, %c0_640] : memref<256x3xbf16, #tpu.memory_space<vmem>>, vector<16x3xbf16>
    tpu.vector_store %arg6[%c144_639, %c0_640], %347 {strides = array<i32>} : memref<256x3xbf16, #tpu.memory_space<vmem>>, vector<16x3xbf16>,
    %c0_641 = arith.constant 0 : index
    %c12_642 = arith.constant 12 : index
    %c0_643 = arith.constant 0 : index
    %c0_644 = arith.constant 0 : index
    %349 = vector.load %arg2[%c0_641, %c12_642, %c0_643, %c0_644] : memref<1x18x18x3xbf16, #tpu.memory_space<vmem>>, vector<1x1x16x3xbf16>
    %350 = vector.shape_cast %349 : vector<1x1x16x3xbf16> to vector<16x3xbf16>
    %c160_645 = arith.constant 160 : index
    %c0_646 = arith.constant 0 : index
    %351 = vector.load %arg6[%c160_645, %c0_646] : memref<256x3xbf16, #tpu.memory_space<vmem>>, vector<16x3xbf16>
    tpu.vector_store %arg6[%c160_645, %c0_646], %350 {strides = array<i32>} : memref<256x3xbf16, #tpu.memory_space<vmem>>, vector<16x3xbf16>,
    %c0_647 = arith.constant 0 : index
    %c13_648 = arith.constant 13 : index
    %c0_649 = arith.constant 0 : index
    %c0_650 = arith.constant 0 : index
    %352 = vector.load %arg2[%c0_647, %c13_648, %c0_649, %c0_650] : memref<1x18x18x3xbf16, #tpu.memory_space<vmem>>, vector<1x1x16x3xbf16>
    %353 = vector.shape_cast %352 : vector<1x1x16x3xbf16> to vector<16x3xbf16>
    %c176_651 = arith.constant 176 : index
    %c0_652 = arith.constant 0 : index
    %354 = vector.load %arg6[%c176_651, %c0_652] : memref<256x3xbf16, #tpu.memory_space<vmem>>, vector<16x3xbf16>
    tpu.vector_store %arg6[%c176_651, %c0_652], %353 {strides = array<i32>} : memref<256x3xbf16, #tpu.memory_space<vmem>>, vector<16x3xbf16>,
    %c0_653 = arith.constant 0 : index
    %c14_654 = arith.constant 14 : index
    %c0_655 = arith.constant 0 : index
    %c0_656 = arith.constant 0 : index
    %355 = vector.load %arg2[%c0_653, %c14_654, %c0_655, %c0_656] : memref<1x18x18x3xbf16, #tpu.memory_space<vmem>>, vector<1x1x16x3xbf16>
    %356 = vector.shape_cast %355 : vector<1x1x16x3xbf16> to vector<16x3xbf16>
    %c192_657 = arith.constant 192 : index
    %c0_658 = arith.constant 0 : index
    %357 = vector.load %arg6[%c192_657, %c0_658] : memref<256x3xbf16, #tpu.memory_space<vmem>>, vector<16x3xbf16>
    tpu.vector_store %arg6[%c192_657, %c0_658], %356 {strides = array<i32>} : memref<256x3xbf16, #tpu.memory_space<vmem>>, vector<16x3xbf16>,
    %c0_659 = arith.constant 0 : index
    %c15_660 = arith.constant 15 : index
    %c0_661 = arith.constant 0 : index
    %c0_662 = arith.constant 0 : index
    %358 = vector.load %arg2[%c0_659, %c15_660, %c0_661, %c0_662] : memref<1x18x18x3xbf16, #tpu.memory_space<vmem>>, vector<1x1x16x3xbf16>
    %359 = vector.shape_cast %358 : vector<1x1x16x3xbf16> to vector<16x3xbf16>
    %c208_663 = arith.constant 208 : index
    %c0_664 = arith.constant 0 : index
    %360 = vector.load %arg6[%c208_663, %c0_664] : memref<256x3xbf16, #tpu.memory_space<vmem>>, vector<16x3xbf16>
    tpu.vector_store %arg6[%c208_663, %c0_664], %359 {strides = array<i32>} : memref<256x3xbf16, #tpu.memory_space<vmem>>, vector<16x3xbf16>,
    %c0_665 = arith.constant 0 : index
    %c16_666 = arith.constant 16 : index
    %c0_667 = arith.constant 0 : index
    %c0_668 = arith.constant 0 : index
    %361 = vector.load %arg2[%c0_665, %c16_666, %c0_667, %c0_668] : memref<1x18x18x3xbf16, #tpu.memory_space<vmem>>, vector<1x1x16x3xbf16>
    %362 = vector.shape_cast %361 : vector<1x1x16x3xbf16> to vector<16x3xbf16>
    %c224_669 = arith.constant 224 : index
    %c0_670 = arith.constant 0 : index
    %363 = vector.load %arg6[%c224_669, %c0_670] : memref<256x3xbf16, #tpu.memory_space<vmem>>, vector<16x3xbf16>
    tpu.vector_store %arg6[%c224_669, %c0_670], %362 {strides = array<i32>} : memref<256x3xbf16, #tpu.memory_space<vmem>>, vector<16x3xbf16>,
    %c0_671 = arith.constant 0 : index
    %c17 = arith.constant 17 : index
    %c0_672 = arith.constant 0 : index
    %c0_673 = arith.constant 0 : index
    %364 = vector.load %arg2[%c0_671, %c17, %c0_672, %c0_673] : memref<1x18x18x3xbf16, #tpu.memory_space<vmem>>, vector<1x1x16x3xbf16>
    %365 = vector.shape_cast %364 : vector<1x1x16x3xbf16> to vector<16x3xbf16>
    %c240_674 = arith.constant 240 : index
    %c0_675 = arith.constant 0 : index
    %366 = vector.load %arg6[%c240_674, %c0_675] : memref<256x3xbf16, #tpu.memory_space<vmem>>, vector<16x3xbf16>
    tpu.vector_store %arg6[%c240_674, %c0_675], %365 {strides = array<i32>} : memref<256x3xbf16, #tpu.memory_space<vmem>>, vector<16x3xbf16>,
    %c0_676 = arith.constant 0 : index
    %c0_677 = arith.constant 0 : index
    %367 = vector.load %arg6[%c0_676, %c0_677] : memref<256x3xbf16, #tpu.memory_space<vmem>>, vector<256x3xbf16>
    %c6_678 = arith.constant 6 : index
    %c0_679 = arith.constant 0 : index
    %c0_680 = arith.constant 0 : index
    %368 = vector.load %arg3[%c6_678, %c0_679, %c0_680] : memref<9x3x32xbf16, #tpu.memory_space<vmem>>, vector<1x3x32xbf16>
    %369 = vector.shape_cast %368 : vector<1x3x32xbf16> to vector<3x32xbf16>
    %cst_681 = arith.constant dense<0.000000e+00> : vector<256x32xf32>
    %370 = tpu.matmul %367, %369, %cst_681 {dimension_numbers = #tpu.dot_dimension_numbers<[1], [0], [0], [1], [0, 0, 1, 1], [], []>} : vector<256x3xbf16>, vector<3x32xbf16>, vector<256x32xf32> -> vector<256x32xf32>
    %371 = arith.addf %318, %370 : vector<256x32xf32>
    %c0_682 = arith.constant 0 : index
    %c2_683 = arith.constant 2 : index
    %c1_684 = arith.constant 1 : index
    %c0_685 = arith.constant 0 : index
    %372 = vector.load %arg2[%c0_682, %c2_683, %c1_684, %c0_685] : memref<1x18x18x3xbf16, #tpu.memory_space<vmem>>, vector<1x1x16x3xbf16>
    %373 = vector.shape_cast %372 : vector<1x1x16x3xbf16> to vector<16x3xbf16>
    %c0_686 = arith.constant 0 : index
    %c0_687 = arith.constant 0 : index
    %374 = vector.load %arg6[%c0_686, %c0_687] : memref<256x3xbf16, #tpu.memory_space<vmem>>, vector<16x3xbf16>
    tpu.vector_store %arg6[%c0_686, %c0_687], %373 {strides = array<i32>} : memref<256x3xbf16, #tpu.memory_space<vmem>>, vector<16x3xbf16>,
    %c0_688 = arith.constant 0 : index
    %c3_689 = arith.constant 3 : index
    %c1_690 = arith.constant 1 : index
    %c0_691 = arith.constant 0 : index
    %375 = vector.load %arg2[%c0_688, %c3_689, %c1_690, %c0_691] : memref<1x18x18x3xbf16, #tpu.memory_space<vmem>>, vector<1x1x16x3xbf16>
    %376 = vector.shape_cast %375 : vector<1x1x16x3xbf16> to vector<16x3xbf16>
    %c16_692 = arith.constant 16 : index
    %c0_693 = arith.constant 0 : index
    %377 = vector.load %arg6[%c16_692, %c0_693] : memref<256x3xbf16, #tpu.memory_space<vmem>>, vector<16x3xbf16>
    tpu.vector_store %arg6[%c16_692, %c0_693], %376 {strides = array<i32>} : memref<256x3xbf16, #tpu.memory_space<vmem>>, vector<16x3xbf16>,
    %c0_694 = arith.constant 0 : index
    %c4_695 = arith.constant 4 : index
    %c1_696 = arith.constant 1 : index
    %c0_697 = arith.constant 0 : index
    %378 = vector.load %arg2[%c0_694, %c4_695, %c1_696, %c0_697] : memref<1x18x18x3xbf16, #tpu.memory_space<vmem>>, vector<1x1x16x3xbf16>
    %379 = vector.shape_cast %378 : vector<1x1x16x3xbf16> to vector<16x3xbf16>
    %c32_698 = arith.constant 32 : index
    %c0_699 = arith.constant 0 : index
    %380 = vector.load %arg6[%c32_698, %c0_699] : memref<256x3xbf16, #tpu.memory_space<vmem>>, vector<16x3xbf16>
    tpu.vector_store %arg6[%c32_698, %c0_699], %379 {strides = array<i32>} : memref<256x3xbf16, #tpu.memory_space<vmem>>, vector<16x3xbf16>,
    %c0_700 = arith.constant 0 : index
    %c5_701 = arith.constant 5 : index
    %c1_702 = arith.constant 1 : index
    %c0_703 = arith.constant 0 : index
    %381 = vector.load %arg2[%c0_700, %c5_701, %c1_702, %c0_703] : memref<1x18x18x3xbf16, #tpu.memory_space<vmem>>, vector<1x1x16x3xbf16>
    %382 = vector.shape_cast %381 : vector<1x1x16x3xbf16> to vector<16x3xbf16>
    %c48_704 = arith.constant 48 : index
    %c0_705 = arith.constant 0 : index
    %383 = vector.load %arg6[%c48_704, %c0_705] : memref<256x3xbf16, #tpu.memory_space<vmem>>, vector<16x3xbf16>
    tpu.vector_store %arg6[%c48_704, %c0_705], %382 {strides = array<i32>} : memref<256x3xbf16, #tpu.memory_space<vmem>>, vector<16x3xbf16>,
    %c0_706 = arith.constant 0 : index
    %c6_707 = arith.constant 6 : index
    %c1_708 = arith.constant 1 : index
    %c0_709 = arith.constant 0 : index
    %384 = vector.load %arg2[%c0_706, %c6_707, %c1_708, %c0_709] : memref<1x18x18x3xbf16, #tpu.memory_space<vmem>>, vector<1x1x16x3xbf16>
    %385 = vector.shape_cast %384 : vector<1x1x16x3xbf16> to vector<16x3xbf16>
    %c64_710 = arith.constant 64 : index
    %c0_711 = arith.constant 0 : index
    %386 = vector.load %arg6[%c64_710, %c0_711] : memref<256x3xbf16, #tpu.memory_space<vmem>>, vector<16x3xbf16>
    tpu.vector_store %arg6[%c64_710, %c0_711], %385 {strides = array<i32>} : memref<256x3xbf16, #tpu.memory_space<vmem>>, vector<16x3xbf16>,
    %c0_712 = arith.constant 0 : index
    %c7_713 = arith.constant 7 : index
    %c1_714 = arith.constant 1 : index
    %c0_715 = arith.constant 0 : index
    %387 = vector.load %arg2[%c0_712, %c7_713, %c1_714, %c0_715] : memref<1x18x18x3xbf16, #tpu.memory_space<vmem>>, vector<1x1x16x3xbf16>
    %388 = vector.shape_cast %387 : vector<1x1x16x3xbf16> to vector<16x3xbf16>
    %c80_716 = arith.constant 80 : index
    %c0_717 = arith.constant 0 : index
    %389 = vector.load %arg6[%c80_716, %c0_717] : memref<256x3xbf16, #tpu.memory_space<vmem>>, vector<16x3xbf16>
    tpu.vector_store %arg6[%c80_716, %c0_717], %388 {strides = array<i32>} : memref<256x3xbf16, #tpu.memory_space<vmem>>, vector<16x3xbf16>,
    %c0_718 = arith.constant 0 : index
    %c8_719 = arith.constant 8 : index
    %c1_720 = arith.constant 1 : index
    %c0_721 = arith.constant 0 : index
    %390 = vector.load %arg2[%c0_718, %c8_719, %c1_720, %c0_721] : memref<1x18x18x3xbf16, #tpu.memory_space<vmem>>, vector<1x1x16x3xbf16>
    %391 = vector.shape_cast %390 : vector<1x1x16x3xbf16> to vector<16x3xbf16>
    %c96_722 = arith.constant 96 : index
    %c0_723 = arith.constant 0 : index
    %392 = vector.load %arg6[%c96_722, %c0_723] : memref<256x3xbf16, #tpu.memory_space<vmem>>, vector<16x3xbf16>
    tpu.vector_store %arg6[%c96_722, %c0_723], %391 {strides = array<i32>} : memref<256x3xbf16, #tpu.memory_space<vmem>>, vector<16x3xbf16>,
    %c0_724 = arith.constant 0 : index
    %c9_725 = arith.constant 9 : index
    %c1_726 = arith.constant 1 : index
    %c0_727 = arith.constant 0 : index
    %393 = vector.load %arg2[%c0_724, %c9_725, %c1_726, %c0_727] : memref<1x18x18x3xbf16, #tpu.memory_space<vmem>>, vector<1x1x16x3xbf16>
    %394 = vector.shape_cast %393 : vector<1x1x16x3xbf16> to vector<16x3xbf16>
    %c112_728 = arith.constant 112 : index
    %c0_729 = arith.constant 0 : index
    %395 = vector.load %arg6[%c112_728, %c0_729] : memref<256x3xbf16, #tpu.memory_space<vmem>>, vector<16x3xbf16>
    tpu.vector_store %arg6[%c112_728, %c0_729], %394 {strides = array<i32>} : memref<256x3xbf16, #tpu.memory_space<vmem>>, vector<16x3xbf16>,
    %c0_730 = arith.constant 0 : index
    %c10_731 = arith.constant 10 : index
    %c1_732 = arith.constant 1 : index
    %c0_733 = arith.constant 0 : index
    %396 = vector.load %arg2[%c0_730, %c10_731, %c1_732, %c0_733] : memref<1x18x18x3xbf16, #tpu.memory_space<vmem>>, vector<1x1x16x3xbf16>
    %397 = vector.shape_cast %396 : vector<1x1x16x3xbf16> to vector<16x3xbf16>
    %c128_734 = arith.constant 128 : index
    %c0_735 = arith.constant 0 : index
    %398 = vector.load %arg6[%c128_734, %c0_735] : memref<256x3xbf16, #tpu.memory_space<vmem>>, vector<16x3xbf16>
    tpu.vector_store %arg6[%c128_734, %c0_735], %397 {strides = array<i32>} : memref<256x3xbf16, #tpu.memory_space<vmem>>, vector<16x3xbf16>,
    %c0_736 = arith.constant 0 : index
    %c11_737 = arith.constant 11 : index
    %c1_738 = arith.constant 1 : index
    %c0_739 = arith.constant 0 : index
    %399 = vector.load %arg2[%c0_736, %c11_737, %c1_738, %c0_739] : memref<1x18x18x3xbf16, #tpu.memory_space<vmem>>, vector<1x1x16x3xbf16>
    %400 = vector.shape_cast %399 : vector<1x1x16x3xbf16> to vector<16x3xbf16>
    %c144_740 = arith.constant 144 : index
    %c0_741 = arith.constant 0 : index
    %401 = vector.load %arg6[%c144_740, %c0_741] : memref<256x3xbf16, #tpu.memory_space<vmem>>, vector<16x3xbf16>
    tpu.vector_store %arg6[%c144_740, %c0_741], %400 {strides = array<i32>} : memref<256x3xbf16, #tpu.memory_space<vmem>>, vector<16x3xbf16>,
    %c0_742 = arith.constant 0 : index
    %c12_743 = arith.constant 12 : index
    %c1_744 = arith.constant 1 : index
    %c0_745 = arith.constant 0 : index
    %402 = vector.load %arg2[%c0_742, %c12_743, %c1_744, %c0_745] : memref<1x18x18x3xbf16, #tpu.memory_space<vmem>>, vector<1x1x16x3xbf16>
    %403 = vector.shape_cast %402 : vector<1x1x16x3xbf16> to vector<16x3xbf16>
    %c160_746 = arith.constant 160 : index
    %c0_747 = arith.constant 0 : index
    %404 = vector.load %arg6[%c160_746, %c0_747] : memref<256x3xbf16, #tpu.memory_space<vmem>>, vector<16x3xbf16>
    tpu.vector_store %arg6[%c160_746, %c0_747], %403 {strides = array<i32>} : memref<256x3xbf16, #tpu.memory_space<vmem>>, vector<16x3xbf16>,
    %c0_748 = arith.constant 0 : index
    %c13_749 = arith.constant 13 : index
    %c1_750 = arith.constant 1 : index
    %c0_751 = arith.constant 0 : index
    %405 = vector.load %arg2[%c0_748, %c13_749, %c1_750, %c0_751] : memref<1x18x18x3xbf16, #tpu.memory_space<vmem>>, vector<1x1x16x3xbf16>
    %406 = vector.shape_cast %405 : vector<1x1x16x3xbf16> to vector<16x3xbf16>
    %c176_752 = arith.constant 176 : index
    %c0_753 = arith.constant 0 : index
    %407 = vector.load %arg6[%c176_752, %c0_753] : memref<256x3xbf16, #tpu.memory_space<vmem>>, vector<16x3xbf16>
    tpu.vector_store %arg6[%c176_752, %c0_753], %406 {strides = array<i32>} : memref<256x3xbf16, #tpu.memory_space<vmem>>, vector<16x3xbf16>,
    %c0_754 = arith.constant 0 : index
    %c14_755 = arith.constant 14 : index
    %c1_756 = arith.constant 1 : index
    %c0_757 = arith.constant 0 : index
    %408 = vector.load %arg2[%c0_754, %c14_755, %c1_756, %c0_757] : memref<1x18x18x3xbf16, #tpu.memory_space<vmem>>, vector<1x1x16x3xbf16>
    %409 = vector.shape_cast %408 : vector<1x1x16x3xbf16> to vector<16x3xbf16>
    %c192_758 = arith.constant 192 : index
    %c0_759 = arith.constant 0 : index
    %410 = vector.load %arg6[%c192_758, %c0_759] : memref<256x3xbf16, #tpu.memory_space<vmem>>, vector<16x3xbf16>
    tpu.vector_store %arg6[%c192_758, %c0_759], %409 {strides = array<i32>} : memref<256x3xbf16, #tpu.memory_space<vmem>>, vector<16x3xbf16>,
    %c0_760 = arith.constant 0 : index
    %c15_761 = arith.constant 15 : index
    %c1_762 = arith.constant 1 : index
    %c0_763 = arith.constant 0 : index
    %411 = vector.load %arg2[%c0_760, %c15_761, %c1_762, %c0_763] : memref<1x18x18x3xbf16, #tpu.memory_space<vmem>>, vector<1x1x16x3xbf16>
    %412 = vector.shape_cast %411 : vector<1x1x16x3xbf16> to vector<16x3xbf16>
    %c208_764 = arith.constant 208 : index
    %c0_765 = arith.constant 0 : index
    %413 = vector.load %arg6[%c208_764, %c0_765] : memref<256x3xbf16, #tpu.memory_space<vmem>>, vector<16x3xbf16>
    tpu.vector_store %arg6[%c208_764, %c0_765], %412 {strides = array<i32>} : memref<256x3xbf16, #tpu.memory_space<vmem>>, vector<16x3xbf16>,
    %c0_766 = arith.constant 0 : index
    %c16_767 = arith.constant 16 : index
    %c1_768 = arith.constant 1 : index
    %c0_769 = arith.constant 0 : index
    %414 = vector.load %arg2[%c0_766, %c16_767, %c1_768, %c0_769] : memref<1x18x18x3xbf16, #tpu.memory_space<vmem>>, vector<1x1x16x3xbf16>
    %415 = vector.shape_cast %414 : vector<1x1x16x3xbf16> to vector<16x3xbf16>
    %c224_770 = arith.constant 224 : index
    %c0_771 = arith.constant 0 : index
    %416 = vector.load %arg6[%c224_770, %c0_771] : memref<256x3xbf16, #tpu.memory_space<vmem>>, vector<16x3xbf16>
    tpu.vector_store %arg6[%c224_770, %c0_771], %415 {strides = array<i32>} : memref<256x3xbf16, #tpu.memory_space<vmem>>, vector<16x3xbf16>,
    %c0_772 = arith.constant 0 : index
    %c17_773 = arith.constant 17 : index
    %c1_774 = arith.constant 1 : index
    %c0_775 = arith.constant 0 : index
    %417 = vector.load %arg2[%c0_772, %c17_773, %c1_774, %c0_775] : memref<1x18x18x3xbf16, #tpu.memory_space<vmem>>, vector<1x1x16x3xbf16>
    %418 = vector.shape_cast %417 : vector<1x1x16x3xbf16> to vector<16x3xbf16>
    %c240_776 = arith.constant 240 : index
    %c0_777 = arith.constant 0 : index
    %419 = vector.load %arg6[%c240_776, %c0_777] : memref<256x3xbf16, #tpu.memory_space<vmem>>, vector<16x3xbf16>
    tpu.vector_store %arg6[%c240_776, %c0_777], %418 {strides = array<i32>} : memref<256x3xbf16, #tpu.memory_space<vmem>>, vector<16x3xbf16>,
    %c0_778 = arith.constant 0 : index
    %c0_779 = arith.constant 0 : index
    %420 = vector.load %arg6[%c0_778, %c0_779] : memref<256x3xbf16, #tpu.memory_space<vmem>>, vector<256x3xbf16>
    %c7_780 = arith.constant 7 : index
    %c0_781 = arith.constant 0 : index
    %c0_782 = arith.constant 0 : index
    %421 = vector.load %arg3[%c7_780, %c0_781, %c0_782] : memref<9x3x32xbf16, #tpu.memory_space<vmem>>, vector<1x3x32xbf16>
    %422 = vector.shape_cast %421 : vector<1x3x32xbf16> to vector<3x32xbf16>
    %cst_783 = arith.constant dense<0.000000e+00> : vector<256x32xf32>
    %423 = tpu.matmul %420, %422, %cst_783 {dimension_numbers = #tpu.dot_dimension_numbers<[1], [0], [0], [1], [0, 0, 1, 1], [], []>} : vector<256x3xbf16>, vector<3x32xbf16>, vector<256x32xf32> -> vector<256x32xf32>
    %424 = arith.addf %371, %423 : vector<256x32xf32>
    %c0_784 = arith.constant 0 : index
    %c2_785 = arith.constant 2 : index
    %c2_786 = arith.constant 2 : index
    %c0_787 = arith.constant 0 : index
    %425 = vector.load %arg2[%c0_784, %c2_785, %c2_786, %c0_787] : memref<1x18x18x3xbf16, #tpu.memory_space<vmem>>, vector<1x1x16x3xbf16>
    %426 = vector.shape_cast %425 : vector<1x1x16x3xbf16> to vector<16x3xbf16>
    %c0_788 = arith.constant 0 : index
    %c0_789 = arith.constant 0 : index
    %427 = vector.load %arg6[%c0_788, %c0_789] : memref<256x3xbf16, #tpu.memory_space<vmem>>, vector<16x3xbf16>
    tpu.vector_store %arg6[%c0_788, %c0_789], %426 {strides = array<i32>} : memref<256x3xbf16, #tpu.memory_space<vmem>>, vector<16x3xbf16>,
    %c0_790 = arith.constant 0 : index
    %c3_791 = arith.constant 3 : index
    %c2_792 = arith.constant 2 : index
    %c0_793 = arith.constant 0 : index
    %428 = vector.load %arg2[%c0_790, %c3_791, %c2_792, %c0_793] : memref<1x18x18x3xbf16, #tpu.memory_space<vmem>>, vector<1x1x16x3xbf16>
    %429 = vector.shape_cast %428 : vector<1x1x16x3xbf16> to vector<16x3xbf16>
    %c16_794 = arith.constant 16 : index
    %c0_795 = arith.constant 0 : index
    %430 = vector.load %arg6[%c16_794, %c0_795] : memref<256x3xbf16, #tpu.memory_space<vmem>>, vector<16x3xbf16>
    tpu.vector_store %arg6[%c16_794, %c0_795], %429 {strides = array<i32>} : memref<256x3xbf16, #tpu.memory_space<vmem>>, vector<16x3xbf16>,
    %c0_796 = arith.constant 0 : index
    %c4_797 = arith.constant 4 : index
    %c2_798 = arith.constant 2 : index
    %c0_799 = arith.constant 0 : index
    %431 = vector.load %arg2[%c0_796, %c4_797, %c2_798, %c0_799] : memref<1x18x18x3xbf16, #tpu.memory_space<vmem>>, vector<1x1x16x3xbf16>
    %432 = vector.shape_cast %431 : vector<1x1x16x3xbf16> to vector<16x3xbf16>
    %c32_800 = arith.constant 32 : index
    %c0_801 = arith.constant 0 : index
    %433 = vector.load %arg6[%c32_800, %c0_801] : memref<256x3xbf16, #tpu.memory_space<vmem>>, vector<16x3xbf16>
    tpu.vector_store %arg6[%c32_800, %c0_801], %432 {strides = array<i32>} : memref<256x3xbf16, #tpu.memory_space<vmem>>, vector<16x3xbf16>,
    %c0_802 = arith.constant 0 : index
    %c5_803 = arith.constant 5 : index
    %c2_804 = arith.constant 2 : index
    %c0_805 = arith.constant 0 : index
    %434 = vector.load %arg2[%c0_802, %c5_803, %c2_804, %c0_805] : memref<1x18x18x3xbf16, #tpu.memory_space<vmem>>, vector<1x1x16x3xbf16>
    %435 = vector.shape_cast %434 : vector<1x1x16x3xbf16> to vector<16x3xbf16>
    %c48_806 = arith.constant 48 : index
    %c0_807 = arith.constant 0 : index
    %436 = vector.load %arg6[%c48_806, %c0_807] : memref<256x3xbf16, #tpu.memory_space<vmem>>, vector<16x3xbf16>
    tpu.vector_store %arg6[%c48_806, %c0_807], %435 {strides = array<i32>} : memref<256x3xbf16, #tpu.memory_space<vmem>>, vector<16x3xbf16>,
    %c0_808 = arith.constant 0 : index
    %c6_809 = arith.constant 6 : index
    %c2_810 = arith.constant 2 : index
    %c0_811 = arith.constant 0 : index
    %437 = vector.load %arg2[%c0_808, %c6_809, %c2_810, %c0_811] : memref<1x18x18x3xbf16, #tpu.memory_space<vmem>>, vector<1x1x16x3xbf16>
    %438 = vector.shape_cast %437 : vector<1x1x16x3xbf16> to vector<16x3xbf16>
    %c64_812 = arith.constant 64 : index
    %c0_813 = arith.constant 0 : index
    %439 = vector.load %arg6[%c64_812, %c0_813] : memref<256x3xbf16, #tpu.memory_space<vmem>>, vector<16x3xbf16>
    tpu.vector_store %arg6[%c64_812, %c0_813], %438 {strides = array<i32>} : memref<256x3xbf16, #tpu.memory_space<vmem>>, vector<16x3xbf16>,
    %c0_814 = arith.constant 0 : index
    %c7_815 = arith.constant 7 : index
    %c2_816 = arith.constant 2 : index
    %c0_817 = arith.constant 0 : index
    %440 = vector.load %arg2[%c0_814, %c7_815, %c2_816, %c0_817] : memref<1x18x18x3xbf16, #tpu.memory_space<vmem>>, vector<1x1x16x3xbf16>
    %441 = vector.shape_cast %440 : vector<1x1x16x3xbf16> to vector<16x3xbf16>
    %c80_818 = arith.constant 80 : index
    %c0_819 = arith.constant 0 : index
    %442 = vector.load %arg6[%c80_818, %c0_819] : memref<256x3xbf16, #tpu.memory_space<vmem>>, vector<16x3xbf16>
    tpu.vector_store %arg6[%c80_818, %c0_819], %441 {strides = array<i32>} : memref<256x3xbf16, #tpu.memory_space<vmem>>, vector<16x3xbf16>,
    %c0_820 = arith.constant 0 : index
    %c8_821 = arith.constant 8 : index
    %c2_822 = arith.constant 2 : index
    %c0_823 = arith.constant 0 : index
    %443 = vector.load %arg2[%c0_820, %c8_821, %c2_822, %c0_823] : memref<1x18x18x3xbf16, #tpu.memory_space<vmem>>, vector<1x1x16x3xbf16>
    %444 = vector.shape_cast %443 : vector<1x1x16x3xbf16> to vector<16x3xbf16>
    %c96_824 = arith.constant 96 : index
    %c0_825 = arith.constant 0 : index
    %445 = vector.load %arg6[%c96_824, %c0_825] : memref<256x3xbf16, #tpu.memory_space<vmem>>, vector<16x3xbf16>
    tpu.vector_store %arg6[%c96_824, %c0_825], %444 {strides = array<i32>} : memref<256x3xbf16, #tpu.memory_space<vmem>>, vector<16x3xbf16>,
    %c0_826 = arith.constant 0 : index
    %c9_827 = arith.constant 9 : index
    %c2_828 = arith.constant 2 : index
    %c0_829 = arith.constant 0 : index
    %446 = vector.load %arg2[%c0_826, %c9_827, %c2_828, %c0_829] : memref<1x18x18x3xbf16, #tpu.memory_space<vmem>>, vector<1x1x16x3xbf16>
    %447 = vector.shape_cast %446 : vector<1x1x16x3xbf16> to vector<16x3xbf16>
    %c112_830 = arith.constant 112 : index
    %c0_831 = arith.constant 0 : index
    %448 = vector.load %arg6[%c112_830, %c0_831] : memref<256x3xbf16, #tpu.memory_space<vmem>>, vector<16x3xbf16>
    tpu.vector_store %arg6[%c112_830, %c0_831], %447 {strides = array<i32>} : memref<256x3xbf16, #tpu.memory_space<vmem>>, vector<16x3xbf16>,
    %c0_832 = arith.constant 0 : index
    %c10_833 = arith.constant 10 : index
    %c2_834 = arith.constant 2 : index
    %c0_835 = arith.constant 0 : index
    %449 = vector.load %arg2[%c0_832, %c10_833, %c2_834, %c0_835] : memref<1x18x18x3xbf16, #tpu.memory_space<vmem>>, vector<1x1x16x3xbf16>
    %450 = vector.shape_cast %449 : vector<1x1x16x3xbf16> to vector<16x3xbf16>
    %c128_836 = arith.constant 128 : index
    %c0_837 = arith.constant 0 : index
    %451 = vector.load %arg6[%c128_836, %c0_837] : memref<256x3xbf16, #tpu.memory_space<vmem>>, vector<16x3xbf16>
    tpu.vector_store %arg6[%c128_836, %c0_837], %450 {strides = array<i32>} : memref<256x3xbf16, #tpu.memory_space<vmem>>, vector<16x3xbf16>,
    %c0_838 = arith.constant 0 : index
    %c11_839 = arith.constant 11 : index
    %c2_840 = arith.constant 2 : index
    %c0_841 = arith.constant 0 : index
    %452 = vector.load %arg2[%c0_838, %c11_839, %c2_840, %c0_841] : memref<1x18x18x3xbf16, #tpu.memory_space<vmem>>, vector<1x1x16x3xbf16>
    %453 = vector.shape_cast %452 : vector<1x1x16x3xbf16> to vector<16x3xbf16>
    %c144_842 = arith.constant 144 : index
    %c0_843 = arith.constant 0 : index
    %454 = vector.load %arg6[%c144_842, %c0_843] : memref<256x3xbf16, #tpu.memory_space<vmem>>, vector<16x3xbf16>
    tpu.vector_store %arg6[%c144_842, %c0_843], %453 {strides = array<i32>} : memref<256x3xbf16, #tpu.memory_space<vmem>>, vector<16x3xbf16>,
    %c0_844 = arith.constant 0 : index
    %c12_845 = arith.constant 12 : index
    %c2_846 = arith.constant 2 : index
    %c0_847 = arith.constant 0 : index
    %455 = vector.load %arg2[%c0_844, %c12_845, %c2_846, %c0_847] : memref<1x18x18x3xbf16, #tpu.memory_space<vmem>>, vector<1x1x16x3xbf16>
    %456 = vector.shape_cast %455 : vector<1x1x16x3xbf16> to vector<16x3xbf16>
    %c160_848 = arith.constant 160 : index
    %c0_849 = arith.constant 0 : index
    %457 = vector.load %arg6[%c160_848, %c0_849] : memref<256x3xbf16, #tpu.memory_space<vmem>>, vector<16x3xbf16>
    tpu.vector_store %arg6[%c160_848, %c0_849], %456 {strides = array<i32>} : memref<256x3xbf16, #tpu.memory_space<vmem>>, vector<16x3xbf16>,
    %c0_850 = arith.constant 0 : index
    %c13_851 = arith.constant 13 : index
    %c2_852 = arith.constant 2 : index
    %c0_853 = arith.constant 0 : index
    %458 = vector.load %arg2[%c0_850, %c13_851, %c2_852, %c0_853] : memref<1x18x18x3xbf16, #tpu.memory_space<vmem>>, vector<1x1x16x3xbf16>
    %459 = vector.shape_cast %458 : vector<1x1x16x3xbf16> to vector<16x3xbf16>
    %c176_854 = arith.constant 176 : index
    %c0_855 = arith.constant 0 : index
    %460 = vector.load %arg6[%c176_854, %c0_855] : memref<256x3xbf16, #tpu.memory_space<vmem>>, vector<16x3xbf16>
    tpu.vector_store %arg6[%c176_854, %c0_855], %459 {strides = array<i32>} : memref<256x3xbf16, #tpu.memory_space<vmem>>, vector<16x3xbf16>,
    %c0_856 = arith.constant 0 : index
    %c14_857 = arith.constant 14 : index
    %c2_858 = arith.constant 2 : index
    %c0_859 = arith.constant 0 : index
    %461 = vector.load %arg2[%c0_856, %c14_857, %c2_858, %c0_859] : memref<1x18x18x3xbf16, #tpu.memory_space<vmem>>, vector<1x1x16x3xbf16>
    %462 = vector.shape_cast %461 : vector<1x1x16x3xbf16> to vector<16x3xbf16>
    %c192_860 = arith.constant 192 : index
    %c0_861 = arith.constant 0 : index
    %463 = vector.load %arg6[%c192_860, %c0_861] : memref<256x3xbf16, #tpu.memory_space<vmem>>, vector<16x3xbf16>
    tpu.vector_store %arg6[%c192_860, %c0_861], %462 {strides = array<i32>} : memref<256x3xbf16, #tpu.memory_space<vmem>>, vector<16x3xbf16>,
    %c0_862 = arith.constant 0 : index
    %c15_863 = arith.constant 15 : index
    %c2_864 = arith.constant 2 : index
    %c0_865 = arith.constant 0 : index
    %464 = vector.load %arg2[%c0_862, %c15_863, %c2_864, %c0_865] : memref<1x18x18x3xbf16, #tpu.memory_space<vmem>>, vector<1x1x16x3xbf16>
    %465 = vector.shape_cast %464 : vector<1x1x16x3xbf16> to vector<16x3xbf16>
    %c208_866 = arith.constant 208 : index
    %c0_867 = arith.constant 0 : index
    %466 = vector.load %arg6[%c208_866, %c0_867] : memref<256x3xbf16, #tpu.memory_space<vmem>>, vector<16x3xbf16>
    tpu.vector_store %arg6[%c208_866, %c0_867], %465 {strides = array<i32>} : memref<256x3xbf16, #tpu.memory_space<vmem>>, vector<16x3xbf16>,
    %c0_868 = arith.constant 0 : index
    %c16_869 = arith.constant 16 : index
    %c2_870 = arith.constant 2 : index
    %c0_871 = arith.constant 0 : index
    %467 = vector.load %arg2[%c0_868, %c16_869, %c2_870, %c0_871] : memref<1x18x18x3xbf16, #tpu.memory_space<vmem>>, vector<1x1x16x3xbf16>
    %468 = vector.shape_cast %467 : vector<1x1x16x3xbf16> to vector<16x3xbf16>
    %c224_872 = arith.constant 224 : index
    %c0_873 = arith.constant 0 : index
    %469 = vector.load %arg6[%c224_872, %c0_873] : memref<256x3xbf16, #tpu.memory_space<vmem>>, vector<16x3xbf16>
    tpu.vector_store %arg6[%c224_872, %c0_873], %468 {strides = array<i32>} : memref<256x3xbf16, #tpu.memory_space<vmem>>, vector<16x3xbf16>,
    %c0_874 = arith.constant 0 : index
    %c17_875 = arith.constant 17 : index
    %c2_876 = arith.constant 2 : index
    %c0_877 = arith.constant 0 : index
    %470 = vector.load %arg2[%c0_874, %c17_875, %c2_876, %c0_877] : memref<1x18x18x3xbf16, #tpu.memory_space<vmem>>, vector<1x1x16x3xbf16>
    %471 = vector.shape_cast %470 : vector<1x1x16x3xbf16> to vector<16x3xbf16>
    %c240_878 = arith.constant 240 : index
    %c0_879 = arith.constant 0 : index
    %472 = vector.load %arg6[%c240_878, %c0_879] : memref<256x3xbf16, #tpu.memory_space<vmem>>, vector<16x3xbf16>
    tpu.vector_store %arg6[%c240_878, %c0_879], %471 {strides = array<i32>} : memref<256x3xbf16, #tpu.memory_space<vmem>>, vector<16x3xbf16>,
    %c0_880 = arith.constant 0 : index
    %c0_881 = arith.constant 0 : index
    %473 = vector.load %arg6[%c0_880, %c0_881] : memref<256x3xbf16, #tpu.memory_space<vmem>>, vector<256x3xbf16>
    %c8_882 = arith.constant 8 : index
    %c0_883 = arith.constant 0 : index
    %c0_884 = arith.constant 0 : index
    %474 = vector.load %arg3[%c8_882, %c0_883, %c0_884] : memref<9x3x32xbf16, #tpu.memory_space<vmem>>, vector<1x3x32xbf16>
    %475 = vector.shape_cast %474 : vector<1x3x32xbf16> to vector<3x32xbf16>
    %cst_885 = arith.constant dense<0.000000e+00> : vector<256x32xf32>
    %476 = tpu.matmul %473, %475, %cst_885 {dimension_numbers = #tpu.dot_dimension_numbers<[1], [0], [0], [1], [0, 0, 1, 1], [], []>} : vector<256x3xbf16>, vector<3x32xbf16>, vector<256x32xf32> -> vector<256x32xf32>
    %477 = arith.addf %424, %476 : vector<256x32xf32>
    %478 = arith.truncf %477 : vector<256x32xf32> to vector<256x32xbf16>
    %c0_886 = arith.constant 0 : index
    %c0_887 = arith.constant 0 : index
    %c0_888 = arith.constant 0 : index
    %479 = vector.load %arg4[%c0_886, %c0_887, %c0_888] : memref<1x256x32xbf16, #tpu.memory_space<vmem>>, vector<1x256x32xbf16>
    %480 = vector.shape_cast %479 : vector<1x256x32xbf16> to vector<256x32xbf16>
    %481 = vector.shape_cast %478 : vector<256x32xbf16> to vector<1x256x32xbf16>
    tpu.vector_store %arg4[%c0_886, %c0_887, %c0_888], %481 {strides = array<i32>} : memref<1x256x32xbf16, #tpu.memory_space<vmem>>, vector<1x256x32xbf16>,
    %482 = arith.extf %478 : vector<256x32xbf16> to vector<256x32xf32>
    %cst_889 = arith.constant dense<0.000000e+00> : vector<32xf32>
    %483 = vector.multi_reduction <add>, %482, %cst_889 [0] : vector<256x32xf32> to vector<32xf32>
    %484 = vector.shape_cast %483 : vector<32xf32> to vector<1x32xf32>
    %485 = arith.mulf %482, %482 : vector<256x32xf32>
    %cst_890 = arith.constant dense<0.000000e+00> : vector<32xf32>
    %486 = vector.multi_reduction <add>, %485, %cst_890 [0] : vector<256x32xf32> to vector<32xf32>
    %487 = vector.shape_cast %486 : vector<32xf32> to vector<1x32xf32>
    %488 = tpu.concatenate %484, %487 in 0 : vector<1x32xf32>, vector<1x32xf32> -> vector<2x32xf32>
    %c0_891 = arith.constant 0 : index
    %c0_892 = arith.constant 0 : index
    %c0_893 = arith.constant 0 : index
    %489 = vector.load %arg5[%c0_891, %c0_892, %c0_893] : memref<1x2x32xf32, #tpu.memory_space<vmem>>, vector<1x2x32xf32>
    %490 = vector.shape_cast %489 : vector<1x2x32xf32> to vector<2x32xf32>
    %491 = vector.shape_cast %488 : vector<2x32xf32> to vector<1x2x32xf32>
    tpu.vector_store %arg5[%c0_891, %c0_892, %c0_893], %491 {strides = array<i32>} : memref<1x2x32xf32, #tpu.memory_space<vmem>>, vector<1x2x32xf32>,
    return
  }
  func.func @transform_0(%arg0: i32, %arg1: i32) -> (i32, i32, i32, i32) {
    %c0_i32 = arith.constant 0 : i32
    %c0_i32_0 = arith.constant 0 : i32
    %c0_i32_1 = arith.constant 0 : i32
    %c0_i32_2 = arith.constant 0 : i32
    return %arg0, %c0_i32, %c0_i32_0, %c0_i32_1 : i32, i32, i32, i32
  }
  func.func @transform_1(%arg0: i32, %arg1: i32) -> (i32, i32, i32) {
    %c0_i32 = arith.constant 0 : i32
    %c0_i32_0 = arith.constant 0 : i32
    %c0_i32_1 = arith.constant 0 : i32
    return %c0_i32, %c0_i32_0, %arg1 : i32, i32, i32
  }
  func.func @transform_2(%arg0: i32, %arg1: i32) -> (i32, i32, i32) {
    %c0_i32 = arith.constant 0 : i32
    %c0_i32_0 = arith.constant 0 : i32
    return %arg0, %c0_i32, %arg1 : i32, i32, i32
  }
  func.func @transform_3(%arg0: i32, %arg1: i32) -> (i32, i32, i32) {
    %c0_i32 = arith.constant 0 : i32
    %c0_i32_0 = arith.constant 0 : i32
    return %arg0, %c0_i32, %arg1 : i32, i32, i32
  }
}

</mosaic_0001>

<bundles_post_ra>
// kernel: tpu_custom_call.1
= control target key start
LH: loop header
LB: loop body
LE: loop exit
PB: predicated region body
PF: predicated region fallthrough
CT: control target
= control target key end

     0   :  { %9 = vsyncpa [#allocation4], 0  ;;  %s8675_s0 = inlined_call_operand.vmem [shape: bf16[2,18,18,3], index: 0, kind: input, shape index: {}]   ;;  %s8676_s1 = inlined_call_operand.vmem [shape: bf16[9,3,32], index: 1, kind: input, shape index: {}]   ;;  %s8677_s2 = inlined_call_operand.vmem [shape: bf16[2,256,32], index: 2, kind: output, shape index: {0}]   ;;  %s8678_s3 = inlined_call_operand.hbm [shape: f32[2,2,32], index: 3, kind: output, shape index: {1}]  }
   0x1   :  { %11 = vsyncpa [#allocation4 + $0x1], 0  ;;  %s7414_s12 = smov 0   ;;  %s7416_s13 = smov 0  }
   0x2   :  { %s7418_s14 = smov 0   ;;  %s7420_s15 = smov 0  }
   0x3   :  { %s7422_s16 = smov 0   ;;  %s7424_s17 = smov 0  }
   0x4 LB: > { %s5451_s18 = sadd.s32 4294967295, %s7390_s17   ;;  %s5452_s19 = sadd.s32 4294967294, %s7390_s17   ;;  %s7390_s17 = sphi %s7424_s17, %s17_s17   ;;  %s7386_s16 = sphi %s7422_s16, %s8693_s16   ;;  %s7382_s15 = sphi %s7420_s15, %s8692_s15   ;;  %s7378_s14 = sphi %s7418_s14, %s8691_s14   ;;  %s7374_s13 = sphi %s7416_s13, %s8690_s13   ;;  %s7370_s12 = sphi %s7414_s12, %s8689_s12  }
   0x5   : > { %s29_s20 = sadd.s32 1, %s7386_s16  ;;  %s118_s21 = sadd.s32 1, %s7378_s14 }
   0x6   : > { %p31_p0 = scmp.ge.s32.totalorder %s29_s20, 2  ;;  %p128_p1 = scmp.ne.s32.totalorder %s7378_s14, %s7374_s13 }
   0x7   : > { %p129_p2 = scmp.eq.s32.totalorder %s5451_s18, 1  ;;  %p134_p3 = scmp.ne.s32.totalorder %s7374_s13, %s7370_s12 }
   0x8   : > { %s8695_s20 = smov (%p31_p0, %s29_s20), 0  ;;  %p135_p5 = scmp.eq.s32.totalorder %s5452_s19, 1 }
   0x9   : > { %p7454_p4 = por %p129_p2, %p128_p1  ;;  %s113_s23 = ssub.s32 %s7386_s16, %s8695_s20 }
   0xa   : > { %p5456_p6 = scmp.ge.s32.totalorder %s7390_s17, 1  ;;  %p116_p7 = scmp.eq.s32.totalorder %s113_s23, 0 }
   0xb   : > { %p7461_p8 = por %p135_p5, %p134_p3  ;;  %p168_p9 = scmp.lt.s32.totalorder %s7390_s17, 3 }
   0xc   : > { %s7467_s25 = scalar_select %p116_p7, %s7378_s14, %s118_s21  }
   0xd   : > { %p169_p10 = pnand %p5456_p6, %p168_p9 }
   0xf   : > { %172 = sbr.rel (%p169_p10) target bundleno = 653 (0x28d), region = 28 }
  0x16   : > { %v5584_v0 = vld [vmem:[%s8676_s1 + $0x2] sm:$0x3]  ;;  %vm866_vm0 = vcmask 1040384   ;;  %vm867_vm1 = vcmask 1041408   ;;  %p204_p11 = scmp.lt.s32.totalorder %s7382_s15, 1  ;;  %v7392_v1 = vmov 65535  }
  0x17   : > { %v868_v2 = vsel %vm866_vm0, 4294967295, %v7392_v1  ;;  %v5856_v4 = vld [vmem:[%s8676_s1 + $0x8] sm:$0x3]  ;;  %v398_v5 = vld [vmem:[%s8676_s1] sm:$0x3]  ;;  %vm230_vm2 = vcmask 23552  }
  0x18   : > { %v7474_v3 = vsel %vm867_vm1, %v868_v2, 0  ;;  %s7477_s28 = scalar_select %p204_p11, %s7382_s15, 1  ;;  %v5953_v9 = vld [vmem:[%s8676_s1 + $0xa] sm:$0x3]  ;;  %vm410_vm3 = vsmask.f32 7424 }
  0x19   : > { %v871_v6 = vand.u32 %v5584_v0, %v7474_v3  ;;  %v7487_v7 = vand.u32 %v5856_v4, %v7474_v3  ;;  %v7490_v8 = vand.u32 %v7474_v3, %v398_v5  ;;  %v7497_v10 = vand.u32 %v5953_v9, %v7474_v3  ;;  %s7393_s29 = smov [#allocation3]  }
  0x1a   : > { %s7015_s8 = smul.u32 216, %s7477_s28  ;;  %vm1257_vm4 = vcmask 1046528   ;;  %s6265_s6 = sshll.u32 %s7477_s28, 7  ;;  %vm5067_vm5 = vcmask 257024   ;;  %vm5132_vm6 = vcmask 261120   ;;  %vm5304_vm7 = vcmask 254976  }
  0x1b   : > { %6451 = vmatprep.subr.bf16.mxu1 %v871_v6  ;;  %6587 = vmatprep.subr.bf16.mxu0 %v7487_v7  ;;  %s8443_s9 = scalar_lea.vmem %s8677_s2, %s6265_s6  ;;  %s201_s28 = sand.u32 1, %s7374_s13  }
  0x1c   : > { %6452 = vmatpush3.bf16.msra.mxu1 %v871_v6  ;;  %s7503_s11 = scalar_lea.vmem %s8675_s0, %s7015_s8  ;;  %6588 = vmatpush3.bf16.msra.mxu0 %v7487_v7  ;;  %s5457_s10 = sshll.u32 %s201_s28, 1 }
  0x1d   : > { %v7072_v11 = vld [vmem:[%s7503_s11] sm:$0xff]   ;;  %6485 = vmatprep.subr.bf16.mxu1 %v7490_v8  ;;  %6621 = vmatprep.subr.bf16.mxu0 %v7497_v10  ;;  %v7074_v13 = vld [vmem:[%s7503_s11 + $0x8] ss:$0 sps:$4 sm:$0x11]   ;;  %v7078_v21 = vld [vmem:[%s7503_s11 + $0xc] sm:$0xff]   ;;  %s203_s18 = scalar_lea.vmem [#allocation3], %s5457_s10 }
  0x1e   : > { %231 = vst.msk [vmem:[#allocation2] sm:$0xff] %vm230_vm2, %v7072_v11  ;;  %v7073_v12 = vld [vmem:[%s7503_s11] sm:$0xff]   ;;  %v419_v16 = vshll.u32 %v7074_v13, 16  ;;  %v7076_v18 = vld [vmem:[%s7503_s11 + $0x8] ss:$0 sps:$4 sm:$0x11]  }
  0x1f   : > { %v412_v14 = vshrl.u32 %v7073_v12, 16  ;;  %v414_v15 = vshll.u32 %v7073_v12, 16  ;;  %v7075_v17 = vld [vmem:[%s7503_s11] sm:$0xfe]   ;;  %241 = vst.msk [vmem:[#allocation2 + $0x8] sm:$0xff] %vm230_vm2, %v7078_v21  ;;  %v7079_v23 = vld [vmem:[%s7503_s11 + $0xc] sm:$0xff]  }
  0x20   : > { %v421_v20 = vrot.slane %v419_v16, 1  ;;  %v7080_v24 = vld [vmem:[%s7503_s11 + $0x14] ss:$0 sps:$4 sm:$0x11]   ;;  %v437_v27 = vshrl.u32 %v7079_v23, 16  ;;  %v439_v28 = vshll.u32 %v7079_v23, 16 }
  0x21   : > { %v416_v19 = vrot.slane %v414_v15, 1  ;;  %v444_v29 = vshll.u32 %v7080_v24, 16  ;;  %v1258_v30 = vrot.slane %v7075_v17, 1  ;;  %v1259_v31 = vrot.slane %v7076_v18, 1  ;;  %v7084_v32 = vld [vmem:[%s7503_s11 + $0x18] sm:$0xff]   ;;  %v7090_v53 = vld [vmem:[%s7503_s11 + $0x24] sm:$0xff]  }
  0x22   : > { %v441_v33 = vrot.slane %v439_v28, 1  ;;  %v7082_v35 = vld [vmem:[%s7503_s11 + $0x14] ss:$0 sps:$4 sm:$0x11]   ;;  %v7081_v36 = vld [vmem:[%s7503_s11 + $0xc] sm:$0xfe]  }
  0x23   : > { %v417_v22 = vor.u32 %v416_v19, %v412_v14  ;;  %v446_v34 = vrot.slane %v444_v29, 1  ;;  %251 = vst.msk [vmem:[#allocation2 + $0x10] sm:$0xff] %vm230_vm2, %v7084_v32  ;;  %v7085_v39 = vld [vmem:[%s7503_s11 + $0x18] sm:$0xff]   ;;  %v7086_v40 = vld [vmem:[%s7503_s11 + $0x20] ss:$0 sps:$4 sm:$0x11]   ;;  %v1260_v41 = vsel %vm1257_vm4, %v1258_v30, %v1259_v31 }
  0x24   : > { %v442_v37 = vor.u32 %v441_v33, %v437_v27  ;;  %v462_v43 = vshrl.u32 %v7085_v39, 16  ;;  %v464_v44 = vshll.u32 %v7085_v39, 16  ;;  %v469_v45 = vshll.u32 %v7086_v40, 16  ;;  %v7087_v51 = vld [vmem:[%s7503_s11 + $0x18] sm:$0xfe]   ;;  %261 = vst.msk [vmem:[#allocation2 + $0x18] sm:$0xff] %vm230_vm2, %v7090_v53 }
  0x25   : > { %v7518_v25 = vld [vmem:[#allocation2] sm:$0xff]  ;;  %v422_v26 = vsel %vm410_vm3, %v417_v22, %v421_v20  ;;  %v1274_v47 = vrot.slane %v7081_v36, 1  ;;  %v1275_v48 = vrot.slane %v7082_v35, 1  ;;  %v7092_v58 = vld [vmem:[%s7503_s11 + $0x2c] ss:$0 sps:$4 sm:$0x11]  }
  0x26   : > { %424 = vst.msk [vmem:[#allocation2] sm:$0xff] %vm230_vm2, %v422_v26  ;;  %v7526_v38 = vld [vmem:[#allocation2 + $0x8] sm:$0xff]  ;;  %v447_v42 = vsel %vm410_vm3, %v442_v37, %v446_v34  ;;  %v466_v49 = vrot.slane %v464_v44, 1  ;;  %v471_v50 = vrot.slane %v469_v45, 1  ;;  %v494_v0 = vshll.u32 %v7092_v58, 16  ;;  %v7083_v12 = vld [vmem:[%s7503_s11 + $0x18] sm:$0xff]  }
  0x27   : > { %449 = vst.msk [vmem:[#allocation2 + $0x8] sm:$0xff] %vm230_vm2, %v447_v42  ;;  %v7088_v52 = vld [vmem:[%s7503_s11 + $0x20] ss:$0 sps:$4 sm:$0x11]   ;;  %v1276_v56 = vsel %vm1257_vm4, %v1274_v47, %v1275_v48  ;;  %v7091_v57 = vld [vmem:[%s7503_s11 + $0x24] sm:$0xff]   ;;  %v7077_v59 = vld [vmem:[%s7503_s11 + $0xc] sm:$0xff]  }
  0x28   : > { %v467_v55 = vor.u32 %v466_v49, %v462_v43  ;;  %v487_v62 = vshrl.u32 %v7091_v57, 16  ;;  %v489_v63 = vshll.u32 %v7091_v57, 16  ;;  %v1290_v1 = vrot.slane %v7087_v51, 1  ;;  %v7093_v9 = vld [vmem:[%s7503_s11 + $0x24] sm:$0xfe]   ;;  %v7096_v13 = vld [vmem:[%s7503_s11 + $0x30] sm:$0xff]  }
  0x29   : > { %v1291_v2 = vrot.slane %v7088_v52, 1  ;;  %v496_v6 = vrot.slane %v494_v0, 1  ;;  %v7094_v11 = vld [vmem:[%s7503_s11 + $0x2c] ss:$0 sps:$4 sm:$0x11]   ;;  %271 = vst.msk [vmem:[#allocation2 + $0x20] sm:$0xff] %vm230_vm2, %v7096_v13 }
  0x2a   : > { %v7538_v54 = vld [vmem:[#allocation2 + $0x10] sm:$0xff]  ;;  %v472_v60 = vsel %vm410_vm3, %v467_v55, %v471_v50  ;;  %v491_v5 = vrot.slane %v489_v63, 1  ;;  %v7098_v18 = vld [vmem:[%s7503_s11 + $0x38] ss:$0 sps:$4 sm:$0x11]   ;;  %v1306_v26 = vrot.slane %v7093_v9, 1 }
  0x2b   : > { %474 = vst.msk [vmem:[#allocation2 + $0x10] sm:$0xff] %vm230_vm2, %v472_v60  ;;  %v7557_v14 = vld [vmem:[#allocation2 + $0x18] sm:$0xff]  ;;  %v1292_v16 = vsel %vm1257_vm4, %v1290_v1, %v1291_v2  ;;  %v7097_v17 = vld [vmem:[%s7503_s11 + $0x30] sm:$0xff]   ;;  %v519_v23 = vshll.u32 %v7098_v18, 16  ;;  %v1307_v27 = vrot.slane %v7094_v11, 1  ;;  %v7089_v31 = vld [vmem:[%s7503_s11 + $0x24] sm:$0xff]  }
  0x2c   : > { %v492_v15 = vor.u32 %v491_v5, %v487_v62  ;;  %v7099_v20 = vld [vmem:[%s7503_s11 + $0x30] sm:$0xfe]   ;;  %v512_v21 = vshrl.u32 %v7097_v17, 16  ;;  %v514_v22 = vshll.u32 %v7097_v17, 16  ;;  %v7102_v32 = vld [vmem:[%s7503_s11 + $0x3c] sm:$0xff]   ;;  %v7108_v55 = vld [vmem:[%s7503_s11 + $0x48] sm:$0xff]  }
  0x2d   : > { %v800_v46 = vld [vmem:[#allocation2] sm:$0xff]  ;;  %v521_v29 = vrot.slane %v519_v23, 1  ;;  %v7100_v30 = vld [vmem:[%s7503_s11 + $0x38] ss:$0 sps:$4 sm:$0x11]   ;;  %v1322_v34 = vrot.slane %v7099_v20, 1  ;;  %v1308_v36 = vsel %vm1257_vm4, %v1306_v26, %v1307_v27 }
  0x2e   : > { %6453 = vmatprep.mubr.msk.bf16.mxu1 %vm230_vm2, %v800_v46  ;;  %1262 = vst.msk [vmem:[#allocation2] sm:$0xff] %vm230_vm2, %v1260_v41  ;;  %v801_v61 = vld [vmem:[#allocation2 + $0x8] sm:$0xff]  ;;  %v497_v19 = vsel %vm410_vm3, %v492_v15, %v496_v6  ;;  %v516_v28 = vrot.slane %v514_v22, 1  ;;  %v7103_v35 = vld [vmem:[%s7503_s11 + $0x3c] sm:$0xff]   ;;  %281 = vst.msk [vmem:[#allocation2 + $0x28] sm:$0xff] %vm230_vm2, %v7102_v32  ;;  %v1323_v47 = vrot.slane %v7100_v30, 1 }
  0x2f   : > { %6454 = vmatmul.mubr.msk.bf16.vlgmr.msra.gmra.mrb[0].mxu1 %vm230_vm2, %v801_v61  ;;  %1278 = vst.msk [vmem:[#allocation2 + $0x8] sm:$0xff] %vm230_vm2, %v1276_v56  ;;  %499 = vst.msk [vmem:[#allocation2 + $0x18] sm:$0xff] %vm230_vm2, %v497_v19  ;;  %v7104_v39 = vld [vmem:[%s7503_s11 + $0x44] ss:$0 sps:$4 sm:$0x11]   ;;  %v537_v41 = vshrl.u32 %v7103_v35, 16 }
  0x30   : > { %6486 = vmatpush3.bf16.msra.mxu1 %v7490_v8  ;;  %v517_v33 = vor.u32 %v516_v28, %v512_v21  ;;  %v7576_v37 = vld [vmem:[#allocation2 + $0x20] sm:$0xff]  ;;  %v539_v42 = vshll.u32 %v7103_v35, 16  ;;  %v544_v44 = vshll.u32 %v7104_v39, 16  ;;  %v7095_v51 = vld [vmem:[%s7503_s11 + $0x30] sm:$0xff]   ;;  %v7109_v57 = vld [vmem:[%s7503_s11 + $0x48] sm:$0xff]   ;;  %v1324_v58 = vsel %vm1257_vm4, %v1322_v34, %v1323_v47  ;;  %291 = vst.msk [vmem:[#allocation2 + $0x30] sm:$0xff] %vm230_vm2, %v7108_v55 }
  0x31   : > { %v7105_v45 = vld [vmem:[%s7503_s11 + $0x3c] sm:$0xfe]   ;;  %v7106_v49 = vld [vmem:[%s7503_s11 + $0x44] ss:$0 sps:$4 sm:$0x11]   ;;  %v562_v62 = vshrl.u32 %v7109_v57, 16 }
  0x32   : > { %v802_v8 = vld [vmem:[#allocation2 + $0x10] sm:$0xff]  ;;  %v522_v40 = vsel %vm410_vm3, %v517_v33, %v521_v29  ;;  %v541_v48 = vrot.slane %v539_v42, 1  ;;  %v546_v50 = vrot.slane %v544_v44, 1  ;;  %v1338_v53 = vrot.slane %v7105_v45, 1  ;;  %v7111_v2 = vld [vmem:[%s7503_s11 + $0x48] sm:$0xfe]  }
  0x33   : > { %6457 = vmatprep.mubr.msk.bf16.mxu1 %vm230_vm2, %v802_v8  ;;  %1294 = vst.msk [vmem:[#allocation2 + $0x10] sm:$0xff] %vm230_vm2, %v1292_v16  ;;  %524 = vst.msk [vmem:[#allocation2 + $0x20] sm:$0xff] %vm230_vm2, %v522_v40  ;;  %v1339_v56 = vrot.slane %v7106_v49, 1  ;;  %v7110_v61 = vld [vmem:[%s7503_s11 + $0x50] ss:$0 sps:$4 sm:$0x11]  }
  0x34   : > { %v542_v52 = vor.u32 %v541_v48, %v537_v41  ;;  %v564_v63 = vshll.u32 %v7109_v57, 16  ;;  %v569_v1 = vshll.u32 %v7110_v61, 16  ;;  %v7112_v9 = vld [vmem:[%s7503_s11 + $0x50] ss:$0 sps:$4 sm:$0x11]   ;;  %v7101_v15 = vld [vmem:[%s7503_s11 + $0x3c] sm:$0xff]  }
  0x35   : > { %v7549_v4 = vld [vmem:[#allocation2] sm:$0xff]  ;;  %v7114_v13 = vld [vmem:[%s7503_s11 + $0xc] sm:$0xff]   ;;  %v1355_v17 = vrot.slane %v7112_v9, 1  ;;  %v7118_v18 = vld [vmem:[%s7503_s11 + $0x54] sm:$0xff]   ;;  %v1340_v19 = vsel %vm1257_vm4, %v1338_v53, %v1339_v56  ;;  %s5332_s19 = sshll.u32 %s203_s18, 4  ;;  %s5315_s27 = scalar_lea.sflag [#allocation4], %s201_s28  ;;  %s8629_s19 = int_to_ptr.vmem [resolvable:$true] %s5332_s19 }
  0x36   : > { %1773 = vst.msk [vmem:[#allocation2] sm:$0xff] %vm230_vm2, %v7077_v59  ;;  %v7566_v24 = vld [vmem:[#allocation2 + $0x8] sm:$0xff]  ;;  %v803_v43 = vld [vmem:[#allocation2 + $0x18] sm:$0xff]  ;;  %v547_v60 = vsel %vm410_vm3, %v542_v52, %v546_v50  ;;  %v566_v6 = vrot.slane %v564_v63, 1  ;;  %v571_v11 = vrot.slane %v569_v1, 1  ;;  %v2184_v8 = vshrl.u32 %v7114_v13, 16 }
  0x37   : > { %1782 = vst.msk [vmem:[#allocation2 + $0x8] sm:$0xff] %vm230_vm2, %v7083_v12  ;;  %6458 = vmatmul.mubr.msk.bf16.gmra.mrb[4].mxu1 %vm230_vm2, %v803_v43  ;;  %1310 = vst.msk [vmem:[#allocation2 + $0x18] sm:$0xff] %vm230_vm2, %v1308_v36  ;;  %v7593_v59 = vld [vmem:[#allocation2 + $0x28] sm:$0xff]  ;;  %v1354_v12 = vrot.slane %v7111_v2, 1  ;;  %v7611_v21 = vld [vmem:[#allocation2 + $0x30] sm:$0xff]  ;;  %v2186_v23 = vshll.u32 %v7114_v13, 16 }
  0x38   : > { %549 = vst.msk [vmem:[#allocation2 + $0x28] sm:$0xff] %vm230_vm2, %v547_v60  ;;  %v567_v16 = vor.u32 %v566_v6, %v562_v62  ;;  %v7115_v20 = vld [vmem:[%s7503_s11 + $0x14] ss:$0 sps:$4 sm:$0x11]   ;;  %301 = vst.msk [vmem:[#allocation2 + $0x38] sm:$0xff] %vm230_vm2, %v7118_v18  ;;  %v7107_v34 = vld [vmem:[%s7503_s11 + $0x48] sm:$0xff]  }
  0x39   : > { %v2191_v27 = vshll.u32 %v7115_v20, 16  ;;  %v7116_v28 = vld [vmem:[%s7503_s11 + $0xc] sm:$0xfe]   ;;  %v2188_v29 = vrot.slane %v2186_v23, 1  ;;  %v7119_v33 = vld [vmem:[%s7503_s11 + $0x54] sm:$0xff]   ;;  %v1356_v41 = vsel %vm1257_vm4, %v1354_v12, %v1355_v17  ;;  %v7128_v56 = vld [vmem:[%s7503_s11 + $0x60] sm:$0xff]  }
  0x3a   : > { %v7583_v46 = vld [vmem:[#allocation2 + $0x10] sm:$0xff]  ;;  %v804_v0 = vld [vmem:[#allocation2 + $0x20] sm:$0xff]  ;;  %v572_v22 = vsel %vm410_vm3, %v567_v16, %v571_v11  ;;  %v2845_v39 = vrot.slane %v7116_v28, 1  ;;  %v7120_v40 = vld [vmem:[%s7503_s11 + $0x5c] ss:$0 sps:$4 sm:$0x11]  }
  0x3b   : > { %1791 = vst.msk [vmem:[#allocation2 + $0x10] sm:$0xff] %vm230_vm2, %v7089_v31  ;;  %6461 = vmatprep.mubr.msk.bf16.mxu1 %vm230_vm2, %v804_v0  ;;  %1326 = vst.msk [vmem:[#allocation2 + $0x20] sm:$0xff] %vm230_vm2, %v1324_v58  ;;  %v7117_v30 = vld [vmem:[%s7503_s11 + $0x14] ss:$0 sps:$4 sm:$0x11]   ;;  %v2193_v32 = vrot.slane %v2191_v27, 1  ;;  %v2189_v36 = vor.u32 %v2188_v29, %v2184_v8 }
  0x3c   : > { %574 = vst.msk [vmem:[#allocation2 + $0x30] sm:$0xff] %vm230_vm2, %v572_v22  ;;  %v587_v43 = vshrl.u32 %v7119_v33, 16  ;;  %v589_v44 = vshll.u32 %v7119_v33, 16  ;;  %v2846_v45 = vrot.slane %v7117_v30, 1  ;;  %v594_v47 = vshll.u32 %v7120_v40, 16  ;;  %v7124_v52 = vld [vmem:[%s7503_s11 + $0x18] sm:$0xff]  }
  0x3d   : > { %v7625_v35 = vld [vmem:[#allocation2] sm:$0xff]  ;;  %v2194_v42 = vsel %vm410_vm3, %v2189_v36, %v2193_v32  ;;  %v7121_v48 = vld [vmem:[%s7503_s11 + $0x54] sm:$0xfe]   ;;  %v2209_v60 = vshrl.u32 %v7124_v52, 16  ;;  %v2211_v62 = vshll.u32 %v7124_v52, 16  ;;  %311 = vst.msk [vmem:[#allocation2 + $0x40] sm:$0xff] %vm230_vm2, %v7128_v56 }
  0x3e   : > { %v7600_v5 = vld [vmem:[#allocation2 + $0x18] sm:$0xff]  ;;  %2196 = vst.msk [vmem:[#allocation2] sm:$0xff] %vm230_vm2, %v2194_v42  ;;  %v591_v50 = vrot.slane %v589_v44, 1  ;;  %v596_v55 = vrot.slane %v594_v47, 1  ;;  %v7129_v63 = vld [vmem:[%s7503_s11 + $0x60] sm:$0xff]   ;;  %v2847_v0 = vsel %vm1257_vm4, %v2845_v39, %v2846_v45  ;;  %v1370_v2 = vrot.slane %v7121_v48, 1 }
  0x3f   : > { %1800 = vst.msk [vmem:[#allocation2 + $0x18] sm:$0xff] %vm230_vm2, %v7095_v51  ;;  %v805_v26 = vld [vmem:[#allocation2 + $0x28] sm:$0xff]  ;;  %v7122_v51 = vld [vmem:[%s7503_s11 + $0x5c] ss:$0 sps:$4 sm:$0x11]   ;;  %v7113_v61 = vld [vmem:[%s7503_s11 + $0x54] sm:$0xff]  }
  0x40   : > { %6462 = vmatmul.mubr.msk.bf16.gmra.mrb[8].mxu1 %vm230_vm2, %v805_v26  ;;  %1342 = vst.msk [vmem:[#allocation2 + $0x28] sm:$0xff] %vm230_vm2, %v1340_v19  ;;  %v7640_v57 = vld [vmem:[#allocation2 + $0x38] sm:$0xff]  ;;  %v592_v58 = vor.u32 %v591_v50, %v587_v43  ;;  %v7125_v6 = vld [vmem:[%s7503_s11 + $0x20] ss:$0 sps:$4 sm:$0x11]   ;;  %v1371_v9 = vrot.slane %v7122_v51, 1 }
  0x41   : > { %v2213_v11 = vrot.slane %v2211_v62, 1  ;;  %v2216_v13 = vshll.u32 %v7125_v6, 16  ;;  %v7127_v17 = vld [vmem:[%s7503_s11 + $0x20] ss:$0 sps:$4 sm:$0x11]   ;;  %v614_v18 = vshll.u32 %v7129_v63, 16 }
  0x42   : > { %v7620_v31 = vld [vmem:[#allocation2 + $0x20] sm:$0xff]  ;;  %v597_v1 = vsel %vm410_vm3, %v592_v58, %v596_v55  ;;  %v7655_v20 = vld [vmem:[#allocation2 + $0x8] sm:$0xff]  ;;  %v612_v22 = vshrl.u32 %v7129_v63, 16  ;;  %v1372_v27 = vsel %vm1257_vm4, %v1370_v2, %v1371_v9  ;;  %v2862_v29 = vrot.slane %v7127_v17, 1  ;;  %v7681_v63 = vld [vmem:[#allocation2 + $0x10] sm:$0xff]  ;;  %s7316_s30 = sshll.u32 %s7393_s29, 4  ;;  %s7317_s30 = int_to_ptr.vmem [resolvable:$false] %s7316_s30 }
  0x43   : > { %1809 = vst.msk [vmem:[#allocation2 + $0x20] sm:$0xff] %vm230_vm2, %v7101_v15  ;;  %v806_v49 = vld [vmem:[#allocation2 + $0x30] sm:$0xff]  ;;  %599 = vst.msk [vmem:[#allocation2 + $0x38] sm:$0xff] %vm230_vm2, %v597_v1  ;;  %v7126_v15 = vld [vmem:[%s7503_s11 + $0x18] sm:$0xfe]   ;;  %v2214_v16 = vor.u32 %v2213_v11, %v2209_v60  ;;  %v2218_v8 = vrot.slane %v2216_v13, 1  ;;  %p7319_p1 = scmp.lt.s32.totalorder %s8629_s19, %s7317_s30 }
  0x44   : > { %6465 = vmatprep.mubr.msk.bf16.mxu1 %vm230_vm2, %v806_v49  ;;  %1358 = vst.msk [vmem:[#allocation2 + $0x30] sm:$0xff] %vm230_vm2, %v1356_v41  ;;  %v2861_v23 = vrot.slane %v7126_v15, 1  ;;  %v616_v26 = vrot.slane %v614_v18, 1  ;;  %v7130_v30 = vld [vmem:[%s7503_s11 + $0x68] ss:$0 sps:$4 sm:$0x11]  }
  0x45   : > { %v2572_v12 = vld [vmem:[#allocation2] sm:$0xff]  ;;  %v2219_v28 = vsel %vm410_vm3, %v2214_v16, %v2218_v8  ;;  %v619_v36 = vshll.u32 %v7130_v30, 16  ;;  %v7132_v39 = vld [vmem:[%s7503_s11 + $0x68] ss:$0 sps:$4 sm:$0x11]   ;;  %v7138_v41 = vld [vmem:[%s7503_s11 + $0x6c] sm:$0xff]  }
  0x46   : > { %6589 = vmatprep.mubr.msk.bf16.mxu0 %vm230_vm2, %v2572_v12  ;;  %2849 = vst.msk [vmem:[#allocation2] sm:$0xff] %vm230_vm2, %v2847_v0  ;;  %2221 = vst.msk [vmem:[#allocation2 + $0x8] sm:$0xff] %vm230_vm2, %v2219_v28  ;;  %v7131_v32 = vld [vmem:[%s7503_s11 + $0x60] sm:$0xfe]   ;;  %v2863_v48 = vsel %vm1257_vm4, %v2861_v23, %v2862_v29  ;;  %v7139_v56 = vld [vmem:[%s7503_s11 + $0x6c] sm:$0xff]   ;;  %v1387_v60 = vrot.slane %v7132_v39, 1 }
  0x47   : > { %v7634_v53 = vld [vmem:[#allocation2 + $0x28] sm:$0xff]  ;;  %v7668_v42 = vld [vmem:[#allocation2 + $0x40] sm:$0xff]  ;;  %v621_v43 = vrot.slane %v619_v36, 1  ;;  %v1386_v45 = vrot.slane %v7131_v32, 1  ;;  %321 = vst.msk [vmem:[#allocation2 + $0x48] sm:$0xff] %vm230_vm2, %v7138_v41  ;;  %v637_v6 = vshrl.u32 %v7139_v56, 16 }
  0x48   : > { %1818 = vst.msk [vmem:[#allocation2 + $0x28] sm:$0xff] %vm230_vm2, %v7107_v34  ;;  %v617_v34 = vor.u32 %v616_v26, %v612_v22  ;;  %v7134_v40 = vld [vmem:[%s7503_s11 + $0x24] sm:$0xff]   ;;  %v7135_v47 = vld [vmem:[%s7503_s11 + $0x2c] ss:$0 sps:$4 sm:$0x11]   ;;  %v639_v11 = vshll.u32 %v7139_v56, 16 }
  0x49   : > { %v7123_v44 = vld [vmem:[%s7503_s11 + $0x60] sm:$0xff]   ;;  %v2234_v50 = vshrl.u32 %v7134_v40, 16  ;;  %v2236_v51 = vshll.u32 %v7134_v40, 16  ;;  %v2241_v52 = vshll.u32 %v7135_v47, 16  ;;  %v1388_v12 = vsel %vm1257_vm4, %v1386_v45, %v1387_v60  ;;  %v7141_v18 = vld [vmem:[%s7503_s11 + $0x6c] sm:$0xfe]  }
  0x4a   : > { %v807_v33 = vld [vmem:[#allocation2 + $0x38] sm:$0xff]  ;;  %v622_v49 = vsel %vm410_vm3, %v617_v34, %v621_v43  ;;  %v7136_v55 = vld [vmem:[%s7503_s11 + $0x24] sm:$0xfe]   ;;  %v7137_v62 = vld [vmem:[%s7503_s11 + $0x2c] ss:$0 sps:$4 sm:$0x11]  }
  0x4b   : > { %v7653_v19 = vld [vmem:[#allocation2 + $0x30] sm:$0xff]  ;;  %6466 = vmatmul.mubr.msk.bf16.gmra.mrb[12].mxu1 %vm230_vm2, %v807_v33  ;;  %1374 = vst.msk [vmem:[#allocation2 + $0x38] sm:$0xff] %vm230_vm2, %v1372_v27  ;;  %624 = vst.msk [vmem:[#allocation2 + $0x40] sm:$0xff] %vm230_vm2, %v622_v49  ;;  %v2243_v0 = vrot.slane %v2241_v52, 1  ;;  %v2877_v15 = vrot.slane %v7136_v55, 1  ;;  %v2878_v16 = vrot.slane %v7137_v62, 1 }
  0x4c   : > { %1827 = vst.msk [vmem:[#allocation2 + $0x30] sm:$0xff] %vm230_vm2, %v7113_v61  ;;  %v2238_v61 = vrot.slane %v2236_v51, 1  ;;  %v7140_v9 = vld [vmem:[%s7503_s11 + $0x74] ss:$0 sps:$4 sm:$0x11]   ;;  %v641_v17 = vrot.slane %v639_v11, 1 }
  0x4d   : > { %v2573_v58 = vld [vmem:[#allocation2 + $0x8] sm:$0xff]  ;;  %v7142_v22 = vld [vmem:[%s7503_s11 + $0x74] ss:$0 sps:$4 sm:$0x11]   ;;  %v1402_v29 = vrot.slane %v7141_v18, 1  ;;  %v7148_v30 = vld [vmem:[%s7503_s11 + $0x78] sm:$0xff]   ;;  %v2879_v39 = vsel %vm1257_vm4, %v2877_v15, %v2878_v16 }
  0x4e   : > { %6590 = vmatmul.mubr.msk.bf16.vlgmr.msra.gmra.mrb[0].mxu0 %vm230_vm2, %v2573_v58  ;;  %2865 = vst.msk [vmem:[#allocation2 + $0x8] sm:$0xff] %vm230_vm2, %v2863_v48  ;;  %v2239_v2 = vor.u32 %v2238_v61, %v2234_v50  ;;  %v7695_v23 = vld [vmem:[#allocation2 + $0x48] sm:$0xff]  ;;  %v642_v26 = vor.u32 %v641_v17, %v637_v6  ;;  %v7144_v28 = vld [vmem:[%s7503_s11 + $0x30] sm:$0xff]   ;;  %v1403_v34 = vrot.slane %v7142_v22, 1  ;;  %331 = vst.msk [vmem:[#allocation2 + $0x50] sm:$0xff] %vm230_vm2, %v7148_v30  ;;  %s7318_s4 = scalar_lea.vmem %s7317_s30, 64 }
  0x4f   : > { %6622 = vmatpush3.bf16.msra.mxu0 %v7497_v10  ;;  %v644_v10 = vshll.u32 %v7140_v9, 16  ;;  %v7133_v32 = vld [vmem:[%s7503_s11 + $0x6c] sm:$0xff]   ;;  %v7145_v36 = vld [vmem:[%s7503_s11 + $0x38] ss:$0 sps:$4 sm:$0x11]   ;;  %v2259_v40 = vshrl.u32 %v7144_v28, 16 }
  0x50   : > { %v2244_v13 = vsel %vm410_vm3, %v2239_v2, %v2243_v0  ;;  %v2261_v41 = vshll.u32 %v7144_v28, 16  ;;  %v2266_v43 = vshll.u32 %v7145_v36, 16  ;;  %v7149_v45 = vld [vmem:[%s7503_s11 + $0x78] sm:$0xff]   ;;  %v1404_v58 = vsel %vm1257_vm4, %v1402_v29, %v1403_v34  ;;  %v7150_v60 = vld [vmem:[%s7503_s11 + $0x80] ss:$0 sps:$4 sm:$0x11]  }
  0x51   : > { %2246 = vst.msk [vmem:[#allocation2 + $0x10] sm:$0xff] %vm230_vm2, %v2244_v13  ;;  %v646_v27 = vrot.slane %v644_v10, 1  ;;  %v7147_v49 = vld [vmem:[%s7503_s11 + $0x38] ss:$0 sps:$4 sm:$0x11]   ;;  %v662_v56 = vshrl.u32 %v7149_v45, 16 }
  0x52   : > { %v7683_v1 = vld [vmem:[#allocation2 + $0x38] sm:$0xff]  ;;  %v808_v8 = vld [vmem:[#allocation2 + $0x40] sm:$0xff]  ;;  %v2263_v48 = vrot.slane %v2261_v41, 1  ;;  %v2268_v51 = vrot.slane %v2266_v43, 1  ;;  %v664_v61 = vshll.u32 %v7149_v45, 16  ;;  %v669_v9 = vshll.u32 %v7150_v60, 16 }
  0x53   : > { %1836 = vst.msk [vmem:[#allocation2 + $0x38] sm:$0xff] %vm230_vm2, %v7123_v44  ;;  %6469 = vmatprep.mubr.msk.bf16.mxu1 %vm230_vm2, %v808_v8  ;;  %1390 = vst.msk [vmem:[#allocation2 + $0x40] sm:$0xff] %vm230_vm2, %v1388_v12  ;;  %v647_v33 = vsel %vm410_vm3, %v642_v26, %v646_v27  ;;  %v7146_v44 = vld [vmem:[%s7503_s11 + $0x30] sm:$0xfe]   ;;  %v7710_v50 = vld [vmem:[#allocation2 + $0x18] sm:$0xff]  ;;  %v2894_v12 = vrot.slane %v7147_v49, 1 }
  0x54   : > { %649 = vst.msk [vmem:[#allocation2 + $0x48] sm:$0xff] %vm230_vm2, %v647_v33  ;;  %v2264_v55 = vor.u32 %v2263_v48, %v2259_v40  ;;  %v2893_v2 = vrot.slane %v7146_v44, 1  ;;  %v666_v6 = vrot.slane %v664_v61, 1  ;;  %v7151_v11 = vld [vmem:[%s7503_s11 + $0x78] sm:$0xfe]   ;;  %v671_v17 = vrot.slane %v669_v9, 1 }
  0x55   : > { %v7152_v13 = vld [vmem:[%s7503_s11 + $0x80] ss:$0 sps:$4 sm:$0x11]   ;;  %v7723_v15 = vld [vmem:[#allocation2 + $0x50] sm:$0xff]  ;;  %v7143_v10 = vld [vmem:[%s7503_s11 + $0x78] sm:$0xff]   ;;  %v1418_v30 = vrot.slane %v7151_v11, 1 }
  0x56   : > { %v2269_v62 = vsel %vm410_vm3, %v2264_v55, %v2268_v51  ;;  %v667_v16 = vor.u32 %v666_v6, %v662_v56  ;;  %v7154_v18 = vld [vmem:[%s7503_s11 + $0x3c] sm:$0xff]   ;;  %v7155_v22 = vld [vmem:[%s7503_s11 + $0x44] ss:$0 sps:$4 sm:$0x11]   ;;  %v2895_v27 = vsel %vm1257_vm4, %v2893_v2, %v2894_v12  ;;  %v7161_v2 = vld [vmem:[%s7503_s11 + $0x84] sm:$0xfe]  }
  0x57   : > { %2271 = vst.msk [vmem:[#allocation2 + $0x18] sm:$0xff] %vm230_vm2, %v2269_v62  ;;  %v7158_v26 = vld [vmem:[%s7503_s11 + $0x84] sm:$0xff]   ;;  %v2284_v28 = vshrl.u32 %v7154_v18, 16  ;;  %v2286_v29 = vshll.u32 %v7154_v18, 16  ;;  %v2291_v33 = vshll.u32 %v7155_v22, 16 }
  0x58   : > { %v2574_v47 = vld [vmem:[#allocation2 + $0x10] sm:$0xff]  ;;  %v672_v8 = vsel %vm410_vm3, %v667_v16, %v671_v17  ;;  %v7157_v34 = vld [vmem:[%s7503_s11 + $0x44] ss:$0 sps:$4 sm:$0x11]   ;;  %341 = vst.msk [vmem:[#allocation2 + $0x58] sm:$0xff] %vm230_vm2, %v7158_v26  ;;  %v7164_v16 = vld [vmem:[%s7503_s11 + $0x48] sm:$0xff]  }
  0x59   : > { %6593 = vmatprep.mubr.msk.bf16.mxu0 %vm230_vm2, %v2574_v47  ;;  %2881 = vst.msk [vmem:[#allocation2 + $0x10] sm:$0xff] %vm230_vm2, %v2879_v39  ;;  %674 = vst.msk [vmem:[#allocation2 + $0x50] sm:$0xff] %vm230_vm2, %v672_v8  ;;  %v7734_v39 = vld [vmem:[#allocation2 + $0x20] sm:$0xff]  ;;  %v2288_v40 = vrot.slane %v2286_v29, 1  ;;  %v2293_v43 = vrot.slane %v2291_v33, 1  ;;  %v2910_v61 = vrot.slane %v7157_v34, 1 }
  0x5a   : > { %v7712_v52 = vld [vmem:[#allocation2 + $0x40] sm:$0xff]  ;;  %v7160_v49 = vld [vmem:[%s7503_s11 + $0x8c] ss:$0 sps:$4 sm:$0x11]   ;;  %v2309_v22 = vshrl.u32 %v7164_v16, 16  ;;  %v2311_v26 = vshll.u32 %v7164_v16, 16 }
  0x5b   : > { %1845 = vst.msk [vmem:[#allocation2 + $0x40] sm:$0xff] %vm230_vm2, %v7133_v32  ;;  %v809_v0 = vld [vmem:[#allocation2 + $0x48] sm:$0xff]  ;;  %v1419_v32 = vrot.slane %v7152_v13, 1  ;;  %v7156_v44 = vld [vmem:[%s7503_s11 + $0x3c] sm:$0xfe]   ;;  %v2289_v45 = vor.u32 %v2288_v40, %v2284_v28  ;;  %v694_v62 = vshll.u32 %v7160_v49, 16 }
  0x5c   : > { %6470 = vmatmul.mubr.msk.bf16.gmra.mrb[16].mxu1 %vm230_vm2, %v809_v0  ;;  %1406 = vst.msk [vmem:[#allocation2 + $0x48] sm:$0xff] %vm230_vm2, %v1404_v58  ;;  %v7159_v47 = vld [vmem:[%s7503_s11 + $0x84] sm:$0xff]   ;;  %v2909_v60 = vrot.slane %v7156_v44, 1  ;;  %v7162_v6 = vld [vmem:[%s7503_s11 + $0x8c] ss:$0 sps:$4 sm:$0x11]  }
  0x5d   : > { %v1420_v48 = vsel %vm1257_vm4, %v1418_v30, %v1419_v32  ;;  %v2294_v51 = vsel %vm410_vm3, %v2289_v45, %v2293_v43  ;;  %v687_v55 = vshrl.u32 %v7159_v47, 16  ;;  %v689_v56 = vshll.u32 %v7159_v47, 16  ;;  %v7153_v12 = vld [vmem:[%s7503_s11 + $0x84] sm:$0xff]   ;;  %v7165_v17 = vld [vmem:[%s7503_s11 + $0x50] ss:$0 sps:$4 sm:$0x11]  }
  0x5e   : > { %v2575_v36 = vld [vmem:[#allocation2 + $0x18] sm:$0xff]  ;;  %2296 = vst.msk [vmem:[#allocation2 + $0x20] sm:$0xff] %vm230_vm2, %v2294_v51  ;;  %v696_v11 = vrot.slane %v694_v62, 1  ;;  %v2911_v18 = vsel %vm1257_vm4, %v2909_v60, %v2910_v61  ;;  %v1435_v28 = vrot.slane %v7162_v6, 1  ;;  %v2316_v29 = vshll.u32 %v7165_v17, 16  ;;  %v7761_v32 = vld [vmem:[#allocation2 + $0x28] sm:$0xff] }
  0x5f   : > { %6594 = vmatmul.mubr.msk.bf16.gmra.mrb[4].mxu0 %vm230_vm2, %v2575_v36  ;;  %2897 = vst.msk [vmem:[#allocation2 + $0x18] sm:$0xff] %vm230_vm2, %v2895_v27  ;;  %v691_v0 = vrot.slane %v689_v56, 1  ;;  %v7751_v9 = vld [vmem:[#allocation2 + $0x58] sm:$0xff]  ;;  %v1434_v27 = vrot.slane %v7161_v2, 1  ;;  %v2313_v33 = vrot.slane %v2311_v26, 1  ;;  %v7169_v45 = vld [vmem:[%s7503_s11 + $0x90] sm:$0xff]  }
  0x60   : > { %v810_v58 = vld [vmem:[#allocation2 + $0x50] sm:$0xff]  ;;  %v2318_v40 = vrot.slane %v2316_v29, 1  ;;  %v7166_v43 = vld [vmem:[%s7503_s11 + $0x48] sm:$0xfe]   ;;  %v712_v51 = vshrl.u32 %v7169_v45, 16 }
  0x61   : > { %6473 = vmatprep.mubr.msk.bf16.mxu1 %vm230_vm2, %v810_v58  ;;  %1422 = vst.msk [vmem:[#allocation2 + $0x50] sm:$0xff] %vm230_vm2, %v1420_v48  ;;  %v692_v13 = vor.u32 %v691_v0, %v687_v55  ;;  %v7167_v34 = vld [vmem:[%s7503_s11 + $0x50] ss:$0 sps:$4 sm:$0x11]   ;;  %v2314_v44 = vor.u32 %v2313_v33, %v2309_v22  ;;  %v1436_v48 = vsel %vm1257_vm4, %v1434_v27, %v1435_v28  ;;  %v714_v55 = vshll.u32 %v7169_v45, 16 }
  0x62   : > { %v7170_v47 = vld [vmem:[%s7503_s11 + $0x98] ss:$0 sps:$4 sm:$0x11]   ;;  %v2925_v60 = vrot.slane %v7166_v43, 1  ;;  %v2926_v61 = vrot.slane %v7167_v34, 1  ;;  %v7163_v17 = vld [vmem:[%s7503_s11 + $0x90] sm:$0xff]  }
  0x63   : > { %v7736_v41 = vld [vmem:[#allocation2 + $0x48] sm:$0xff]  ;;  %v697_v8 = vsel %vm410_vm3, %v692_v13, %v696_v11  ;;  %v2319_v49 = vsel %vm410_vm3, %v2314_v44, %v2318_v40  ;;  %v719_v56 = vshll.u32 %v7170_v47, 16  ;;  %v716_v62 = vrot.slane %v714_v55, 1  ;;  %v7172_v0 = vld [vmem:[%s7503_s11 + $0x98] ss:$0 sps:$4 sm:$0x11]  }
  0x64   : > { %1854 = vst.msk [vmem:[#allocation2 + $0x48] sm:$0xff] %vm230_vm2, %v7143_v10  ;;  %v7168_v10 = vld [vmem:[%s7503_s11 + $0x90] sm:$0xff]   ;;  %699 = vst.msk [vmem:[#allocation2 + $0x58] sm:$0xff] %vm230_vm2, %v697_v8  ;;  %v7175_v16 = vld [vmem:[%s7503_s11 + $0x5c] ss:$0 sps:$4 sm:$0x11]  }
  0x65   : > { %351 = vst.msk [vmem:[#allocation2 + $0x60] sm:$0xff] %vm230_vm2, %v7168_v10  ;;  %v2576_v30 = vld [vmem:[#allocation2 + $0x20] sm:$0xff]  ;;  %2321 = vst.msk [vmem:[#allocation2 + $0x28] sm:$0xff] %vm230_vm2, %v2319_v49  ;;  %v721_v6 = vrot.slane %v719_v56, 1  ;;  %v7171_v11 = vld [vmem:[%s7503_s11 + $0x90] sm:$0xfe]   ;;  %v2927_v10 = vsel %vm1257_vm4, %v2925_v60, %v2926_v61 }
  0x66   : > { %6597 = vmatprep.mubr.msk.bf16.mxu0 %vm230_vm2, %v2576_v30  ;;  %2913 = vst.msk [vmem:[#allocation2 + $0x20] sm:$0xff] %vm230_vm2, %v2911_v18  ;;  %v7174_v13 = vld [vmem:[%s7503_s11 + $0x54] sm:$0xff]   ;;  %v1450_v8 = vrot.slane %v7171_v11, 1  ;;  %v2341_v27 = vshll.u32 %v7175_v16, 16  ;;  %v1451_v30 = vrot.slane %v7172_v0, 1  ;;  %v7178_v44 = vld [vmem:[%s7503_s11 + $0x9c] sm:$0xff]  }
  0x67   : > { %v2334_v22 = vshrl.u32 %v7174_v13, 16  ;;  %v2336_v26 = vshll.u32 %v7174_v13, 16  ;;  %v7176_v28 = vld [vmem:[%s7503_s11 + $0x54] sm:$0xfe]   ;;  %361 = vst.msk [vmem:[#allocation2 + $0x68] sm:$0xff] %vm230_vm2, %v7178_v44  ;;  %v7184_v16 = vld [vmem:[%s7503_s11 + $0x60] sm:$0xff]  }
  0x68   : > { %v7764_v36 = vld [vmem:[#allocation2 + $0x50] sm:$0xff]  ;;  %v7177_v33 = vld [vmem:[%s7503_s11 + $0x5c] ss:$0 sps:$4 sm:$0x11]   ;;  %v2343_v43 = vrot.slane %v2341_v27, 1  ;;  %v2941_v55 = vrot.slane %v7176_v28, 1 }
  0x69   : > { %1863 = vst.msk [vmem:[#allocation2 + $0x50] sm:$0xff] %vm230_vm2, %v7153_v12  ;;  %v717_v12 = vor.u32 %v716_v62, %v712_v51  ;;  %v7791_v34 = vld [vmem:[#allocation2 + $0x30] sm:$0xff]  ;;  %v2338_v40 = vrot.slane %v2336_v26, 1  ;;  %v7180_v49 = vld [vmem:[%s7503_s11 + $0xa4] ss:$0 sps:$4 sm:$0x11]   ;;  %v1452_v51 = vsel %vm1257_vm4, %v1450_v8, %v1451_v30 }
  0x6a   : > { %v744_v61 = vshll.u32 %v7180_v49, 16  ;;  %v7181_v62 = vld [vmem:[%s7503_s11 + $0x9c] sm:$0xfe]   ;;  %v7182_v13 = vld [vmem:[%s7503_s11 + $0xa4] ss:$0 sps:$4 sm:$0x11]  }
  0x6b   : > { %v811_v58 = vld [vmem:[#allocation2 + $0x58] sm:$0xff]  ;;  %v722_v18 = vsel %vm410_vm3, %v717_v12, %v721_v6  ;;  %v2339_v47 = vor.u32 %v2338_v40, %v2334_v22  ;;  %v2942_v6 = vrot.slane %v7177_v33, 1  ;;  %v2359_v8 = vshrl.u32 %v7184_v16, 16  ;;  %v7188_v26 = vld [vmem:[%s7503_s11 + $0xa8] sm:$0xff]  }
  0x6c   : > { %6474 = vmatmul.mubr.msk.bf16.gmra.mrb[20].mxu1 %vm230_vm2, %v811_v58  ;;  %1438 = vst.msk [vmem:[#allocation2 + $0x58] sm:$0xff] %vm230_vm2, %v1436_v48  ;;  %v7778_v2 = vld [vmem:[#allocation2 + $0x60] sm:$0xff]  ;;  %v2577_v29 = vld [vmem:[#allocation2 + $0x28] sm:$0xff]  ;;  %v746_v12 = vrot.slane %v744_v61, 1  ;;  %v2361_v22 = vshll.u32 %v7184_v16, 16  ;;  %v1466_v28 = vrot.slane %v7181_v62, 1 }
  0x6d   : > { %724 = vst.msk [vmem:[#allocation2 + $0x60] sm:$0xff] %vm230_vm2, %v722_v18  ;;  %6598 = vmatmul.mubr.msk.bf16.gmra.mrb[8].mxu0 %vm230_vm2, %v2577_v29  ;;  %2929 = vst.msk [vmem:[#allocation2 + $0x28] sm:$0xff] %vm230_vm2, %v2927_v10  ;;  %v7179_v48 = vld [vmem:[%s7503_s11 + $0x9c] sm:$0xff]   ;;  %v2344_v56 = vsel %vm410_vm3, %v2339_v47, %v2343_v43  ;;  %v7185_v18 = vld [vmem:[%s7503_s11 + $0x68] ss:$0 sps:$4 sm:$0x11]   ;;  %v2943_v29 = vsel %vm1257_vm4, %v2941_v55, %v2942_v6 }
  0x6e   : > { %v737_v58 = vshrl.u32 %v7179_v48, 16  ;;  %v739_v60 = vshll.u32 %v7179_v48, 16  ;;  %2346 = vst.msk [vmem:[#allocation2 + $0x30] sm:$0xff] %vm230_vm2, %v2344_v56  ;;  %v7811_v27 = vld [vmem:[#allocation2 + $0x68] sm:$0xff]  ;;  %v2363_v33 = vrot.slane %v2361_v22, 1  ;;  %v2366_v40 = vshll.u32 %v7185_v18, 16 }
  0x6f   : > { %v7186_v43 = vld [vmem:[%s7503_s11 + $0x60] sm:$0xfe]   ;;  %371 = vst.msk [vmem:[#allocation2 + $0x70] sm:$0xff] %vm230_vm2, %v7188_v26  ;;  %v7187_v44 = vld [vmem:[%s7503_s11 + $0x68] ss:$0 sps:$4 sm:$0x11]  }
  0x70   : > { %v741_v11 = vrot.slane %v739_v60, 1  ;;  %v7189_v47 = vld [vmem:[%s7503_s11 + $0xa8] sm:$0xff]   ;;  %v1467_v49 = vrot.slane %v7182_v13, 1  ;;  %v2364_v56 = vor.u32 %v2363_v33, %v2359_v8  ;;  %v2368_v55 = vrot.slane %v2366_v40, 1  ;;  %v3090_v22 = vld [vmem:[#allocation2] sm:$0xff]  ;;  %v7195_v26 = vld [vmem:[%s7503_s11 + $0xb4] sm:$0xff]  }
  0x71   : > { %v2957_v60 = vrot.slane %v7186_v43, 1  ;;  %v2958_v62 = vrot.slane %v7187_v44, 1  ;;  %v762_v6 = vshrl.u32 %v7189_v47, 16  ;;  %v7191_v16 = vld [vmem:[%s7503_s11 + $0xa8] sm:$0xfe]   ;;  %381 = vst.msk [vmem:[#allocation2 + $0x78] sm:$0xff] %vm230_vm2, %v7195_v26 }
  0x72   : > { %v742_v10 = vor.u32 %v741_v11, %v737_v58  ;;  %v2369_v61 = vsel %vm410_vm3, %v2364_v56, %v2368_v55  ;;  %v764_v11 = vshll.u32 %v7189_v47, 16  ;;  %v7192_v8 = vld [vmem:[%s7503_s11 + $0xb0] ss:$0 sps:$4 sm:$0x11]   ;;  %v1482_v33 = vrot.slane %v7191_v16, 1  ;;  %v7196_v43 = vld [vmem:[%s7503_s11 + $0xb4] sm:$0xff]  }
  0x73   : > { %v7794_v45 = vld [vmem:[#allocation2 + $0x58] sm:$0xff]  ;;  %v1483_v40 = vrot.slane %v7192_v8, 1  ;;  %v2959_v44 = vsel %vm1257_vm4, %v2957_v60, %v2958_v62  ;;  %v6018_v47 = vld [vmem:[%s8676_s1 + $0xc] sm:$0x3]  ;;  %v787_v60 = vshrl.u32 %v7196_v43, 16  ;;  %v789_v62 = vshll.u32 %v7196_v43, 16 }
  0x74   : > { %1872 = vst.msk [vmem:[#allocation2 + $0x58] sm:$0xff] %vm230_vm2, %v7163_v17  ;;  %v812_v0 = vld [vmem:[#allocation2 + $0x60] sm:$0xff]  ;;  %v747_v30 = vsel %vm410_vm3, %v742_v10, %v746_v12  ;;  %v1468_v12 = vsel %vm1257_vm4, %v1466_v28, %v1467_v49  ;;  %v7194_v10 = vld [vmem:[%s7503_s11 + $0x18] sm:$0xff]   ;;  %v766_v18 = vrot.slane %v764_v11, 1  ;;  %v3564_v56 = vand.u32 %v6018_v47, %v7474_v3  ;;  %v7202_v43 = vld [vmem:[%s7503_s11 + $0x30] sm:$0xff]  }
  0x75   : > { %6477 = vmatprep.mubr.msk.bf16.mxu1 %vm230_vm2, %v812_v0  ;;  %1454 = vst.msk [vmem:[#allocation2 + $0x60] sm:$0xff] %vm230_vm2, %v1452_v51  ;;  %v7173_v17 = vld [vmem:[%s7503_s11 + $0x9c] sm:$0xff]   ;;  %749 = vst.msk [vmem:[#allocation2 + $0x68] sm:$0xff] %vm230_vm2, %v747_v30  ;;  %v2578_v48 = vld [vmem:[#allocation2 + $0x30] sm:$0xff]  ;;  %v791_v11 = vrot.slane %v789_v62, 1 }
  0x76   : > { %v7820_v51 = vld [vmem:[#allocation2 + $0x38] sm:$0xff]  ;;  %6601 = vmatprep.mubr.msk.bf16.mxu0 %vm230_vm2, %v2578_v48  ;;  %2945 = vst.msk [vmem:[#allocation2 + $0x30] sm:$0xff] %vm230_vm2, %v2943_v29  ;;  %v7190_v0 = vld [vmem:[%s7503_s11 + $0xb0] ss:$0 sps:$4 sm:$0x11]   ;;  %3360 = vst.msk [vmem:[#allocation2] sm:$0xff] %vm230_vm2, %v7194_v10  ;;  %v767_v28 = vor.u32 %v766_v18, %v762_v6  ;;  %6655 = vmatprep.subr.bf16.mxu0 %v3564_v56  ;;  %v1484_v18 = vsel %vm1257_vm4, %v1482_v33, %v1483_v40 }
  0x77   : > { %2371 = vst.msk [vmem:[#allocation2 + $0x38] sm:$0xff] %vm230_vm2, %v2369_v61  ;;  %v769_v13 = vshll.u32 %v7190_v0, 16  ;;  %v7835_v29 = vld [vmem:[#allocation2 + $0x70] sm:$0xff]  ;;  %v7183_v48 = vld [vmem:[%s7503_s11 + $0xa8] sm:$0xff]   ;;  %v792_v8 = vor.u32 %v791_v11, %v787_v60  ;;  %v7203_v40 = vld [vmem:[%s7503_s11 + $0x3c] sm:$0xff]  }
  0x78   : > { %v7197_v61 = vld [vmem:[%s7503_s11 + $0xbc] ss:$0 sps:$4 sm:$0x11]   ;;  %v7198_v6 = vld [vmem:[%s7503_s11 + $0xb4] sm:$0xfe]   ;;  %v7201_v26 = vld [vmem:[%s7503_s11 + $0x24] sm:$0xff]  }
  0x79   : > { %v771_v30 = vrot.slane %v769_v13, 1  ;;  %v794_v0 = vshll.u32 %v7197_v61, 16  ;;  %v7858_v16 = vld [vmem:[#allocation2 + $0x78] sm:$0xff]  ;;  %v1498_v33 = vrot.slane %v7198_v6, 1  ;;  %v3095_v61 = vld [vmem:[#allocation2 + $0x28] sm:$0xff]  ;;  %v7206_v62 = vld [vmem:[%s7503_s11 + $0x60] sm:$0xff]  }
  0x7a   : > { %v3093_v47 = vld [vmem:[#allocation2 + $0x18] sm:$0xff]  ;;  %v7207_v11 = vld [vmem:[%s7503_s11 + $0x6c] sm:$0xff]  }
  0x7b   : > { %v772_v49 = vsel %vm410_vm3, %v767_v28, %v771_v30  ;;  %v796_v10 = vrot.slane %v794_v0, 1  ;;  %v3092_v28 = vld [vmem:[#allocation2 + $0x10] sm:$0xff]  ;;  %3387 = vst.msk [vmem:[#allocation2 + $0x18] sm:$0xff] %vm230_vm2, %v7203_v40  ;;  %v7200_v40 = vld [vmem:[%s7503_s11 + $0xc0] sm:$0xff]  }
  0x7c   : > { %v7822_v58 = vld [vmem:[#allocation2 + $0x60] sm:$0xff]  ;;  %774 = vst.msk [vmem:[#allocation2 + $0x70] sm:$0xff] %vm230_vm2, %v772_v49  ;;  %3378 = vst.msk [vmem:[#allocation2 + $0x10] sm:$0xff] %vm230_vm2, %v7202_v43  ;;  %v7205_v60 = vld [vmem:[%s7503_s11 + $0x54] sm:$0xff]  }
  0x7d   : > { %1881 = vst.msk [vmem:[#allocation2 + $0x60] sm:$0xff] %vm230_vm2, %v7173_v17  ;;  %v813_v17 = vld [vmem:[#allocation2 + $0x68] sm:$0xff]  ;;  %v797_v30 = vsel %vm410_vm3, %v792_v8, %v796_v10  ;;  %v3094_v49 = vld [vmem:[#allocation2 + $0x20] sm:$0xff]  ;;  %3405 = vst.msk [vmem:[#allocation2 + $0x28] sm:$0xff] %vm230_vm2, %v7205_v60 }
  0x7e   : > { %6478 = vmatmul.mubr.msk.bf16.gmra.mrb[24].mxu1 %vm230_vm2, %v813_v17  ;;  %1470 = vst.msk [vmem:[#allocation2 + $0x68] sm:$0xff] %vm230_vm2, %v1468_v12  ;;  %v2579_v55 = vld [vmem:[#allocation2 + $0x38] sm:$0xff]  ;;  %v3091_v17 = vld [vmem:[#allocation2 + $0x8] sm:$0xff]  ;;  %799 = vst.msk [vmem:[#allocation2 + $0x78] sm:$0xff] %vm230_vm2, %v797_v30 }
  0x7f   : > { %6602 = vmatmul.mubr.msk.bf16.gmra.mrb[12].mxu0 %vm230_vm2, %v2579_v55  ;;  %2961 = vst.msk [vmem:[#allocation2 + $0x38] sm:$0xff] %vm230_vm2, %v2959_v44  ;;  %v7199_v12 = vld [vmem:[%s7503_s11 + $0xbc] ss:$0 sps:$4 sm:$0x11]   ;;  %3369 = vst.msk [vmem:[#allocation2 + $0x8] sm:$0xff] %vm230_vm2, %v7201_v26  ;;  %v7204_v55 = vld [vmem:[%s7503_s11 + $0x48] sm:$0xff]  }
  0x80   : > { %6623 = vmatprep.mubr.msk.bf16.mxu0 %vm230_vm2, %v3090_v22  ;;  %v1499_v44 = vrot.slane %v7199_v12, 1  ;;  %3396 = vst.msk [vmem:[#allocation2 + $0x20] sm:$0xff] %vm230_vm2, %v7204_v55  ;;  %v3096_v6 = vld [vmem:[#allocation2 + $0x30] sm:$0xff]  ;;  %v5694_v12 = vld [vmem:[%s8676_s1 + $0x4] sm:$0x3]  ;;  %v7213_v60 = vld [vmem:[%s7503_s11 + $0x78] sm:$0xff]  }
  0x81   : > { %3414 = vst.msk [vmem:[#allocation2 + $0x30] sm:$0xff] %vm230_vm2, %v7206_v62  ;;  %v1570_v8 = vand.u32 %v5694_v12, %v7474_v3  ;;  %v7208_v26 = vld [vmem:[%s7503_s11 + $0x6c] sm:$0xff]  }
  0x82   : > { %v1500_v0 = vsel %vm1257_vm4, %v1498_v33, %v1499_v44  ;;  %v2386_v30 = vshll.u32 %v7208_v26, 16  ;;  %v7210_v43 = vld [vmem:[%s7503_s11 + $0x6c] sm:$0xfe]   ;;  %v7211_v33 = vld [vmem:[%s7503_s11 + $0x74] ss:$0 sps:$4 sm:$0x11]  }
  0x83   : > { %v814_v22 = vld [vmem:[#allocation2 + $0x70] sm:$0xff]  ;;  %6519 = vmatprep.subr.bf16.mxu1 %v1570_v8  ;;  %v2973_v12 = vrot.slane %v7210_v43, 1 }
  0x84   : > { %6481 = vmatprep.mubr.msk.bf16.mxu1 %vm230_vm2, %v814_v22  ;;  %1486 = vst.msk [vmem:[#allocation2 + $0x70] sm:$0xff] %vm230_vm2, %v1484_v18  ;;  %v2384_v22 = vshrl.u32 %v7208_v26, 16  ;;  %v2388_v44 = vrot.slane %v2386_v30, 1  ;;  %v7921_v30 = vld [vmem:[#allocation2 + $0x48] sm:$0xff] }
  0x85   : > { %v7856_v13 = vld [vmem:[#allocation2 + $0x68] sm:$0xff]  ;;  %v815_v18 = vld [vmem:[#allocation2 + $0x78] sm:$0xff] }
  0x86   : > { %1890 = vst.msk [vmem:[#allocation2 + $0x68] sm:$0xff] %vm230_vm2, %v7183_v48  ;;  %v7193_v48 = vld [vmem:[%s7503_s11 + $0xb4] sm:$0xff]   ;;  %6482 = vmatmul.mubr.msk.bf16.gmra.mrb[28].mxu1 %vm230_vm2, %v815_v18  ;;  %1502 = vst.msk [vmem:[#allocation2 + $0x78] sm:$0xff] %vm230_vm2, %v1500_v0  ;;  %v2409_v0 = vshrl.u32 %v7213_v60, 16  ;;  %v2974_v18 = vrot.slane %v7211_v33, 1 }
  0x87   : > { %6624 = vmatmul.mubr.msk.bf16.vlgmr.msra.gmra.mrb[0].mxu0 %vm230_vm2, %v3091_v17  ;;  %6487 = vmatprep.mubr.msk.bf16.mxu1 %vm230_vm2, %v7518_v25  ;;  %v7209_v17 = vld [vmem:[%s7503_s11 + $0x74] ss:$0 sps:$4 sm:$0x11]   ;;  %v2389_v25 = vor.u32 %v2388_v44, %v2384_v22  ;;  %v7216_v22 = vld [vmem:[%s7503_s11 + $0x80] ss:$0 sps:$4 sm:$0x11]  }
  0x88   : > { %6656 = vmatpush3.bf16.msra.mxu0 %v3564_v56  ;;  %6627 = vmatprep.mubr.msk.bf16.mxu0 %vm230_vm2, %v3092_v28  ;;  %v7882_v56 = vld [vmem:[#allocation2 + $0x38] sm:$0xff]  ;;  %v2391_v28 = vshll.u32 %v7209_v17, 16  ;;  %v2975_v44 = vsel %vm1257_vm4, %v2973_v12, %v2974_v18  ;;  %v7223_v12 = vld [vmem:[%s7503_s11 + $0x90] sm:$0xff]  }
  0x89   : > { %3423 = vst.msk [vmem:[#allocation2 + $0x38] sm:$0xff] %vm230_vm2, %v7207_v11  ;;  %v7940_v18 = vld [vmem:[#allocation2 + $0x50] sm:$0xff] }
  0x8a   : > { %v2393_v55 = vrot.slane %v2391_v28, 1 }
  0x8b   : > { %v7888_v10 = vld [vmem:[#allocation2 + $0x70] sm:$0xff] }
  0x8c   : > { %1899 = vst.msk [vmem:[#allocation2 + $0x70] sm:$0xff] %vm230_vm2, %v7193_v48  ;;  %v7904_v48 = vld [vmem:[#allocation2 + $0x40] sm:$0xff]  ;;  %v2394_v11 = vsel %vm410_vm3, %v2389_v25, %v2393_v55 }
  0x8d   : > { %v7907_v62 = vld [vmem:[#allocation2 + $0x78] sm:$0xff]  ;;  %2396 = vst.msk [vmem:[#allocation2 + $0x40] sm:$0xff] %vm230_vm2, %v2394_v11  ;;  %v7220_v25 = vld [vmem:[%s7503_s11 + $0x84] sm:$0xfe]  }
  0x8e   : > { %1909 = vst.msk [vmem:[#allocation2 + $0x78] sm:$0xff] %vm230_vm2, %v7200_v40  ;;  %6488 = vmatmul.mubr.msk.bf16.vlgmr.msra.gmra.mrb[0].mxu1 %vm230_vm2, %v7526_v38  ;;  %v7215_v38 = vld [vmem:[%s7503_s11 + $0x78] sm:$0xfe]   ;;  %v7218_v40 = vld [vmem:[%s7503_s11 + $0x84] sm:$0xff]  }
  0x8f   : > { %6628 = vmatmul.mubr.msk.bf16.gmra.mrb[4].mxu0 %vm230_vm2, %v3093_v47  ;;  %v7214_v47 = vld [vmem:[%s7503_s11 + $0x80] ss:$0 sps:$4 sm:$0x11]   ;;  %6491 = vmatprep.mubr.msk.bf16.mxu1 %vm230_vm2, %v7538_v54  ;;  %v7219_v54 = vld [vmem:[%s7503_s11 + $0x8c] ss:$0 sps:$4 sm:$0x11]  }
  0x90   : > { %6631 = vmatprep.mubr.msk.bf16.mxu0 %vm230_vm2, %v3094_v49  ;;  %v2411_v49 = vshll.u32 %v7213_v60, 16  ;;  %v2416_v17 = vshll.u32 %v7214_v47, 16  ;;  %6520 = vmatpush3.bf16.msra.mxu1 %v1570_v8  ;;  %v2434_v33 = vshrl.u32 %v7218_v40, 16  ;;  %v2436_v55 = vshll.u32 %v7218_v40, 16 }
  0x91   : > { %v2989_v8 = vrot.slane %v7215_v38, 1  ;;  %v2990_v60 = vrot.slane %v7216_v22, 1  ;;  %v7221_v11 = vld [vmem:[%s7503_s11 + $0x8c] ss:$0 sps:$4 sm:$0x11]   ;;  %v2459_v38 = vshrl.u32 %v7223_v12, 16 }
  0x92   : > { %v2413_v26 = vrot.slane %v2411_v49, 1  ;;  %v2418_v43 = vrot.slane %v2416_v17, 1  ;;  %v7212_v17 = vld [vmem:[%s7503_s11 + $0x78] sm:$0xff]  }
  0x93   : > { %v2991_v22 = vsel %vm1257_vm4, %v2989_v8, %v2990_v60  ;;  %v7953_v8 = vld [vmem:[#allocation2 + $0x58] sm:$0xff] }
  0x94   : > { %v2414_v28 = vor.u32 %v2413_v26, %v2409_v0  ;;  %v7931_v47 = vld [vmem:[#allocation2 + $0x40] sm:$0xff]  ;;  %v2438_v0 = vrot.slane %v2436_v55, 1  ;;  %v7224_v26 = vld [vmem:[%s7503_s11 + $0x98] ss:$0 sps:$4 sm:$0x11]   ;;  %v3006_v55 = vrot.slane %v7221_v11, 1 }
  0x95   : > { %2977 = vst.msk [vmem:[#allocation2 + $0x40] sm:$0xff] %vm230_vm2, %v2975_v44  ;;  %v2466_v40 = vshll.u32 %v7224_v26, 16  ;;  %v7226_v44 = vld [vmem:[%s7503_s11 + $0x98] ss:$0 sps:$4 sm:$0x11]  }
  0x96   : > { %6492 = vmatmul.mubr.msk.bf16.gmra.mrb[4].mxu1 %vm230_vm2, %v7557_v14  ;;  %v2439_v14 = vor.u32 %v2438_v0, %v2434_v33  ;;  %v7228_v33 = vld [vmem:[%s7503_s11 + $0x9c] sm:$0xff]  }
  0x97   : > { %6632 = vmatmul.mubr.msk.bf16.gmra.mrb[8].mxu0 %vm230_vm2, %v3095_v61  ;;  %v2419_v61 = vsel %vm410_vm3, %v2414_v28, %v2418_v43  ;;  %6495 = vmatprep.mubr.msk.bf16.mxu1 %vm230_vm2, %v7576_v37  ;;  %v2461_v28 = vshll.u32 %v7223_v12, 16  ;;  %v3005_v37 = vrot.slane %v7220_v25, 1  ;;  %v7229_v12 = vld [vmem:[%s7503_s11 + $0xa4] ss:$0 sps:$4 sm:$0x11]   ;;  %v2486_v26 = vshll.u32 %v7228_v33, 16 }
  0x98   : > { %6635 = vmatprep.mubr.msk.bf16.mxu0 %vm230_vm2, %v3096_v6  ;;  %2421 = vst.msk [vmem:[#allocation2 + $0x48] sm:$0xff] %vm230_vm2, %v2419_v61  ;;  %v2441_v6 = vshll.u32 %v7219_v54, 16 }
  0x99   : > { %v2463_v61 = vrot.slane %v2461_v28, 1  ;;  %v7230_v28 = vld [vmem:[%s7503_s11 + $0x9c] sm:$0xfe]  }
  0x9a   : > { %v2443_v49 = vrot.slane %v2441_v6, 1  ;;  %v2468_v6 = vrot.slane %v2466_v40, 1  ;;  %v7231_v40 = vld [vmem:[%s7503_s11 + $0xa4] ss:$0 sps:$4 sm:$0x11]  }
  0x9b   : > { %v2464_v60 = vor.u32 %v2463_v61, %v2459_v38  ;;  %v2491_v38 = vshll.u32 %v7229_v12, 16  ;;  %v7233_v61 = vld [vmem:[%s7503_s11 + $0xa8] sm:$0xff]  }
  0x9c   : > { %v2444_v43 = vsel %vm410_vm3, %v2439_v14, %v2443_v49  ;;  %v3098_v0 = vld [vmem:[#allocation2 + $0x40] sm:$0xff]  ;;  %v2484_v14 = vshrl.u32 %v7228_v33, 16  ;;  %v7234_v33 = vld [vmem:[%s7503_s11 + $0xb0] ss:$0 sps:$4 sm:$0x11]   ;;  %v2509_v12 = vshrl.u32 %v7233_v61, 16 }
  0x9d   : > { %2446 = vst.msk [vmem:[#allocation2 + $0x50] sm:$0xff] %vm230_vm2, %v2444_v43  ;;  %v7217_v49 = vld [vmem:[%s7503_s11 + $0x84] sm:$0xff]   ;;  %3432 = vst.msk [vmem:[#allocation2 + $0x40] sm:$0xff] %vm230_vm2, %v7212_v17  ;;  %v2469_v11 = vsel %vm410_vm3, %v2464_v60, %v2468_v6  ;;  %v2493_v17 = vrot.slane %v2491_v38, 1  ;;  %v7238_v38 = vld [vmem:[%s7503_s11 + $0xb4] sm:$0xff]  }
  0x9e   : > { %6496 = vmatmul.mubr.msk.bf16.gmra.mrb[8].mxu1 %vm230_vm2, %v7593_v59  ;;  %2471 = vst.msk [vmem:[#allocation2 + $0x58] sm:$0xff] %vm230_vm2, %v2469_v11  ;;  %v3022_v59 = vrot.slane %v7226_v44, 1  ;;  %v7967_v43 = vld [vmem:[#allocation2 + $0x60] sm:$0xff]  ;;  %v3037_v44 = vrot.slane %v7230_v28, 1  ;;  %v2511_v11 = vshll.u32 %v7233_v61, 16 }
  0x9f   : > { %6636 = vmatmul.mubr.msk.bf16.gmra.mrb[12].mxu0 %vm230_vm2, %v7882_v56  ;;  %v7225_v56 = vld [vmem:[%s7503_s11 + $0x90] sm:$0xfe]   ;;  %v7947_v54 = vld [vmem:[#allocation2 + $0x48] sm:$0xff]  ;;  %6499 = vmatprep.mubr.msk.bf16.mxu1 %vm230_vm2, %v7611_v21  ;;  %v2488_v21 = vrot.slane %v2486_v26, 1  ;;  %v7227_v61 = vld [vmem:[%s7503_s11 + $0x9c] sm:$0xff]  }
  0xa0   : > { %2993 = vst.msk [vmem:[#allocation2 + $0x48] sm:$0xff] %vm230_vm2, %v2991_v22  ;;  %v3021_v25 = vrot.slane %v7225_v56, 1  ;;  %6639 = vmatprep.mubr.msk.bf16.mxu0 %vm230_vm2, %v3098_v0  ;;  %v3007_v22 = vsel %vm1257_vm4, %v3005_v37, %v3006_v55  ;;  %v7222_v55 = vld [vmem:[%s7503_s11 + $0x90] sm:$0xff]   ;;  %v7235_v26 = vld [vmem:[%s7503_s11 + $0xa8] sm:$0xfe]  }
  0xa1   : > { %v2489_v37 = vor.u32 %v2488_v21, %v2484_v14  ;;  %v3038_v14 = vrot.slane %v7231_v40, 1 }
  0xa2   : > { %v3023_v60 = vsel %vm1257_vm4, %v3021_v25, %v3022_v59  ;;  %v2513_v25 = vrot.slane %v2511_v11, 1  ;;  %v7236_v59 = vld [vmem:[%s7503_s11 + $0xb0] ss:$0 sps:$4 sm:$0x11]   ;;  %v7240_v11 = vld [vmem:[%s7503_s11 + $0xb4] sm:$0xfe]  }
  0xa3   : > { %v2494_v0 = vsel %vm410_vm3, %v2489_v37, %v2493_v17  ;;  %v3053_v17 = vrot.slane %v7235_v26, 1 }
  0xa4   : > { %v7970_v56 = vld [vmem:[#allocation2 + $0x50] sm:$0xff]  ;;  %2496 = vst.msk [vmem:[#allocation2 + $0x60] sm:$0xff] %vm230_vm2, %v2494_v0  ;;  %v2514_v21 = vor.u32 %v2513_v25, %v2509_v12  ;;  %v3054_v0 = vrot.slane %v7236_v59, 1  ;;  %v7241_v25 = vld [vmem:[%s7503_s11 + $0xbc] ss:$0 sps:$4 sm:$0x11]  }
  0xa5   : > { %3009 = vst.msk [vmem:[#allocation2 + $0x50] sm:$0xff] %vm230_vm2, %v3007_v22  ;;  %v7986_v22 = vld [vmem:[#allocation2 + $0x58] sm:$0xff] }
  0xa6   : > { %6500 = vmatmul.mubr.msk.bf16.gmra.mrb[12].mxu1 %vm230_vm2, %v7640_v57  ;;  %3025 = vst.msk [vmem:[#allocation2 + $0x58] sm:$0xff] %vm230_vm2, %v3023_v60  ;;  %v7991_v57 = vld [vmem:[#allocation2 + $0x68] sm:$0xff]  ;;  %v2536_v60 = vshll.u32 %v7238_v38, 16 }
  0xa7   : > { %v3099_v6 = vld [vmem:[#allocation2 + $0x48] sm:$0xff]  ;;  %6503 = vmatprep.mubr.msk.bf16.mxu1 %vm230_vm2, %v7668_v42  ;;  %v3039_v42 = vsel %vm1257_vm4, %v3037_v44, %v3038_v14  ;;  %v8008_v44 = vld [vmem:[#allocation2 + $0x70] sm:$0xff] }
  0xa8   : > { %6640 = vmatmul.mubr.msk.bf16.gmra.mrb[16].mxu0 %vm230_vm2, %v3099_v6  ;;  %3441 = vst.msk [vmem:[#allocation2 + $0x48] sm:$0xff] %vm230_vm2, %v7217_v49  ;;  %v2516_v49 = vshll.u32 %v7234_v33, 16  ;;  %v7239_v6 = vld [vmem:[%s7503_s11 + $0xbc] ss:$0 sps:$4 sm:$0x11]   ;;  %v2534_v33 = vshrl.u32 %v7238_v38, 16 }
  0xa9   : > { %v2541_v12 = vshll.u32 %v7239_v6, 16  ;;  %v2538_v26 = vrot.slane %v2536_v60, 1  ;;  %v7232_v38 = vld [vmem:[%s7503_s11 + $0xa8] sm:$0xff]   ;;  %v7245_v60 = vld [vmem:[%s7503_s11 + $0xc0] sm:$0xfe]  }
  0xaa   : > { %v2518_v28 = vrot.slane %v2516_v49, 1 }
  0xab   : > { %v8001_v49 = vld [vmem:[#allocation2 + $0x60] sm:$0xff]  ;;  %v2539_v59 = vor.u32 %v2538_v26, %v2534_v33 }
  0xac   : > { %v3100_v40 = vld [vmem:[#allocation2 + $0x50] sm:$0xff]  ;;  %v2519_v37 = vsel %vm410_vm3, %v2514_v21, %v2518_v28  ;;  %8681 = vst [vmem:[#allocation6_spill] sm:$0xff] %v8001_v49  ;;  %3041 = vst.msk [vmem:[#allocation2 + $0x60] sm:$0xff] %vm230_vm2, %v3039_v42  ;;  %v3069_v28 = vrot.slane %v7240_v11, 1  ;;  %v3055_v21 = vsel %vm1257_vm4, %v3053_v17, %v3054_v0  ;;  %v8025_v11 = vld [vmem:[#allocation2 + $0x78] sm:$0xff] }
  0xad   : > { %6643 = vmatprep.mubr.msk.bf16.mxu0 %vm230_vm2, %v3100_v40  ;;  %3450 = vst.msk [vmem:[#allocation2 + $0x50] sm:$0xff] %vm230_vm2, %v7222_v55  ;;  %2521 = vst.msk [vmem:[#allocation2 + $0x68] sm:$0xff] %vm230_vm2, %v2519_v37  ;;  %v7243_v40 = vld [vmem:[%s7503_s11 + $0xc0] sm:$0xff]   ;;  %v2543_v55 = vrot.slane %v2541_v12, 1  ;;  %v3101_v14 = vld [vmem:[#allocation2 + $0x58] sm:$0xff] }
  0xae   : > { %6504 = vmatmul.mubr.msk.bf16.gmra.mrb[16].mxu1 %vm230_vm2, %v7695_v23  ;;  %3459 = vst.msk [vmem:[#allocation2 + $0x58] sm:$0xff] %vm230_vm2, %v7227_v61  ;;  %v7244_v23 = vld [vmem:[%s7503_s11 + $0xc8] ss:$0 sps:$4 sm:$0x11]   ;;  %v2559_v42 = vshrl.u32 %v7243_v40, 16  ;;  %v2561_v37 = vshll.u32 %v7243_v40, 16 }
  0xaf   : > { %6507 = vmatprep.mubr.msk.bf16.mxu1 %vm230_vm2, %v7723_v15  ;;  %v2544_v6 = vsel %vm410_vm3, %v2539_v59, %v2543_v55  ;;  %v3070_v15 = vrot.slane %v7241_v25, 1  ;;  %v2566_v33 = vshll.u32 %v7244_v23, 16  ;;  %v7246_v61 = vld [vmem:[%s7503_s11 + $0xc8] ss:$0 sps:$4 sm:$0x11]   ;;  %v7237_v25 = vld [vmem:[%s7503_s11 + $0xb4] sm:$0xff]  }
  0xb0   : > { %6644 = vmatmul.mubr.msk.bf16.gmra.mrb[20].mxu0 %vm230_vm2, %v3101_v14  ;;  %2546 = vst.msk [vmem:[#allocation2 + $0x70] sm:$0xff] %vm230_vm2, %v2544_v6  ;;  %v2563_v26 = vrot.slane %v2561_v37, 1  ;;  %v7248_v14 = vld [vmem:[%s7503_s11 + $0x18] sm:$0xff]   ;;  %v3085_v40 = vrot.slane %v7245_v60, 1  ;;  %v7242_v49 = vld [vmem:[%s7503_s11 + $0xc0] sm:$0xff]  }
  0xb1   : > { %v2568_v17 = vrot.slane %v2566_v33, 1  ;;  %v7249_v59 = vld [vmem:[%s7503_s11 + $0x20] ss:$0 sps:$4 sm:$0x11]   ;;  %v3071_v23 = vsel %vm1257_vm4, %v3069_v28, %v3070_v15  ;;  %v3771_v6 = vshrl.u32 %v7248_v14, 16  ;;  %v7250_v33 = vld [vmem:[%s7503_s11 + $0x24] sm:$0xff]  }
  0xb2   : > { %v2564_v55 = vor.u32 %v2563_v26, %v2559_v42  ;;  %v3773_v42 = vshll.u32 %v7248_v14, 16  ;;  %v7251_v15 = vld [vmem:[%s7503_s11 + $0x2c] ss:$0 sps:$4 sm:$0x11]   ;;  %v3796_v14 = vshrl.u32 %v7250_v33, 16 }
  0xb3   : > { %v3102_v0 = vld [vmem:[#allocation2 + $0x60] sm:$0xff] }
  0xb4   : > { %v8020_v12 = vld [vmem:[#allocation2 + $0x68] sm:$0xff]  ;;  %6647 = vmatprep.mubr.msk.bf16.mxu0 %vm230_vm2, %v3102_v0  ;;  %3468 = vst.msk [vmem:[#allocation2 + $0x60] sm:$0xff] %vm230_vm2, %v7232_v38  ;;  %v3775_v28 = vrot.slane %v3773_v42, 1  ;;  %v7252_v0 = vld [vmem:[%s7503_s11 + $0x30] sm:$0xff]  }
  0xb5   : > { %8682 = vst [vmem:[#allocation7_spill] sm:$0xff] %v8020_v12  ;;  %3057 = vst.msk [vmem:[#allocation2 + $0x68] sm:$0xff] %vm230_vm2, %v3055_v21  ;;  %v2569_v21 = vsel %vm410_vm3, %v2564_v55, %v2568_v17  ;;  %v6115_v38 = vld [vmem:[%s8676_s1 + $0xe] sm:$0x3]  ;;  %v3798_v17 = vshll.u32 %v7250_v33, 16 }
  0xb6   : > { %6508 = vmatmul.mubr.msk.bf16.gmra.mrb[20].mxu1 %vm230_vm2, %v7751_v9  ;;  %2571 = vst.msk [vmem:[#allocation2 + $0x78] sm:$0xff] %vm230_vm2, %v2569_v21  ;;  %v3778_v9 = vshll.u32 %v7249_v59, 16  ;;  %v8042_v37 = vand.u32 %v6115_v38, %v7474_v3  ;;  %v3776_v59 = vor.u32 %v3775_v28, %v3771_v6  ;;  %v3803_v21 = vshll.u32 %v7251_v15, 16  ;;  %v7253_v42 = vld [vmem:[%s7503_s11 + $0x38] ss:$0 sps:$4 sm:$0x11]  }
  0xb7   : > { %6511 = vmatprep.mubr.msk.bf16.mxu1 %vm230_vm2, %v7778_v2  ;;  %v8045_v60 = vld [vmem:[#allocation2 + $0x70] sm:$0xff]  ;;  %v3086_v2 = vrot.slane %v7246_v61, 1  ;;  %v3800_v61 = vrot.slane %v3798_v17, 1  ;;  %v3821_v38 = vshrl.u32 %v7252_v0, 16  ;;  %v7254_v15 = vld [vmem:[%s7503_s11 + $0x3c] sm:$0xff]  }
  0xb8   : > { %8683 = vst [vmem:[#allocation8_spill] sm:$0xff] %v8045_v60  ;;  %3073 = vst.msk [vmem:[#allocation2 + $0x70] sm:$0xff] %vm230_vm2, %v3071_v23  ;;  %v3780_v26 = vrot.slane %v3778_v9, 1  ;;  %6689 = vmatprep.subr.bf16.mxu0 %v8042_v37  ;;  %v3823_v23 = vshll.u32 %v7252_v0, 16  ;;  %v3497_v60 = vld [vmem:[#allocation2] sm:$0xff]  ;;  %v3805_v33 = vrot.slane %v3803_v21, 1 }
  0xb9   : > { %v3087_v9 = vsel %vm1257_vm4, %v3085_v40, %v3086_v2  ;;  %v3801_v6 = vor.u32 %v3800_v61, %v3796_v14  ;;  %v7255_v40 = vld [vmem:[%s7503_s11 + $0x44] ss:$0 sps:$4 sm:$0x11]   ;;  %v8067_v2 = vld [vmem:[#allocation2 + $0x8] sm:$0xff]  ;;  %v8071_v0 = vld [vmem:[#allocation2 + $0x10] sm:$0xff] }
  0xba   : > { %v3781_v12 = vsel %vm410_vm3, %v3776_v59, %v3780_v26  ;;  %v3825_v28 = vrot.slane %v3823_v23, 1  ;;  %v3853_v59 = vshll.u32 %v7255_v40, 16  ;;  %v7256_v21 = vld [vmem:[%s7503_s11 + $0x48] sm:$0xff]   ;;  %v7257_v23 = vld [vmem:[%s7503_s11 + $0x50] ss:$0 sps:$4 sm:$0x11]  }
  0xbb   : > { %3783 = vst.msk [vmem:[#allocation2] sm:$0xff] %vm230_vm2, %v3781_v12  ;;  %v7247_v61 = vld [vmem:[%s7503_s11 + $0xcc] sm:$0xff]   ;;  %v8082_v40 = vld [vmem:[#allocation2 + $0x18] sm:$0xff] }
  0xbc   : > { %v3103_v55 = vld [vmem:[#allocation2 + $0x68] sm:$0xff]  ;;  %v3826_v12 = vor.u32 %v3825_v28, %v3821_v38  ;;  %v7258_v38 = vld [vmem:[%s7503_s11 + $0x54] sm:$0xff]   ;;  %v3873_v28 = vshll.u32 %v7256_v21, 16 }
  0xbd   : > { %6648 = vmatmul.mubr.msk.bf16.gmra.mrb[24].mxu0 %vm230_vm2, %v3103_v55  ;;  %3477 = vst.msk [vmem:[#allocation2 + $0x68] sm:$0xff] %vm230_vm2, %v7237_v25  ;;  %v3828_v25 = vshll.u32 %v7253_v42, 16  ;;  %v8061_v17 = vld [vmem:[#allocation2 + $0x78] sm:$0xff]  ;;  %v3846_v55 = vshrl.u32 %v7254_v15, 16 }
  0xbe   : > { %6512 = vmatmul.mubr.msk.bf16.gmra.mrb[24].mxu1 %vm230_vm2, %v7811_v27  ;;  %8684 = vst [vmem:[#allocation9_spill] sm:$0xff] %v8061_v17  ;;  %3089 = vst.msk [vmem:[#allocation2 + $0x78] sm:$0xff] %vm230_vm2, %v3087_v9  ;;  %v3806_v27 = vsel %vm410_vm3, %v3801_v6, %v3805_v33  ;;  %v3855_v33 = vrot.slane %v3853_v59, 1  ;;  %v3871_v6 = vshrl.u32 %v7256_v21, 16  ;;  %v3898_v17 = vshll.u32 %v7258_v38, 16 }
  0xbf   : > { %6515 = vmatprep.mubr.msk.bf16.mxu1 %vm230_vm2, %v7835_v29  ;;  %v3830_v26 = vrot.slane %v3828_v25, 1  ;;  %v3104_v14 = vld [vmem:[#allocation2 + $0x70] sm:$0xff]  ;;  %3808 = vst.msk [vmem:[#allocation2 + $0x8] sm:$0xff] %vm230_vm2, %v3806_v27  ;;  %v3848_v29 = vshll.u32 %v7254_v15, 16  ;;  %v3878_v25 = vshll.u32 %v7257_v23, 16  ;;  %v7260_v23 = vld [vmem:[%s7503_s11 + $0x60] sm:$0xff]  }
  0xc0   : > { %6651 = vmatprep.mubr.msk.bf16.mxu0 %vm230_vm2, %v3104_v14  ;;  %3486 = vst.msk [vmem:[#allocation2 + $0x70] sm:$0xff] %vm230_vm2, %v7242_v49  ;;  %v7259_v15 = vld [vmem:[%s7503_s11 + $0x5c] ss:$0 sps:$4 sm:$0x11]   ;;  %v3875_v14 = vrot.slane %v3873_v28, 1  ;;  %v3896_v49 = vshrl.u32 %v7258_v38, 16 }
  0xc1   : > { %v3831_v42 = vsel %vm410_vm3, %v3826_v12, %v3830_v26  ;;  %v3850_v9 = vrot.slane %v3848_v29, 1  ;;  %v3880_v12 = vrot.slane %v3878_v25, 1  ;;  %v3903_v26 = vshll.u32 %v7259_v15, 16  ;;  %v7262_v28 = vld [vmem:[%s7503_s11 + $0x6c] sm:$0xff]   ;;  %v5759_v15 = vld [vmem:[%s8676_s1 + $0x6] sm:$0x3] }
  0xc2   : > { %3833 = vst.msk [vmem:[#allocation2 + $0x10] sm:$0xff] %vm230_vm2, %v3831_v42  ;;  %v3876_v59 = vor.u32 %v3875_v14, %v3871_v6  ;;  %v3900_v21 = vrot.slane %v3898_v17, 1  ;;  %v3923_v6 = vshll.u32 %v7260_v23, 16  ;;  %v7263_v25 = vld [vmem:[%s7503_s11 + $0x74] ss:$0 sps:$4 sm:$0x11]  }
  0xc3   : > { %v3851_v27 = vor.u32 %v3850_v9, %v3846_v55  ;;  %v7261_v55 = vld [vmem:[%s7503_s11 + $0x68] ss:$0 sps:$4 sm:$0x11]   ;;  %v3905_v38 = vrot.slane %v3903_v26, 1  ;;  %v3946_v14 = vshrl.u32 %v7262_v28, 16  ;;  %v7264_v26 = vld [vmem:[%s7503_s11 + $0x78] sm:$0xff]  }
  0xc4   : > { %v8098_v9 = vld [vmem:[#allocation2 + $0x28] sm:$0xff]  ;;  %v3901_v17 = vor.u32 %v3900_v21, %v3896_v49 }
  0xc5   : > { %v3105_v42 = vld [vmem:[#allocation2 + $0x78] sm:$0xff]  ;;  %v3856_v29 = vsel %vm410_vm3, %v3851_v27, %v3855_v33  ;;  %v3921_v33 = vshrl.u32 %v7260_v23, 16  ;;  %v7265_v23 = vld [vmem:[%s7503_s11 + $0x80] ss:$0 sps:$4 sm:$0x11]  }
  0xc6   : > { %6516 = vmatmul.mubr.msk.bf16.gmra.mrb[28].mxu1 %vm230_vm2, %v7858_v16  ;;  %6652 = vmatmul.mubr.msk.bf16.gmra.mrb[28].mxu0 %vm230_vm2, %v3105_v42  ;;  %3496 = vst.msk [vmem:[#allocation2 + $0x78] sm:$0xff] %vm230_vm2, %v7247_v61  ;;  %3858 = vst.msk [vmem:[#allocation2 + $0x18] sm:$0xff] %vm230_vm2, %v3856_v29  ;;  %v8094_v16 = vld [vmem:[#allocation2 + $0x20] sm:$0xff]  ;;  %v3928_v61 = vshll.u32 %v7261_v55, 16  ;;  %v3906_v27 = vsel %vm410_vm3, %v3901_v17, %v3905_v38  ;;  %v3953_v42 = vshll.u32 %v7263_v25, 16  ;;  %v3971_v55 = vshrl.u32 %v7264_v26, 16 }
  0xc7   : > { %6521 = vmatprep.mubr.msk.bf16.mxu1 %vm230_vm2, %v7549_v4  ;;  %6657 = vmatprep.mubr.msk.bf16.mxu0 %vm230_vm2, %v3497_v60  ;;  %v3881_v4 = vsel %vm410_vm3, %v3876_v59, %v3880_v12  ;;  %v3925_v60 = vrot.slane %v3923_v6, 1  ;;  %v3948_v12 = vshll.u32 %v7262_v28, 16  ;;  %3908 = vst.msk [vmem:[#allocation2 + $0x28] sm:$0xff] %vm230_vm2, %v3906_v27  ;;  %v1977_v29 = vand.u32 %v5759_v15, %v7474_v3  ;;  %v8113_v38 = vld [vmem:[#allocation2 + $0x30] sm:$0xff]  ;;  %v7266_v15 = vld [vmem:[%s7503_s11 + $0x84] sm:$0xff]  }
  0xc8   : > { %3883 = vst.msk [vmem:[#allocation2 + $0x20] sm:$0xff] %vm230_vm2, %v3881_v4  ;;  %v3930_v49 = vrot.slane %v3928_v61, 1  ;;  %v3973_v4 = vshll.u32 %v7264_v26, 16  ;;  %v3955_v17 = vrot.slane %v3953_v42, 1  ;;  %v3978_v25 = vshll.u32 %v7265_v23, 16  ;;  %v7268_v27 = vld [vmem:[%s7503_s11 + $0x90] sm:$0xff]  }
  0xc9   : > { %v3926_v59 = vor.u32 %v3925_v60, %v3921_v33  ;;  %v3950_v21 = vrot.slane %v3948_v12, 1  ;;  %6553 = vmatprep.subr.bf16.mxu1 %v1977_v29  ;;  %v8118_v33 = vld [vmem:[#allocation2 + $0x38] sm:$0xff]  ;;  %v8131_v60 = vld [vmem:[#allocation2 + $0x40] sm:$0xff]  ;;  %v3998_v26 = vshll.u32 %v7266_v15, 16 }
  0xca   : > { %v3975_v61 = vrot.slane %v3973_v4, 1  ;;  %v3980_v12 = vrot.slane %v3978_v25, 1  ;;  %v7269_v42 = vld [vmem:[%s7503_s11 + $0x98] ss:$0 sps:$4 sm:$0x11]   ;;  %v7270_v4 = vld [vmem:[%s7503_s11 + $0x9c] sm:$0xff]  }
  0xcb   : > { %v3931_v6 = vsel %vm410_vm3, %v3926_v59, %v3930_v49  ;;  %v3951_v28 = vor.u32 %v3950_v21, %v3946_v14  ;;  %v4023_v59 = vshll.u32 %v7268_v27, 16  ;;  %v4028_v23 = vshll.u32 %v7269_v42, 16 }
  0xcc   : > { %3933 = vst.msk [vmem:[#allocation2 + $0x30] sm:$0xff] %vm230_vm2, %v3931_v6  ;;  %v3976_v14 = vor.u32 %v3975_v61, %v3971_v55  ;;  %v7272_v6 = vld [vmem:[%s7503_s11 + $0xa8] sm:$0xff]  }
  0xcd   : > { %v4025_v55 = vrot.slane %v4023_v59, 1  ;;  %v4030_v25 = vrot.slane %v4028_v23, 1  ;;  %v7276_v23 = vld [vmem:[%s7503_s11 + $0xc0] sm:$0xff]  }
  0xce   : > { %6522 = vmatmul.mubr.msk.bf16.vlgmr.msra.gmra.mrb[0].mxu1 %vm230_vm2, %v7566_v24  ;;  %6658 = vmatmul.mubr.msk.bf16.vlgmr.msra.gmra.mrb[0].mxu0 %vm230_vm2, %v8067_v2  ;;  %v7267_v24 = vld [vmem:[%s7503_s11 + $0x8c] ss:$0 sps:$4 sm:$0x11]   ;;  %v3996_v2 = vshrl.u32 %v7266_v15, 16  ;;  %v4046_v15 = vshrl.u32 %v7270_v4, 16 }
  0xcf   : > { %6525 = vmatprep.mubr.msk.bf16.mxu1 %vm230_vm2, %v7583_v46  ;;  %6554 = vmatpush3.bf16.msra.mxu1 %v1977_v29  ;;  %v3956_v46 = vsel %vm410_vm3, %v3951_v28, %v3955_v17  ;;  %v4003_v49 = vshll.u32 %v7267_v24, 16  ;;  %v4021_v29 = vshrl.u32 %v7268_v27, 16  ;;  %v7271_v17 = vld [vmem:[%s7503_s11 + $0xa4] ss:$0 sps:$4 sm:$0x11]   ;;  %v8142_v28 = vld [vmem:[#allocation2 + $0x48] sm:$0xff] }
  0xd0   : > { %6757 = vmatprep.subr.bf16.mxu1 %v7487_v7  ;;  %6690 = vmatpush3.bf16.msra.mxu0 %v8042_v37  ;;  %3958 = vst.msk [vmem:[#allocation2 + $0x38] sm:$0xff] %vm230_vm2, %v3956_v46  ;;  %v3981_v37 = vsel %vm410_vm3, %v3976_v14, %v3980_v12  ;;  %v4048_v24 = vshll.u32 %v7270_v4, 16  ;;  %v4053_v46 = vshll.u32 %v7271_v17, 16  ;;  %v4071_v14 = vshrl.u32 %v7272_v6, 16 }
  0xd1   : > { %6661 = vmatprep.mubr.msk.bf16.mxu0 %vm230_vm2, %v8071_v0  ;;  %3983 = vst.msk [vmem:[#allocation2 + $0x40] sm:$0xff] %vm230_vm2, %v3981_v37  ;;  %v4000_v0 = vrot.slane %v3998_v26, 1  ;;  %v4005_v21 = vrot.slane %v4003_v49, 1  ;;  %v4026_v27 = vor.u32 %v4025_v55, %v4021_v29  ;;  %v4073_v49 = vshll.u32 %v7272_v6, 16 }
  0xd2   : > { %v4050_v26 = vrot.slane %v4048_v24, 1  ;;  %v4055_v37 = vrot.slane %v4053_v46, 1  ;;  %v7275_v4 = vld [vmem:[%s7503_s11 + $0xbc] ss:$0 sps:$4 sm:$0x11]   ;;  %v4123_v46 = vshll.u32 %v7276_v23, 16 }
  0xd3   : > { %v4001_v61 = vor.u32 %v4000_v0, %v3996_v2  ;;  %v7274_v2 = vld [vmem:[%s7503_s11 + $0xb4] sm:$0xff]   ;;  %v4031_v42 = vsel %vm410_vm3, %v4026_v27, %v4030_v25  ;;  %v4075_v59 = vrot.slane %v4073_v49, 1  ;;  %v4103_v24 = vshll.u32 %v7275_v4, 16  ;;  %v7277_v27 = vld [vmem:[%s7503_s11 + $0xc8] ss:$0 sps:$4 sm:$0x11]  }
  0xd4   : > { %v4051_v29 = vor.u32 %v4050_v26, %v4046_v15  ;;  %v4098_v55 = vshll.u32 %v7274_v2, 16  ;;  %v8167_v15 = vld [vmem:[#allocation2 + $0x60] sm:$0xff]  ;;  %v4128_v49 = vshll.u32 %v7277_v27, 16  ;;  %v8187_v4 = vld [vmem:[#allocation2 + $0x70] sm:$0xff]  ;;  %v8199_v27 = vld [vmem:[#allocation2 + $0x78] sm:$0xff] }
  0xd5   : > { %v4006_v12 = vsel %vm410_vm3, %v4001_v61, %v4005_v21  ;;  %v4096_v21 = vshrl.u32 %v7274_v2, 16  ;;  %v4076_v17 = vor.u32 %v4075_v59, %v4071_v14  ;;  %v4121_v61 = vshrl.u32 %v7276_v23, 16  ;;  %v7278_v2 = vld [vmem:[%s7503_s11 + $0xcc] sm:$0xff]   ;;  %v7280_v23 = vld [vmem:[%s7503_s11 + $0x18] sm:$0xfe]  }
  0xd6   : > { %6526 = vmatmul.mubr.msk.bf16.gmra.mrb[4].mxu1 %vm230_vm2, %v7600_v5  ;;  %6662 = vmatmul.mubr.msk.bf16.gmra.mrb[4].mxu0 %vm230_vm2, %v8082_v40  ;;  %v7273_v5 = vld [vmem:[%s7503_s11 + $0xb0] ss:$0 sps:$4 sm:$0x11]   ;;  %4008 = vst.msk [vmem:[#allocation2 + $0x48] sm:$0xff] %vm230_vm2, %v4006_v12  ;;  %v8158_v40 = vld [vmem:[#allocation2 + $0x58] sm:$0xff]  ;;  %v4100_v25 = vrot.slane %v4098_v55, 1 }
  0xd7   : > { %6529 = vmatprep.mubr.msk.bf16.mxu1 %vm230_vm2, %v7620_v31  ;;  %6665 = vmatprep.mubr.msk.bf16.mxu0 %vm230_vm2, %v8094_v16  ;;  %v8154_v31 = vld [vmem:[#allocation2 + $0x50] sm:$0xff]  ;;  %v4078_v0 = vshll.u32 %v7273_v5, 16  ;;  %v4056_v16 = vsel %vm410_vm3, %v4051_v29, %v4055_v37  ;;  %v4105_v26 = vrot.slane %v4103_v24, 1  ;;  %v4125_v5 = vrot.slane %v4123_v46, 1  ;;  %v7282_v24 = vld [vmem:[%s7503_s11 + $0x24] sm:$0xfe]  }
  0xd8   : > { %4033 = vst.msk [vmem:[#allocation2 + $0x50] sm:$0xff] %vm230_vm2, %v4031_v42  ;;  %4058 = vst.msk [vmem:[#allocation2 + $0x58] sm:$0xff] %vm230_vm2, %v4056_v16  ;;  %v4101_v14 = vor.u32 %v4100_v25, %v4096_v21  ;;  %v7279_v42 = vld [vmem:[%s7503_s11 + $0xd4] ss:$0 sps:$4 sm:$0x11]   ;;  %v4130_v29 = vrot.slane %v4128_v49, 1 }
  0xd9   : > { %v4080_v6 = vrot.slane %v4078_v0, 1  ;;  %v4126_v37 = vor.u32 %v4125_v5, %v4121_v61  ;;  %v4146_v59 = vshrl.u32 %v7278_v2, 16  ;;  %v4148_v0 = vshll.u32 %v7278_v2, 16  ;;  %v7281_v55 = vld [vmem:[%s7503_s11 + $0x20] ss:$0 sps:$4 sm:$0x11]  }
  0xda   : > { %v4153_v21 = vshll.u32 %v7279_v42, 16  ;;  %v4432_v61 = vrot.slane %v7280_v23, 1  ;;  %v4433_v25 = vrot.slane %v7281_v55, 1  ;;  %v7284_v2 = vld [vmem:[%s7503_s11 + $0x30] sm:$0xfe]  }
  0xdb   : > { %v4081_v12 = vsel %vm410_vm3, %v4076_v17, %v4080_v6  ;;  %v4150_v17 = vrot.slane %v4148_v0, 1  ;;  %v7288_v23 = vld [vmem:[%s7503_s11 + $0x48] sm:$0xfe]  }
  0xdc   : > { %4083 = vst.msk [vmem:[#allocation2 + $0x60] sm:$0xff] %vm230_vm2, %v4081_v12  ;;  %v4155_v6 = vrot.slane %v4153_v21, 1  ;;  %v7283_v12 = vld [vmem:[%s7503_s11 + $0x2c] ss:$0 sps:$4 sm:$0x11]   ;;  %v4496_v55 = vrot.slane %v7288_v23, 1 }
  0xdd   : > { %v4151_v46 = vor.u32 %v4150_v17, %v4146_v59  ;;  %v4449_v49 = vrot.slane %v7283_v12, 1  ;;  %v8222_v59 = vld [vmem:[#allocation2 + $0x10] sm:$0xff]  ;;  %v7292_v12 = vld [vmem:[%s7503_s11 + $0x60] sm:$0xfe]  }
  0xde   : > { %6530 = vmatmul.mubr.msk.bf16.gmra.mrb[8].mxu1 %vm230_vm2, %v7634_v53  ;;  %6666 = vmatmul.mubr.msk.bf16.gmra.mrb[8].mxu0 %vm230_vm2, %v8098_v9  ;;  %v8176_v53 = vld [vmem:[#allocation2 + $0x68] sm:$0xff]  ;;  %v6212_v9 = vld [vmem:[%s8676_s1 + $0x10] sm:$0x3] }
  0xdf   : > { %6533 = vmatprep.mubr.msk.bf16.mxu1 %vm230_vm2, %v7653_v19  ;;  %6669 = vmatprep.mubr.msk.bf16.mxu0 %vm230_vm2, %v8113_v38  ;;  %v4106_v19 = vsel %vm410_vm3, %v4101_v14, %v4105_v26  ;;  %v4131_v38 = vsel %vm410_vm3, %v4126_v37, %v4130_v29  ;;  %v8192_v16 = vand.u32 %v6212_v9, %v7474_v3  ;;  %v8204_v3 = vld [vmem:[#allocation2] sm:$0xff]  ;;  %v4448_v26 = vrot.slane %v7282_v24, 1  ;;  %v7289_v9 = vld [vmem:[%s7503_s11 + $0x50] ss:$0 sps:$4 sm:$0x11]  }
  0xe0   : > { %4108 = vst.msk [vmem:[#allocation2 + $0x68] sm:$0xff] %vm230_vm2, %v4106_v19  ;;  %4133 = vst.msk [vmem:[#allocation2 + $0x70] sm:$0xff] %vm230_vm2, %v4131_v38  ;;  %v4434_v14 = vsel %vm1257_vm4, %v4432_v61, %v4433_v25  ;;  %v4156_v5 = vsel %vm410_vm3, %v4151_v46, %v4155_v6  ;;  %v4464_v19 = vrot.slane %v7284_v2, 1  ;;  %v7286_v37 = vld [vmem:[%s7503_s11 + $0x3c] sm:$0xfe]   ;;  %v4497_v61 = vrot.slane %v7289_v9, 1 }
  0xe1   : > { %6723 = vmatprep.subr.bf16.mxu0 %v8192_v16  ;;  %4436 = vst.msk [vmem:[#allocation2] sm:$0xff] %vm230_vm2, %v4434_v14  ;;  %4158 = vst.msk [vmem:[#allocation2 + $0x78] sm:$0xff] %vm230_vm2, %v4156_v5  ;;  %v4450_v42 = vsel %vm1257_vm4, %v4448_v26, %v4449_v49  ;;  %v7287_v29 = vld [vmem:[%s7503_s11 + $0x44] ss:$0 sps:$4 sm:$0x11]   ;;  %v4480_v21 = vrot.slane %v7286_v37, 1 }
  0xe2   : > { %v8230_v38 = vld [vmem:[#allocation2 + $0x18] sm:$0xff]  ;;  %v8235_v6 = vld [vmem:[#allocation2 + $0x20] sm:$0xff]  ;;  %v7293_v14 = vld [vmem:[%s7503_s11 + $0x68] ss:$0 sps:$4 sm:$0x11]  }
  0xe3   : > { %v7290_v25 = vld [vmem:[%s7503_s11 + $0x54] sm:$0xfe]   ;;  %v7291_v24 = vld [vmem:[%s7503_s11 + $0x5c] ss:$0 sps:$4 sm:$0x11]   ;;  %v8248_v26 = vld [vmem:[#allocation2 + $0x28] sm:$0xff] }
  0xe4   : > { %v4513_v46 = vrot.slane %v7291_v24, 1  ;;  %v7294_v49 = vld [vmem:[%s7503_s11 + $0x6c] sm:$0xfe]   ;;  %v4529_v2 = vrot.slane %v7293_v14, 1 }
  0xe5   : > { %v7299_v9 = vld [vmem:[%s7503_s11 + $0x8c] ss:$0 sps:$4 sm:$0x11]   ;;  %v7303_v14 = vld [vmem:[%s7503_s11 + $0xa4] ss:$0 sps:$4 sm:$0x11]  }
  0xe6   : > { %6534 = vmatmul.mubr.msk.bf16.gmra.mrb[12].mxu1 %vm230_vm2, %v7683_v1  ;;  %6670 = vmatmul.mubr.msk.bf16.gmra.mrb[12].mxu0 %vm230_vm2, %v8118_v33  ;;  %v8211_v1 = vld [vmem:[#allocation2 + $0x8] sm:$0xff] }
  0xe7   : > { %6537 = vmatprep.mubr.msk.bf16.mxu1 %vm230_vm2, %v7712_v52  ;;  %v7285_v52 = vld [vmem:[%s7503_s11 + $0x38] ss:$0 sps:$4 sm:$0x11]   ;;  %6673 = vmatprep.mubr.msk.bf16.mxu0 %vm230_vm2, %v8131_v60  ;;  %4452 = vst.msk [vmem:[#allocation2 + $0x8] sm:$0xff] %vm230_vm2, %v4450_v42  ;;  %v4481_v60 = vrot.slane %v7287_v29, 1  ;;  %v4544_v42 = vrot.slane %v7294_v49, 1 }
  0xe8   : > { %v4465_v33 = vrot.slane %v7285_v52, 1  ;;  %v8254_v52 = vld [vmem:[#allocation2 + $0x30] sm:$0xff]  ;;  %v7296_v29 = vld [vmem:[%s7503_s11 + $0x78] sm:$0xfe]   ;;  %v8280_v24 = vld [vmem:[#allocation2 + $0x48] sm:$0xff]  ;;  %v4609_v49 = vrot.slane %v7303_v14, 1 }
  0xe9   : > { %v4482_v17 = vsel %vm1257_vm4, %v4480_v21, %v4481_v60  ;;  %v7298_v60 = vld [vmem:[%s7503_s11 + $0x84] sm:$0xfe]  }
  0xea   : > { %v4466_v0 = vsel %vm1257_vm4, %v4464_v19, %v4465_v33  ;;  %4484 = vst.msk [vmem:[#allocation2 + $0x18] sm:$0xff] %vm230_vm2, %v4482_v17  ;;  %v8259_v33 = vld [vmem:[#allocation2 + $0x38] sm:$0xff]  ;;  %v4576_v17 = vrot.slane %v7298_v60, 1  ;;  %v7309_v60 = vld [vmem:[%s7503_s11 + $0xc8] ss:$0 sps:$4 sm:$0x11]  }
  0xeb   : > { %4468 = vst.msk [vmem:[#allocation2 + $0x10] sm:$0xff] %vm230_vm2, %v4466_v0  ;;  %v7297_v0 = vld [vmem:[%s7503_s11 + $0x80] ss:$0 sps:$4 sm:$0x11]  }
  0xec   : > { %v4561_v23 = vrot.slane %v7297_v0, 1  ;;  %v4171_v0 = vld [vmem:[#allocation2 + $0x60] sm:$0xff] }
  0xee   : > { %6538 = vmatmul.mubr.msk.bf16.gmra.mrb[16].mxu1 %vm230_vm2, %v7736_v41  ;;  %6674 = vmatmul.mubr.msk.bf16.gmra.mrb[16].mxu0 %vm230_vm2, %v8142_v28  ;;  %v4498_v41 = vsel %vm1257_vm4, %v4496_v55, %v4497_v61  ;;  %v4528_v28 = vrot.slane %v7292_v12, 1  ;;  %v7300_v61 = vld [vmem:[%s7503_s11 + $0x90] sm:$0xfe]   ;;  %v7302_v12 = vld [vmem:[%s7503_s11 + $0x9c] sm:$0xfe]  }
  0xef   : > { %6541 = vmatprep.mubr.msk.bf16.mxu1 %vm230_vm2, %v7764_v36  ;;  %6677 = vmatprep.mubr.msk.bf16.mxu0 %vm230_vm2, %v8154_v31  ;;  %v4512_v36 = vrot.slane %v7290_v25, 1  ;;  %4500 = vst.msk [vmem:[#allocation2 + $0x20] sm:$0xff] %vm230_vm2, %v4498_v41  ;;  %v7295_v31 = vld [vmem:[%s7503_s11 + $0x74] ss:$0 sps:$4 sm:$0x11]   ;;  %v4592_v41 = vrot.slane %v7300_v61, 1 }
  0xf0   : > { %v4530_v19 = vsel %vm1257_vm4, %v4528_v28, %v4529_v2  ;;  %v4545_v37 = vrot.slane %v7295_v31, 1  ;;  %v7301_v25 = vld [vmem:[%s7503_s11 + $0x98] ss:$0 sps:$4 sm:$0x11]   ;;  %v4608_v28 = vrot.slane %v7302_v12, 1 }
  0xf1   : > { %v4514_v5 = vsel %vm1257_vm4, %v4512_v36, %v4513_v46  ;;  %4532 = vst.msk [vmem:[#allocation2 + $0x30] sm:$0xff] %vm230_vm2, %v4530_v19  ;;  %v8283_v36 = vld [vmem:[#allocation2 + $0x50] sm:$0xff]  ;;  %v4593_v46 = vrot.slane %v7301_v25, 1  ;;  %v7304_v2 = vld [vmem:[%s7503_s11 + $0xa8] sm:$0xfe]  }
  0xf2   : > { %4516 = vst.msk [vmem:[#allocation2 + $0x28] sm:$0xff] %vm230_vm2, %v4514_v5  ;;  %v4546_v21 = vsel %vm1257_vm4, %v4544_v42, %v4545_v37  ;;  %v7305_v31 = vld [vmem:[%s7503_s11 + $0xb0] ss:$0 sps:$4 sm:$0x11]   ;;  %v4610_v42 = vsel %vm1257_vm4, %v4608_v28, %v4609_v49  ;;  %v7306_v19 = vld [vmem:[%s7503_s11 + $0xb4] sm:$0xfe]  }
  0xf3   : > { %4548 = vst.msk [vmem:[#allocation2 + $0x38] sm:$0xff] %vm230_vm2, %v4546_v21  ;;  %v4594_v5 = vsel %vm1257_vm4, %v4592_v41, %v4593_v46  ;;  %v4625_v37 = vrot.slane %v7305_v31, 1  ;;  %v7310_v61 = vld [vmem:[%s7503_s11 + $0xcc] sm:$0xfe]   ;;  %v4174_v46 = vld [vmem:[#allocation2 + $0x78] sm:$0xff] }
  0xf4   : > { %4596 = vst.msk [vmem:[#allocation2 + $0x50] sm:$0xff] %vm230_vm2, %v4594_v5  ;;  %v4173_v25 = vld [vmem:[#allocation2 + $0x70] sm:$0xff] }
  0xf6   : > { %6542 = vmatmul.mubr.msk.bf16.gmra.mrb[20].mxu1 %vm230_vm2, %v7794_v45  ;;  %6678 = vmatmul.mubr.msk.bf16.gmra.mrb[20].mxu0 %vm230_vm2, %v8158_v40  ;;  %v4560_v45 = vrot.slane %v7296_v29, 1  ;;  %v4577_v40 = vrot.slane %v7299_v9, 1  ;;  %v7307_v29 = vld [vmem:[%s7503_s11 + $0xbc] ss:$0 sps:$4 sm:$0x11]  }
  0xf7   : > { %6545 = vmatprep.mubr.msk.bf16.mxu1 %vm230_vm2, %v7822_v58  ;;  %6681 = vmatprep.mubr.msk.bf16.mxu0 %vm230_vm2, %v8167_v15  ;;  %v8274_v58 = vld [vmem:[#allocation2 + $0x40] sm:$0xff] }
  0xf8   : > { %v4562_v55 = vsel %vm1257_vm4, %v4560_v45, %v4561_v23  ;;  %v4578_v15 = vsel %vm1257_vm4, %v4576_v17, %v4577_v40  ;;  %v4641_v45 = vrot.slane %v7307_v29, 1  ;;  %v7308_v23 = vld [vmem:[%s7503_s11 + $0xc0] sm:$0xfe]   ;;  %v4657_v17 = vrot.slane %v7309_v60, 1 }
  0xf9   : > { %4564 = vst.msk [vmem:[#allocation2 + $0x40] sm:$0xff] %vm230_vm2, %v4562_v55  ;;  %4580 = vst.msk [vmem:[#allocation2 + $0x48] sm:$0xff] %vm230_vm2, %v4578_v15  ;;  %v4656_v55 = vrot.slane %v7308_v23, 1  ;;  %v7311_v40 = vld [vmem:[%s7503_s11 + $0xd4] ss:$0 sps:$4 sm:$0x11]  }
  0xfa   : > { %v4672_v15 = vrot.slane %v7310_v61, 1  ;;  %s6262_s11 = sshll.u32 %s7382_s15, 5  ;;  %s7312_s15 = scalar_lea.vmem %s8629_s19, 32 }
  0xfb   : > { %v4658_v41 = vsel %vm1257_vm4, %v4656_v55, %v4657_v17  ;;  %s8627_s26 = scalar_lea.hbm %s8678_s3, %s6262_s11  ;;  %p7313_p12 = scmp.ne.s32.totalorder %s8629_s19, %s7312_s15 }
  0xfc   : > { %4660 = vst.msk [vmem:[#allocation2 + $0x70] sm:$0xff] %vm230_vm2, %v4658_v41  ;;  %p7320_p2 = scmp.lt.s32.totalorder %s7318_s4, %s7312_s15 }
  0xfd   : > { %p7314_p13 = pnand %p7313_p12, %p7454_p4 }
  0xfe   : > { %6546 = vmatmul.mubr.msk.bf16.gmra.mrb[24].mxu1 %vm230_vm2, %v7856_v13  ;;  %6682 = vmatmul.mubr.msk.bf16.gmra.mrb[24].mxu0 %vm230_vm2, %v8176_v53  ;;  %v4170_v13 = vld [vmem:[#allocation2 + $0x58] sm:$0xff]  ;;  %v4640_v53 = vrot.slane %v7306_v19, 1  ;;  %p7321_p3 = por %p7320_p2, %p7319_p1 }
  0xff   : > { %6549 = vmatprep.mubr.msk.bf16.mxu1 %vm230_vm2, %v7888_v10  ;;  %6685 = vmatprep.mubr.msk.bf16.mxu0 %vm230_vm2, %v8187_v4  ;;  %v4624_v10 = vrot.slane %v7304_v2, 1  ;;  %4612 = vst.msk [vmem:[#allocation2 + $0x58] sm:$0xff] %vm230_vm2, %v4610_v42  ;;  %v4172_v4 = vld [vmem:[#allocation2 + $0x68] sm:$0xff]  ;;  %p7315_p0 = pneg %p7314_p13 }
 0x100   : > { %v4642_v9 = vsel %vm1257_vm4, %v4640_v53, %v4641_v45 }
 0x101   : > { %v4626_v21 = vsel %vm1257_vm4, %v4624_v10, %v4625_v37  ;;  %4644 = vst.msk [vmem:[#allocation2 + $0x68] sm:$0xff] %vm230_vm2, %v4642_v9  ;;  %p7322_p5 = pnand %p7321_p3, %p7315_p0 }
 0x102   : > { %4628 = vst.msk [vmem:[#allocation2 + $0x60] sm:$0xff] %vm230_vm2, %v4626_v21 }
 0x106   : > { %6550 = vmatmul.mubr.msk.bf16.gmra.mrb[28].mxu1 %vm230_vm2, %v7907_v62  ;;  %6686 = vmatmul.mubr.msk.bf16.gmra.mrb[28].mxu0 %vm230_vm2, %v8199_v27  ;;  %v4673_v62 = vrot.slane %v7311_v40, 1 }
 0x107   : > { %6555 = vmatprep.mubr.msk.bf16.mxu1 %vm230_vm2, %v7625_v35  ;;  %6691 = vmatprep.mubr.msk.bf16.mxu0 %vm230_vm2, %v8204_v3  ;;  %v4678_v35 = vld [vmem:[#allocation2 + $0x8] sm:$0xff] }
 0x108   : > { %v4674_v12 = vsel %vm1257_vm4, %v4672_v15, %v4673_v62 }
 0x109   : > { %4676 = vst.msk [vmem:[#allocation2 + $0x78] sm:$0xff] %vm230_vm2, %v4674_v12 }
 0x10e   : > { %6556 = vmatmul.mubr.msk.bf16.vlgmr.msra.gmra.mrb[0].mxu1 %vm230_vm2, %v7655_v20  ;;  %6692 = vmatmul.mubr.msk.bf16.vlgmr.msra.gmra.mrb[0].mxu0 %vm230_vm2, %v8211_v1  ;;  %v4679_v20 = vld [vmem:[#allocation2 + $0x10] sm:$0xff] }
 0x10f   : > { %6559 = vmatprep.mubr.msk.bf16.mxu1 %vm230_vm2, %v7681_v63  ;;  %6758 = vmatpush3.bf16.msra.mxu1 %v7487_v7  ;;  %v4677_v7 = vld [vmem:[#allocation2] sm:$0xff]  ;;  %v4680_v63 = vld [vmem:[#allocation2 + $0x18] sm:$0xff] }
 0x110   : > { %6724 = vmatpush3.bf16.msra.mxu0 %v8192_v16  ;;  %6695 = vmatprep.mubr.msk.bf16.mxu0 %vm230_vm2, %v8222_v59 }
 0x116   : > { %6560 = vmatmul.mubr.msk.bf16.gmra.mrb[4].mxu1 %vm230_vm2, %v7710_v50  ;;  %6696 = vmatmul.mubr.msk.bf16.gmra.mrb[4].mxu0 %vm230_vm2, %v8230_v38  ;;  %v4681_v50 = vld [vmem:[#allocation2 + $0x20] sm:$0xff] }
 0x117   : > { %6563 = vmatprep.mubr.msk.bf16.mxu1 %vm230_vm2, %v7734_v39  ;;  %6699 = vmatprep.mubr.msk.bf16.mxu0 %vm230_vm2, %v8235_v6  ;;  %v8685_v39 = vld [vmem:[#allocation6_spill] sm:$0xff] }
 0x11e   : > { %6564 = vmatmul.mubr.msk.bf16.gmra.mrb[8].mxu1 %vm230_vm2, %v7761_v32  ;;  %6700 = vmatmul.mubr.msk.bf16.gmra.mrb[8].mxu0 %vm230_vm2, %v8248_v26  ;;  %v4682_v32 = vld [vmem:[#allocation2 + $0x28] sm:$0xff] }
 0x11f   : > { %6567 = vmatprep.mubr.msk.bf16.mxu1 %vm230_vm2, %v7791_v34  ;;  %6703 = vmatprep.mubr.msk.bf16.mxu0 %vm230_vm2, %v8254_v52  ;;  %v4683_v34 = vld [vmem:[#allocation2 + $0x30] sm:$0xff] }
 0x126   : > { %6568 = vmatmul.mubr.msk.bf16.gmra.mrb[12].mxu1 %vm230_vm2, %v7820_v51  ;;  %6704 = vmatmul.mubr.msk.bf16.gmra.mrb[12].mxu0 %vm230_vm2, %v8259_v33  ;;  %v8686_v51 = vld [vmem:[#allocation7_spill] sm:$0xff] }
 0x127   : > { %6571 = vmatprep.mubr.msk.bf16.mxu1 %vm230_vm2, %v7904_v48  ;;  %6707 = vmatprep.mubr.msk.bf16.mxu0 %vm230_vm2, %v8274_v58  ;;  %v8687_v48 = vld [vmem:[#allocation8_spill] sm:$0xff] }
 0x12e   : > { %6572 = vmatmul.mubr.msk.bf16.gmra.mrb[16].mxu1 %vm230_vm2, %v7921_v30  ;;  %6708 = vmatmul.mubr.msk.bf16.gmra.mrb[16].mxu0 %vm230_vm2, %v8280_v24  ;;  %v4684_v30 = vld [vmem:[#allocation2 + $0x38] sm:$0xff] }
 0x12f   : > { %6575 = vmatprep.mubr.msk.bf16.mxu1 %vm230_vm2, %v7940_v18  ;;  %6711 = vmatprep.mubr.msk.bf16.mxu0 %vm230_vm2, %v8283_v36  ;;  %v8688_v18 = vld [vmem:[#allocation9_spill] sm:$0xff] }
 0x136   : > { %6576 = vmatmul.mubr.msk.bf16.gmra.mrb[20].mxu1 %vm230_vm2, %v7953_v8  ;;  %6712 = vmatmul.mubr.msk.bf16.gmra.mrb[20].mxu0 %vm230_vm2, %v4170_v13  ;;  %v4687_v8 = vld [vmem:[#allocation2 + $0x50] sm:$0xff] }
 0x137   : > { %6579 = vmatprep.mubr.msk.bf16.mxu1 %vm230_vm2, %v7967_v43  ;;  %6715 = vmatprep.mubr.msk.bf16.mxu0 %vm230_vm2, %v4171_v0  ;;  %v4688_v43 = vld [vmem:[#allocation2 + $0x58] sm:$0xff] }
 0x13e   : > { %6580 = vmatmul.mubr.msk.bf16.gmra.mrb[24].mxu1 %vm230_vm2, %v7991_v57  ;;  %6716 = vmatmul.mubr.msk.bf16.gmra.mrb[24].mxu0 %vm230_vm2, %v4172_v4  ;;  %v4691_v57 = vld [vmem:[#allocation2 + $0x70] sm:$0xff] }
 0x13f   : > { %6583 = vmatprep.mubr.msk.bf16.mxu1 %vm230_vm2, %v8008_v44  ;;  %6719 = vmatprep.mubr.msk.bf16.mxu0 %vm230_vm2, %v4173_v25  ;;  %v4692_v44 = vld [vmem:[#allocation2 + $0x78] sm:$0xff] }
 0x146   : > { %6584 = vmatmul.mubr.msk.bf16.gmra.mrb[28].mxu1 %vm230_vm2, %v8025_v11  ;;  %6720 = vmatmul.mubr.msk.bf16.gmra.mrb[28].mxu0 %vm230_vm2, %v4174_v46 }
 0x147   : > { %6605 = vmatprep.mubr.msk.bf16.mxu1 %vm230_vm2, %v7931_v47  ;;  %6725 = vmatprep.mubr.msk.bf16.mxu0 %vm230_vm2, %v4677_v7  ;;  %v4685_v47 = vld [vmem:[#allocation2 + $0x40] sm:$0xff] }
 0x14e   : > { %6606 = vmatmul.mubr.msk.bf16.vlgmr.msra.gmra.mrb[16].mxu1 %vm230_vm2, %v7947_v54  ;;  %6726 = vmatmul.mubr.msk.bf16.vlgmr.msra.gmra.mrb[0].mxu0 %vm230_vm2, %v4678_v35  ;;  %v4686_v54 = vld [vmem:[#allocation2 + $0x48] sm:$0xff] }
 0x14f   : > { %6609 = vmatprep.mubr.msk.bf16.mxu1 %vm230_vm2, %v7970_v56  ;;  %6729 = vmatprep.mubr.msk.bf16.mxu0 %vm230_vm2, %v4679_v20  ;;  %v4689_v56 = vld [vmem:[#allocation2 + $0x60] sm:$0xff] }
 0x156   : > { %6610 = vmatmul.mubr.msk.bf16.gmra.mrb[20].mxu1 %vm230_vm2, %v7986_v22  ;;  %6730 = vmatmul.mubr.msk.bf16.gmra.mrb[4].mxu0 %vm230_vm2, %v4680_v63  ;;  %v4690_v22 = vld [vmem:[#allocation2 + $0x68] sm:$0xff] }
 0x157   : > { %6613 = vmatprep.mubr.msk.bf16.mxu1 %vm230_vm2, %v8685_v39  ;;  %6733 = vmatprep.mubr.msk.bf16.mxu0 %vm230_vm2, %v4681_v50 }
 0x15e   : > { %6614 = vmatmul.mubr.msk.bf16.gmra.mrb[24].mxu1 %vm230_vm2, %v8686_v51  ;;  %6734 = vmatmul.mubr.msk.bf16.gmra.mrb[8].mxu0 %vm230_vm2, %v4682_v32 }
 0x15f   : > { %6617 = vmatprep.mubr.msk.bf16.mxu1 %vm230_vm2, %v8687_v48  ;;  %6737 = vmatprep.mubr.msk.bf16.mxu0 %vm230_vm2, %v4683_v34 }
 0x166   : > { %6618 = vmatmul.mubr.msk.bf16.gmra.mrb[28].mxu1 %vm230_vm2, %v8688_v18  ;;  %6738 = vmatmul.mubr.msk.bf16.gmra.mrb[12].mxu0 %vm230_vm2, %v4684_v30 }
 0x167   : > { %6741 = vmatprep.mubr.msk.bf16.mxu0 %vm230_vm2, %v4685_v47 }
 0x16e   : > { %6742 = vmatmul.mubr.msk.bf16.gmra.mrb[16].mxu0 %vm230_vm2, %v4686_v54 }
 0x16f   : > { %6745 = vmatprep.mubr.msk.bf16.mxu0 %vm230_vm2, %v4687_v8 }
 0x176   : > { %6746 = vmatmul.mubr.msk.bf16.gmra.mrb[20].mxu0 %vm230_vm2, %v4688_v43 }
 0x177   : > { %6749 = vmatprep.mubr.msk.bf16.mxu0 %vm230_vm2, %v4689_v56 }
 0x17e   : > { %6750 = vmatmul.mubr.msk.bf16.gmra.mrb[24].mxu0 %vm230_vm2, %v4690_v22 }
 0x17f   : > { %6753 = vmatprep.mubr.msk.bf16.mxu0 %vm230_vm2, %v4691_v57 }
 0x186   : > { %6754 = vmatmul.mubr.msk.bf16.gmra.mrb[28].mxu0 %vm230_vm2, %v4692_v44 }
 0x1e1   : > { %v6557_v11 = vpop.f32.mrb[0].mxu1 }
 0x1e2   : > { %v2013_v16 = vpop.f32.mrb[1].mxu1 }
 0x1e3   : > { %v6558_v27 = vpop.f32.mrb[2].mxu1 }
 0x1e4   : > { %v2016_v3 = vpop.f32.mrb[3].mxu1 }
 0x1e9   : > { %v6561_v1 = vpop.f32.mrb[4].mxu1 }
 0x1ea   : > { %v2029_v59 = vpop.f32.mrb[5].mxu1 }
 0x1eb   : > { %v6562_v38 = vpop.f32.mrb[6].mxu1 }
 0x1ec   : > { %v8413_v6 = vpop.f32.mrb[7].mxu1 }
 0x1f1   : > { %v8415_v26 = vpop.f32.mrb[8].mxu1 }
 0x1f2   : > { %v8417_v52 = vpop.f32.mrb[9].mxu1 }
 0x1f3   : > { %v8419_v33 = vpop.f32.mrb[10].mxu1 }
 0x1f4   : > { %v8421_v58 = vpop.f32.mrb[11].mxu1 }
 0x1f9   : > { %v8423_v24 = vpop.f32.mrb[12].mxu1 }
 0x1fa   : > { %v8425_v36 = vpop.f32.mrb[13].mxu1 }
 0x1fb   : > { %v8427_v14 = vpop.f32.mrb[14].mxu1 }
 0x1fc   : > { %v8429_v5 = vpop.f32.mrb[15].mxu1 }
 0x221   : > { %v8431_v28 = vpop.f32.mrb[16].mxu1  ;;  %v6727_v2 = vpop.f32.mrb[0].mxu0 }
 0x222   : > { %v8434_v49 = vpop.f32.mrb[17].mxu1  ;;  %v6759_v13 = vadd.f32 %v6727_v2, %v6557_v11  ;;  %v4780_v42 = vpop.f32.mrb[1].mxu0 }
 0x223   : > { %v8436_v31 = vpop.f32.mrb[18].mxu1  ;;  %v6760_v19 = vadd.f32 %v4780_v42, %v2013_v16  ;;  %v6728_v37 = vpop.f32.mrb[2].mxu0 }
 0x224   : > { %v8438_v10 = vpop.f32.mrb[19].mxu1  ;;  %v6268_v29 = vpack.c.bf16 %v6759_v13, %v6759_v13  ;;  %v6761_v0 = vadd.f32 %v6728_v37, %v6558_v27  ;;  %v4783_v53 = vpop.f32.mrb[3].mxu0 }
 0x225   : > { %v6266_v21 = vpack.c.bf16 %v6760_v19, %v6760_v19  ;;  %v6762_v45 = vadd.f32 %v4783_v53, %v2016_v3 }
 0x226   : > { %5070 = vst.msk [vmem:[%s8443_s9 + $0x8] sm:$0xf] %vm5067_vm5, %v6268_v29  ;;  %v4940_v23 = vpack.c.bf16 %v6761_v0, %v6759_v13  ;;  %v6269_v60 = vpack.c.bf16 %v6761_v0, %v6761_v0 }
 0x227   : > { %5068 = vst.msk [vmem:[%s8443_s9] sm:$0xf] %vm5067_vm5, %v6266_v21  ;;  %v4939_v4 = vpack.c.bf16 %v6762_v45, %v6760_v19  ;;  %v6267_v9 = vpack.c.bf16 %v6762_v45, %v6762_v45 }
 0x228   : > { %5071 = vst.msk [vmem:[%s8443_s9 + $0xc] sm:$0xf] %vm5067_vm5, %v6269_v60  ;;  %v5102_v17 = vunpack.c.l.bf16 %v4940_v23  ;;  %v5103_v61 = vunpack.c.h.bf16 %v4940_v23 }
 0x229   : > { %v8449_v55 = vpop.f32.mrb[20].mxu1  ;;  %5069 = vst.msk [vmem:[%s8443_s9 + $0x4] sm:$0xf] %vm5067_vm5, %v6267_v9  ;;  %v5100_v25 = vunpack.c.l.bf16 %v4939_v4  ;;  %v5101_v41 = vunpack.c.h.bf16 %v4939_v4  ;;  %v6731_v15 = vpop.f32.mrb[4].mxu0 }
 0x22a   : > { %v8453_v40 = vpop.f32.mrb[21].mxu1  ;;  %v5136_v46 = vsel %vm5132_vm6, %v5102_v17, 0.0  ;;  %v5204_v12 = vmul.f32 %v5102_v17, %v5102_v17  ;;  %v4796_v7 = vpop.f32.mrb[5].mxu0  ;;  %v5138_v34 = vsel %vm5132_vm6, %v5103_v61, 0.0  ;;  %v5205_v51 = vmul.f32 %v5103_v61, %v5103_v61 }
 0x22b   : > { %v8457_v62 = vpop.f32.mrb[22].mxu1  ;;  %v5133_v20 = vsel %vm5132_vm6, %v5100_v25, 0.0  ;;  %v5134_v63 = vsel %vm5132_vm6, %v5101_v41, 0.0  ;;  %v5202_v50 = vmul.f32 %v5100_v25, %v5100_v25  ;;  %v5203_v39 = vmul.f32 %v5101_v41, %v5101_v41  ;;  %v6732_v32 = vpop.f32.mrb[6].mxu0 }
 0x22c   : > { %v8460_v35 = vpop.f32.mrb[23].mxu1  ;;  %v5135_v48 = vadd.f32 %v5134_v63, %v5133_v20  ;;  %v6763_v30 = vadd.f32 %v6731_v15, %v6561_v1  ;;  %v4799_v47 = vpop.f32.mrb[7].mxu0  ;;  %v6764_v8 = vadd.f32 %v4796_v7, %v2029_v59  ;;  %v6765_v43 = vadd.f32 %v6732_v32, %v6562_v38 }
 0x22d   : > { %v5234_v18 = vsel %vm5132_vm6, %v5202_v50, 0.0  ;;  %v5235_v54 = vsel %vm5132_vm6, %v5203_v39, 0.0  ;;  %v6766_v44 = vadd.f32 %v4799_v47, %v8413_v6  ;;  %v5237_v11 = vsel %vm5132_vm6, %v5204_v12, 0.0 }
 0x22e   : > { %v5137_v56 = vadd.f32 %v5136_v46, %v5135_v48  ;;  %v5236_v22 = vadd.f32 %v5235_v54, %v5234_v18  ;;  %v6272_v57 = vpack.c.bf16 %v6763_v30, %v6763_v30  ;;  %v6270_v16 = vpack.c.bf16 %v6764_v8, %v6764_v8 }
 0x22f   : > { %v4942_v27 = vpack.c.bf16 %v6765_v43, %v6763_v30  ;;  %v6273_v3 = vpack.c.bf16 %v6765_v43, %v6765_v43  ;;  %v4941_v59 = vpack.c.bf16 %v6766_v44, %v6764_v8  ;;  %v6271_v38 = vpack.c.bf16 %v6766_v44, %v6766_v44 }
 0x230   : > { %v5238_v2 = vadd.f32 %v5237_v11, %v5236_v22  ;;  %5074 = vst.msk [vmem:[%s8443_s9 + $0x18] sm:$0xf] %vm5067_vm5, %v6272_v57  ;;  %v5139_v13 = vadd.f32 %v5138_v34, %v5137_v56  ;;  %v5239_v19 = vsel %vm5132_vm6, %v5205_v51, 0.0  ;;  %5072 = vst.msk [vmem:[%s8443_s9 + $0x10] sm:$0xf] %vm5067_vm5, %v6270_v16 }
 0x231   : > { %v8469_v1 = vpop.f32.mrb[24].mxu1  ;;  %5075 = vst.msk [vmem:[%s8443_s9 + $0x1c] sm:$0xf] %vm5067_vm5, %v6273_v3  ;;  %v5106_v6 = vunpack.c.l.bf16 %v4942_v27  ;;  %v5107_v37 = vunpack.c.h.bf16 %v4942_v27  ;;  %v6735_v29 = vpop.f32.mrb[8].mxu0  ;;  %5073 = vst.msk [vmem:[%s8443_s9 + $0x14] sm:$0xf] %vm5067_vm5, %v6271_v38  ;;  %v5104_v53 = vunpack.c.l.bf16 %v4941_v59  ;;  %v5105_v21 = vunpack.c.h.bf16 %v4941_v59 }
 0x232   : > { %v8473_v42 = vpop.f32.mrb[25].mxu1  ;;  %v5240_v45 = vadd.f32 %v5239_v19, %v5238_v2  ;;  %v6767_v23 = vadd.f32 %v6735_v29, %v8415_v26  ;;  %v4812_v60 = vpop.f32.mrb[9].mxu0 }
 0x233   : > { %v8480_v0 = vpop.f32.mrb[26].mxu1  ;;  %v6736_v9 = vpop.f32.mrb[10].mxu0  ;;  %v5144_v17 = vsel %vm5132_vm6, %v5106_v6, 0.0  ;;  %v5140_v61 = vsel %vm5132_vm6, %v5104_v53, 0.0  ;;  %v5206_v25 = vmul.f32 %v5104_v53, %v5104_v53  ;;  %v5207_v41 = vmul.f32 %v5105_v21, %v5105_v21 }
 0x234   : > { %v8485_v4 = vpop.f32.mrb[27].mxu1  ;;  %v4815_v15 = vpop.f32.mrb[11].mxu0  ;;  %v5146_v46 = vsel %vm5132_vm6, %v5107_v37, 0.0  ;;  %v5208_v12 = vmul.f32 %v5106_v6, %v5106_v6  ;;  %v5141_v7 = vadd.f32 %v5140_v61, %v5139_v13  ;;  %v6276_v20 = vpack.c.bf16 %v6767_v23, %v6767_v23 }
 0x235   : > { %v5142_v63 = vsel %vm5132_vm6, %v5105_v21, 0.0  ;;  %v5241_v26 = vsel %vm5132_vm6, %v5206_v25, 0.0  ;;  %v6768_v50 = vadd.f32 %v4812_v60, %v8417_v52  ;;  %v6769_v39 = vadd.f32 %v6736_v9, %v8419_v33 }
 0x236   : > { %v5209_v32 = vmul.f32 %v5107_v37, %v5107_v37  ;;  %v5143_v34 = vadd.f32 %v5142_v63, %v5141_v7  ;;  %v5242_v51 = vadd.f32 %v5241_v26, %v5240_v45  ;;  %5078 = vst.msk [vmem:[%s8443_s9 + $0x28] sm:$0xf] %vm5067_vm5, %v6276_v20  ;;  %v6770_v48 = vadd.f32 %v4815_v15, %v8421_v58 }
 0x237   : > { %v5243_v47 = vsel %vm5132_vm6, %v5207_v41, 0.0  ;;  %v6274_v18 = vpack.c.bf16 %v6768_v50, %v6768_v50  ;;  %v4944_v54 = vpack.c.bf16 %v6769_v39, %v6767_v23  ;;  %v6277_v8 = vpack.c.bf16 %v6769_v39, %v6769_v39 }
 0x238   : > { %v5145_v52 = vadd.f32 %v5144_v17, %v5143_v34  ;;  %v5244_v33 = vadd.f32 %v5243_v47, %v5242_v51  ;;  %v4943_v56 = vpack.c.bf16 %v6770_v48, %v6768_v50  ;;  %v6275_v22 = vpack.c.bf16 %v6770_v48, %v6770_v48 }
 0x239   : > { %v8497_v30 = vpop.f32.mrb[28].mxu1  ;;  %v6739_v57 = vpop.f32.mrb[12].mxu0  ;;  %v5245_v11 = vsel %vm5132_vm6, %v5208_v12, 0.0  ;;  %5076 = vst.msk [vmem:[%s8443_s9 + $0x20] sm:$0xf] %vm5067_vm5, %v6274_v18  ;;  %v5110_v58 = vunpack.c.l.bf16 %v4944_v54  ;;  %v5111_v16 = vunpack.c.h.bf16 %v4944_v54  ;;  %v5247_v37 = vsel %vm5132_vm6, %v5209_v32, 0.0 }
 0x23a   : > { %v8500_v43 = vpop.f32.mrb[29].mxu1  ;;  %5079 = vst.msk [vmem:[%s8443_s9 + $0x2c] sm:$0xf] %vm5067_vm5, %v6277_v8  ;;  %v6771_v27 = vadd.f32 %v6739_v57, %v8423_v24  ;;  %v4828_v3 = vpop.f32.mrb[13].mxu0  ;;  %v5246_v59 = vadd.f32 %v5245_v11, %v5244_v33  ;;  %5077 = vst.msk [vmem:[%s8443_s9 + $0x24] sm:$0xf] %vm5067_vm5, %v6275_v22  ;;  %v5108_v38 = vunpack.c.l.bf16 %v4943_v56  ;;  %v5109_v13 = vunpack.c.h.bf16 %v4943_v56 }
 0x23b   : > { %v8502_v44 = vpop.f32.mrb[30].mxu1  ;;  %v5147_v19 = vadd.f32 %v5146_v46, %v5145_v52  ;;  %v6740_v6 = vpop.f32.mrb[14].mxu0  ;;  %v5212_v53 = vmul.f32 %v5110_v58, %v5110_v58  ;;  %v5152_v24 = vsel %vm5132_vm6, %v5110_v58, 0.0  ;;  %v5154_v60 = vsel %vm5132_vm6, %v5111_v16, 0.0 }
 0x23c   : > { %v8510_v2 = vpop.f32.mrb[31].mxu1  ;;  %v4831_v29 = vpop.f32.mrb[15].mxu0  ;;  %v5148_v21 = vsel %vm5132_vm6, %v5108_v38, 0.0  ;;  %v5210_v45 = vmul.f32 %v5108_v38, %v5108_v38  ;;  %v5211_v23 = vmul.f32 %v5109_v13, %v5109_v13  ;;  %v5248_v17 = vadd.f32 %v5247_v37, %v5246_v59 }
 0x23d   : > { %v5149_v9 = vadd.f32 %v5148_v21, %v5147_v19  ;;  %v5150_v61 = vsel %vm5132_vm6, %v5109_v13, 0.0  ;;  %v6280_v41 = vpack.c.bf16 %v6771_v27, %v6771_v27  ;;  %v6772_v15 = vadd.f32 %v4828_v3, %v8425_v36 }
 0x23e   : > { %v5249_v25 = vsel %vm5132_vm6, %v5210_v45, 0.0  ;;  %v6773_v7 = vadd.f32 %v6740_v6, %v8427_v14  ;;  %v6774_v20 = vadd.f32 %v4831_v29, %v8429_v5  ;;  %v5213_v63 = vmul.f32 %v5111_v16, %v5111_v16 }
 0x23f   : > { %v5151_v46 = vadd.f32 %v5150_v61, %v5149_v9  ;;  %v5250_v12 = vadd.f32 %v5249_v25, %v5248_v17  ;;  %v5253_v26 = vsel %vm5132_vm6, %v5212_v53, 0.0  ;;  %v5251_v50 = vsel %vm5132_vm6, %v5211_v23, 0.0  ;;  %5082 = vst.msk [vmem:[%s8443_s9 + $0x38] sm:$0xf] %vm5067_vm5, %v6280_v41 }
 0x240   : > { %v6278_v39 = vpack.c.bf16 %v6772_v15, %v6772_v15  ;;  %v4946_v36 = vpack.c.bf16 %v6773_v7, %v6771_v27  ;;  %v6281_v48 = vpack.c.bf16 %v6773_v7, %v6773_v7  ;;  %v4945_v14 = vpack.c.bf16 %v6774_v20, %v6772_v15 }
 0x241   : > { %v6743_v32 = vpop.f32.mrb[16].mxu0  ;;  %v5153_v34 = vadd.f32 %v5152_v24, %v5151_v46  ;;  %v5252_v51 = vadd.f32 %v5251_v50, %v5250_v12  ;;  %v6279_v5 = vpack.c.bf16 %v6774_v20, %v6774_v20 }
 0x242   : > { %v4844_v47 = vpop.f32.mrb[17].mxu0  ;;  %5080 = vst.msk [vmem:[%s8443_s9 + $0x30] sm:$0xf] %vm5067_vm5, %v6278_v39  ;;  %v6775_v18 = vadd.f32 %v6743_v32, %v8431_v28  ;;  %5083 = vst.msk [vmem:[%s8443_s9 + $0x3c] sm:$0xf] %vm5067_vm5, %v6281_v48  ;;  %v5114_v33 = vunpack.c.l.bf16 %v4946_v36  ;;  %v5115_v56 = vunpack.c.h.bf16 %v4946_v36  ;;  %v5112_v11 = vunpack.c.l.bf16 %v4945_v14 }
 0x243   : > { %v6776_v54 = vadd.f32 %v4844_v47, %v8434_v49  ;;  %v6744_v8 = vpop.f32.mrb[18].mxu0  ;;  %v5254_v52 = vadd.f32 %v5253_v26, %v5252_v51  ;;  %v5155_v22 = vadd.f32 %v5154_v60, %v5153_v34  ;;  %5081 = vst.msk [vmem:[%s8443_s9 + $0x34] sm:$0xf] %vm5067_vm5, %v6279_v5  ;;  %v5113_v58 = vunpack.c.h.bf16 %v4945_v14 }
 0x244   : > { %v4847_v57 = vpop.f32.mrb[19].mxu0  ;;  %v6284_v16 = vpack.c.bf16 %v6775_v18, %v6775_v18  ;;  %v5255_v28 = vsel %vm5132_vm6, %v5213_v63, 0.0  ;;  %v5160_v49 = vsel %vm5132_vm6, %v5114_v33, 0.0  ;;  %v5216_v3 = vmul.f32 %v5114_v33, %v5114_v33 }
 0x245   : > { %v6282_v27 = vpack.c.bf16 %v6776_v54, %v6776_v54  ;;  %v5162_v59 = vsel %vm5132_vm6, %v5115_v56, 0.0  ;;  %v5156_v38 = vsel %vm5132_vm6, %v5112_v11, 0.0  ;;  %v5214_v13 = vmul.f32 %v5112_v11, %v5112_v11 }
 0x246   : > { %v5215_v19 = vmul.f32 %v5113_v58, %v5113_v58  ;;  %5086 = vst.msk [vmem:[%s8443_s9 + $0x48] sm:$0xf] %vm5067_vm5, %v6284_v16  ;;  %v5217_v6 = vmul.f32 %v5115_v56, %v5115_v56  ;;  %v5157_v37 = vadd.f32 %v5156_v38, %v5155_v22  ;;  %v5158_v29 = vsel %vm5132_vm6, %v5113_v58, 0.0 }
 0x247   : > { %5084 = vst.msk [vmem:[%s8443_s9 + $0x40] sm:$0xf] %vm5067_vm5, %v6282_v27  ;;  %v5256_v53 = vadd.f32 %v5255_v28, %v5254_v52  ;;  %v5261_v21 = vsel %vm5132_vm6, %v5216_v3, 0.0  ;;  %v5257_v45 = vsel %vm5132_vm6, %v5214_v13, 0.0  ;;  %v6777_v23 = vadd.f32 %v6744_v8, %v8436_v31 }
 0x248   : > { %v6778_v24 = vadd.f32 %v4847_v57, %v8438_v10  ;;  %v5159_v9 = vadd.f32 %v5158_v29, %v5157_v37  ;;  %v5259_v61 = vsel %vm5132_vm6, %v5215_v19, 0.0  ;;  %v5263_v14 = vsel %vm5132_vm6, %v5217_v6, 0.0 }
 0x249   : > { %v6747_v60 = vpop.f32.mrb[20].mxu0  ;;  %v5258_v17 = vadd.f32 %v5257_v45, %v5256_v53  ;;  %v4948_v15 = vpack.c.bf16 %v6777_v23, %v6775_v18  ;;  %v6285_v46 = vpack.c.bf16 %v6777_v23, %v6777_v23 }
 0x24a   : > { %v6779_v25 = vadd.f32 %v6747_v60, %v8449_v55  ;;  %v4860_v41 = vpop.f32.mrb[21].mxu0  ;;  %v4947_v12 = vpack.c.bf16 %v6778_v24, %v6776_v54  ;;  %v6283_v7 = vpack.c.bf16 %v6778_v24, %v6778_v24  ;;  %v5161_v63 = vadd.f32 %v5160_v49, %v5159_v9 }
 0x24b   : > { %v6748_v20 = vpop.f32.mrb[22].mxu0  ;;  %v5260_v31 = vadd.f32 %v5259_v61, %v5258_v17  ;;  %v6780_v10 = vadd.f32 %v4860_v41, %v8453_v40  ;;  %5087 = vst.msk [vmem:[%s8443_s9 + $0x4c] sm:$0xf] %vm5067_vm5, %v6285_v46  ;;  %v5118_v39 = vunpack.c.l.bf16 %v4948_v15  ;;  %v5119_v32 = vunpack.c.h.bf16 %v4948_v15 }
 0x24c   : > { %v6288_v26 = vpack.c.bf16 %v6779_v25, %v6779_v25  ;;  %v4863_v50 = vpop.f32.mrb[23].mxu0  ;;  %5085 = vst.msk [vmem:[%s8443_s9 + $0x44] sm:$0xf] %vm5067_vm5, %v6283_v7  ;;  %v5116_v55 = vunpack.c.l.bf16 %v4947_v12  ;;  %v5117_v34 = vunpack.c.h.bf16 %v4947_v12  ;;  %v5163_v36 = vadd.f32 %v5162_v59, %v5161_v63 }
 0x24d   : > { %v5262_v51 = vadd.f32 %v5261_v21, %v5260_v31  ;;  %v6286_v48 = vpack.c.bf16 %v6780_v10, %v6780_v10  ;;  %v6781_v47 = vadd.f32 %v6748_v20, %v8457_v62  ;;  %v5168_v40 = vsel %vm5132_vm6, %v5118_v39, 0.0 }
 0x24e   : > { %5090 = vst.msk [vmem:[%s8443_s9 + $0x58] sm:$0xf] %vm5067_vm5, %v6288_v26  ;;  %v5220_v5 = vmul.f32 %v5118_v39, %v5118_v39  ;;  %v5164_v18 = vsel %vm5132_vm6, %v5116_v55, 0.0  ;;  %v5218_v54 = vmul.f32 %v5116_v55, %v5116_v55  ;;  %v5219_v8 = vmul.f32 %v5117_v34, %v5117_v34 }
 0x24f   : > { %5088 = vst.msk [vmem:[%s8443_s9 + $0x50] sm:$0xf] %vm5067_vm5, %v6286_v48  ;;  %v5221_v52 = vmul.f32 %v5119_v32, %v5119_v32  ;;  %v5165_v33 = vadd.f32 %v5164_v18, %v5163_v36  ;;  %v5166_v56 = vsel %vm5132_vm6, %v5117_v34, 0.0  ;;  %v5264_v22 = vadd.f32 %v5263_v14, %v5262_v51 }
 0x250   : > { %v5265_v62 = vsel %vm5132_vm6, %v5218_v54, 0.0  ;;  %v5267_v11 = vsel %vm5132_vm6, %v5219_v8, 0.0  ;;  %v4950_v58 = vpack.c.bf16 %v6781_v47, %v6779_v25  ;;  %v6289_v16 = vpack.c.bf16 %v6781_v47, %v6781_v47 }
 0x251   : > { %v6751_v57 = vpop.f32.mrb[24].mxu0  ;;  %v5167_v28 = vadd.f32 %v5166_v56, %v5165_v33  ;;  %v5266_v49 = vadd.f32 %v5265_v62, %v5264_v22  ;;  %v6782_v3 = vadd.f32 %v4863_v50, %v8460_v35  ;;  %v5170_v24 = vsel %vm5132_vm6, %v5119_v32, 0.0 }
 0x252   : > { %v4876_v27 = vpop.f32.mrb[25].mxu0  ;;  %v6783_v59 = vadd.f32 %v6751_v57, %v8469_v1  ;;  %5091 = vst.msk [vmem:[%s8443_s9 + $0x5c] sm:$0xf] %vm5067_vm5, %v6289_v16  ;;  %v5122_v13 = vunpack.c.l.bf16 %v4950_v58  ;;  %v5123_v19 = vunpack.c.h.bf16 %v4950_v58  ;;  %v5269_v35 = vsel %vm5132_vm6, %v5220_v5, 0.0 }
 0x253   : > { %v6752_v38 = vpop.f32.mrb[26].mxu0  ;;  %v6784_v6 = vadd.f32 %v4876_v27, %v8473_v42  ;;  %v5169_v53 = vadd.f32 %v5168_v40, %v5167_v28  ;;  %v5268_v21 = vadd.f32 %v5267_v11, %v5266_v49  ;;  %v4949_v45 = vpack.c.bf16 %v6782_v3, %v6780_v10 }
 0x254   : > { %v6785_v37 = vadd.f32 %v6752_v38, %v8480_v0  ;;  %v4879_v29 = vpop.f32.mrb[27].mxu0  ;;  %v6287_v23 = vpack.c.bf16 %v6782_v3, %v6782_v3  ;;  %v5271_v1 = vsel %vm5132_vm6, %v5221_v52, 0.0  ;;  %v5176_v0 = vsel %vm5132_vm6, %v5122_v13, 0.0 }
 0x255   : > { %v5270_v60 = vadd.f32 %v5269_v35, %v5268_v21  ;;  %v5120_v9 = vunpack.c.l.bf16 %v4949_v45  ;;  %v5121_v42 = vunpack.c.h.bf16 %v4949_v45  ;;  %v5171_v17 = vadd.f32 %v5170_v24, %v5169_v53 }
 0x256   : > { %5089 = vst.msk [vmem:[%s8443_s9 + $0x54] sm:$0xf] %vm5067_vm5, %v6287_v23  ;;  %v5224_v61 = vmul.f32 %v5122_v13, %v5122_v13  ;;  %v6292_v25 = vpack.c.bf16 %v6783_v59, %v6783_v59  ;;  %v6290_v41 = vpack.c.bf16 %v6784_v6, %v6784_v6  ;;  %v5225_v15 = vmul.f32 %v5123_v19, %v5123_v19 }
 0x257   : > { %v5172_v46 = vsel %vm5132_vm6, %v5120_v9, 0.0  ;;  %v5222_v12 = vmul.f32 %v5120_v9, %v5120_v9  ;;  %v5223_v7 = vmul.f32 %v5121_v42, %v5121_v42  ;;  %v5272_v31 = vadd.f32 %v5271_v1, %v5270_v60 }
 0x258   : > { %v5173_v63 = vadd.f32 %v5172_v46, %v5171_v17  ;;  %5094 = vst.msk [vmem:[%s8443_s9 + $0x68] sm:$0xf] %vm5067_vm5, %v6292_v25  ;;  %5092 = vst.msk [vmem:[%s8443_s9 + $0x60] sm:$0xf] %vm5067_vm5, %v6290_v41  ;;  %v4952_v26 = vpack.c.bf16 %v6785_v37, %v6783_v59  ;;  %v6293_v10 = vpack.c.bf16 %v6785_v37, %v6785_v37  ;;  %v5174_v39 = vsel %vm5132_vm6, %v5121_v42, 0.0 }
 0x259   : > { %v6755_v20 = vpop.f32.mrb[28].mxu0  ;;  %v5273_v32 = vsel %vm5132_vm6, %v5222_v12, 0.0  ;;  %v6786_v55 = vadd.f32 %v4879_v29, %v8485_v4  ;;  %v5275_v47 = vsel %vm5132_vm6, %v5223_v7, 0.0  ;;  %v5277_v33 = vsel %vm5132_vm6, %v5224_v61, 0.0 }
 0x25a   : > { %v4892_v50 = vpop.f32.mrb[29].mxu0  ;;  %v6787_v34 = vadd.f32 %v6755_v20, %v8497_v30  ;;  %v5175_v36 = vadd.f32 %v5174_v39, %v5173_v63  ;;  %v5274_v48 = vadd.f32 %v5273_v32, %v5272_v31  ;;  %5095 = vst.msk [vmem:[%s8443_s9 + $0x6c] sm:$0xf] %vm5067_vm5, %v6293_v10  ;;  %v5126_v14 = vunpack.c.l.bf16 %v4952_v26 }
 0x25b   : > { %v6756_v51 = vpop.f32.mrb[30].mxu0  ;;  %v4951_v5 = vpack.c.bf16 %v6786_v55, %v6784_v6  ;;  %v6291_v18 = vpack.c.bf16 %v6786_v55, %v6786_v55  ;;  %v6788_v8 = vadd.f32 %v4892_v50, %v8500_v43  ;;  %v5178_v30 = vsel %vm5132_vm6, %v5123_v19, 0.0 }
 0x25c   : > { %v4895_v40 = vpop.f32.mrb[31].mxu0  ;;  %v6296_v54 = vpack.c.bf16 %v6787_v34, %v6787_v34  ;;  %v5177_v52 = vadd.f32 %v5176_v0, %v5175_v36  ;;  %v5276_v4 = vadd.f32 %v5275_v47, %v5274_v48  ;;  %v6789_v58 = vadd.f32 %v6756_v51, %v8502_v44 }
 0x25d   : > { %5093 = vst.msk [vmem:[%s8443_s9 + $0x64] sm:$0xf] %vm5067_vm5, %v6291_v18  ;;  %v5124_v56 = vunpack.c.l.bf16 %v4951_v5  ;;  %v5125_v22 = vunpack.c.h.bf16 %v4951_v5  ;;  %v6294_v11 = vpack.c.bf16 %v6788_v8, %v6788_v8  ;;  %v5279_v43 = vsel %vm5132_vm6, %v5225_v15, 0.0 }
 0x25e   : > { %5098 = vst.msk [vmem:[%s8443_s9 + $0x78] sm:$0xf] %vm5067_vm5, %v6296_v54  ;;  %v5278_v57 = vadd.f32 %v5277_v33, %v5276_v4  ;;  %v5179_v62 = vadd.f32 %v5178_v30, %v5177_v52  ;;  %v5127_v16 = vunpack.c.h.bf16 %v4952_v26  ;;  %v5228_v27 = vmul.f32 %v5126_v14, %v5126_v14 }
 0x25f   : > { %v5180_v28 = vsel %vm5132_vm6, %v5124_v56, 0.0  ;;  %v5226_v3 = vmul.f32 %v5124_v56, %v5124_v56  ;;  %v5227_v59 = vmul.f32 %v5125_v22, %v5125_v22  ;;  %5096 = vst.msk [vmem:[%s8443_s9 + $0x70] sm:$0xf] %vm5067_vm5, %v6294_v11  ;;  %v5182_v13 = vsel %vm5132_vm6, %v5125_v22, 0.0 }
 0x260   : > { %v5181_v49 = vadd.f32 %v5180_v28, %v5179_v62  ;;  %v5280_v38 = vadd.f32 %v5279_v43, %v5278_v57  ;;  %v4954_v19 = vpack.c.bf16 %v6789_v58, %v6787_v34  ;;  %v6297_v6 = vpack.c.bf16 %v6789_v58, %v6789_v58 }
 0x261   : > { %v6790_v44 = vadd.f32 %v4895_v40, %v8510_v2  ;;  %v5281_v29 = vsel %vm5132_vm6, %v5226_v3, 0.0  ;;  %v5184_v53 = vsel %vm5132_vm6, %v5126_v14, 0.0  ;;  %v5229_v23 = vmul.f32 %v5127_v16, %v5127_v16 }
 0x262   : > { %v5183_v37 = vadd.f32 %v5182_v13, %v5181_v49  ;;  %v5282_v21 = vadd.f32 %v5281_v29, %v5280_v38  ;;  %5099 = vst.msk [vmem:[%s8443_s9 + $0x7c] sm:$0xf] %vm5067_vm5, %v6297_v6  ;;  %v5283_v35 = vsel %vm5132_vm6, %v5227_v59, 0.0  ;;  %v5186_v60 = vsel %vm5132_vm6, %v5127_v16, 0.0 }
 0x263   : > { %v4953_v45 = vpack.c.bf16 %v6790_v44, %v6788_v8  ;;  %v6295_v1 = vpack.c.bf16 %v6790_v44, %v6790_v44  ;;  %v5285_v9 = vsel %vm5132_vm6, %v5228_v27, 0.0  ;;  %v5130_v2 = vunpack.c.l.bf16 %v4954_v19 }
 0x264   : > { %v5185_v24 = vadd.f32 %v5184_v53, %v5183_v37  ;;  %v5284_v42 = vadd.f32 %v5283_v35, %v5282_v21  ;;  %v5287_v41 = vsel %vm5132_vm6, %v5229_v23, 0.0  ;;  %v5131_v15 = vunpack.c.h.bf16 %v4954_v19 }
 0x265   : > { %5097 = vst.msk [vmem:[%s8443_s9 + $0x74] sm:$0xf] %vm5067_vm5, %v6295_v1  ;;  %v5128_v17 = vunpack.c.l.bf16 %v4953_v45  ;;  %v5129_v0 = vunpack.c.h.bf16 %v4953_v45  ;;  %v5232_v31 = vmul.f32 %v5130_v2, %v5130_v2  ;;  %v5192_v32 = vsel %vm5132_vm6, %v5130_v2, 0.0 }
 0x266   : > { %v5187_v61 = vadd.f32 %v5186_v60, %v5185_v24  ;;  %v5286_v25 = vadd.f32 %v5285_v9, %v5284_v42  ;;  %v5233_v55 = vmul.f32 %v5131_v15, %v5131_v15  ;;  %v5194_v48 = vsel %vm5132_vm6, %v5131_v15, 0.0 }
 0x267   : > { %v5188_v46 = vsel %vm5132_vm6, %v5128_v17, 0.0  ;;  %v5230_v12 = vmul.f32 %v5128_v17, %v5128_v17  ;;  %v5231_v20 = vmul.f32 %v5129_v0, %v5129_v0  ;;  %v5190_v26 = vsel %vm5132_vm6, %v5129_v0, 0.0 }
 0x268   : > { %v5189_v7 = vadd.f32 %v5188_v46, %v5187_v61  ;;  %v5288_v63 = vadd.f32 %v5287_v41, %v5286_v25  ;;  %v5293_v47 = vsel %vm5132_vm6, %v5232_v31, 0.0  ;;  %v5295_v5 = vsel %vm5132_vm6, %v5233_v55, 0.0 }
 0x269   : > { %v5289_v10 = vsel %vm5132_vm6, %v5230_v12, 0.0  ;;  %v5291_v34 = vsel %vm5132_vm6, %v5231_v20, 0.0 }
 0x26a   : > { %v5191_v50 = vadd.f32 %v5190_v26, %v5189_v7  ;;  %v5290_v39 = vadd.f32 %v5289_v10, %v5288_v63 }
 0x26c   : > { %v5193_v51 = vadd.f32 %v5192_v32, %v5191_v50  ;;  %v5292_v36 = vadd.f32 %v5291_v34, %v5290_v39 }
 0x26e   : > { %v5195_v14 = vadd.f32 %v5194_v48, %v5193_v51  ;;  %v5294_v40 = vadd.f32 %v5293_v47, %v5292_v36 }
 0x270   : > { %v5196_v18 = vrot.slane %v5195_v14, 4  ;;  %v5296_v54 = vadd.f32 %v5295_v5, %v5294_v40 }
 0x272   : > { %v5197_v8 = vadd.f32 %v5196_v18, %v5195_v14  ;;  %v5297_v52 = vrot.slane %v5296_v54, 4 }
 0x274   : > { %v5198_v4 = vrot.slane %v5197_v8, 2  ;;  %v5298_v30 = vadd.f32 %v5297_v52, %v5296_v54 }
 0x276   : > { %v5199_v33 = vadd.f32 %v5198_v4, %v5197_v8  ;;  %v5299_v56 = vrot.slane %v5298_v30, 2 }
 0x278   : > { %v5200_v22 = vrot.slane %v5199_v33, 1  ;;  %v5300_v57 = vadd.f32 %v5299_v56, %v5298_v30 }
 0x27a   : > { %v5301_v62 = vrot.slane %v5300_v57, 1  ;;  %v5201_v11 = vadd.f32 %v5200_v22, %v5199_v33 }
 0x27c   : > { %v5302_v58 = vadd.f32 %v5301_v62, %v5300_v57 }
 0x27e   : > { %v5303_v43 = vsel %vm866_vm0, %v5201_v11, %v5302_v58 }
 0x27f   : > { %5305 = vst.msk [vmem:[%s203_s18] sm:$0x3] %vm5304_vm7, %v5303_v43 }
 0x280   : > { %7325 = shalt.err (!%p7322_p5)
}
 0x281   : > { %s7326_s5 = scalar_lea.hbm %s8627_s26, 32  ;;  %s7330_s8 = scalar_lea.hbm %s8678_s3, 64 }
 0x282   : > { %p7327_p6 = scmp.ne.s32.totalorder %s8627_s26, %s7326_s5  ;;  %p7331_p10 = scmp.lt.u32.totalorder %s8627_s26, %s8678_s3 }
 0x283   : > { %p7332_p11 = scmp.lt.u32.totalorder %s7330_s8, %s7326_s5  ;;  %p7334_p13 = scmp.lt.u32.totalorder %s7326_s5, %s8627_s26 }
 0x284   : > { %p7328_p7 = pnand %p7327_p6, %p7454_p4 }
 0x285   : > { %p7333_p12 = por %p7332_p11, %p7331_p10 }
 0x286   : > { %p7329_p9 = pneg %p7328_p7 }
 0x287   : > { %p7335_p0 = por %p7334_p13, %p7333_p12 }
 0x289   : > { %p7336_p1 = pnand %p7335_p0, %p7329_p9 }
 0x28b   : > { %7339 = shalt.err (!%p7336_p1)
}
 0x28c   : > { %7016 = dma.vmem_to_hbm [thread:$0]  (%p7454_p4), %s8629_s19, 32, %s8627_s26, %s5315_s27  }
 0x28d PF: > { %p7022_p2 = scmp.ge.s32.totalorder %s7390_s17, 2  ;;  %s5355_s10 = sand.u32 1, %s7370_s12  }
 0x28e   : > { %s5356_s11 = scalar_lea.sflag [#allocation4], %s5355_s10 }
 0x28f   : > { %p7019_p3 = pnand %p7022_p2, %p7461_p8 }
 0x291   : > { %7365 = dma.done.wait (!%p7019_p3), %s5356_s11, 32  }
 0x292   : > { %7367 = vsyncadd (!%p7019_p3), %s5356_s11, 4294967264  ;;  %s17_s17 = sadd.s32 1, %s7390_s17   ;;  %s8689_s12 = smov %s7374_s13 }
 0x293   : > { %p14_p5 = scmp.ge.s32.totalorder %s17_s17, 4   ;;  %s8690_s13 = smov %s7378_s14 }
 0x294   : > { %s8691_s14 = smov %s7467_s25  ;;  %s8692_s15 = smov %s7386_s16 }
 0x295   : > { %s8693_s16 = smov %s8695_s20  ;;  %16 = sbr.rel (!%p14_p5) target bundleno = 4 (0x4), region = 103 }
 0x29c   :  { %5361 = vsyncpa [#allocation4], 1 }
 0x29d   :  { %5363 = vsyncpa [#allocation4 + $0x1], 1 }

</bundles_post_ra>
